<compile_context>
chip_gen: v7x
topology: tpu7x:2x2x1
jax: 0.10.0
libtpu: 0.0.40
codegen_flags: <defaults>
</compile_context>

<pallas_src>
import functools

import jax
import jax.numpy as jnp
from jax.experimental import pallas as pl
from jax.experimental.pallas import tpu as pltpu

INPUT_PARAM_DIM = 4
OUTPUT_SPECTRUM_DIM = 250
OUTPUT_METRICS_DIM = 8
TOTAL_OUTPUT_DIM = OUTPUT_SPECTRUM_DIM + OUTPUT_METRICS_DIM   # 258
PADDED_OUTPUT_DIM = 384                                       # 3 * 128, lane-dense

HIDDEN_DIMS = [256, 512, 1024, 512, 256]
LN_EPS = 1e-5
LEAKY_SLOPE = 0.2


def _round_up(x, m):
    return ((x + m - 1) // m) * m


def _ln_leaky(y, gamma, beta):
    """LayerNorm (one-pass moments, f32) -> affine -> LeakyReLU(0.2)."""
    inv_n = 1.0 / y.shape[-1]
    mean = jnp.sum(y, axis=-1, keepdims=True) * inv_n
    mean_sq = jnp.sum(y * y, axis=-1, keepdims=True) * inv_n
    var = jnp.maximum(mean_sq - mean * mean, 0.0)
    scale = gamma * jax.lax.rsqrt(var + LN_EPS)     # rsqrt -> EUP slot
    yn = (y - mean) * scale + beta
    return jnp.maximum(yn, LEAKY_SLOPE * yn)        # LeakyReLU, slope in (0,1)


def forward_model_kernel(
    x_ref,
    w1, b1, g1, be1,
    w2, b2, g2, be2,
    w3, b3, g3, be3,
    w4, b4, g4, be4,
    w5, b5, g5, be5,
    w6, b6,
    out_ref,
):
    x = x_ref[...].astype(jnp.float32)                  # (TB, 4)

    # Layer 1: K=4 -> 4 broadcast FMAs on the VPU instead of an MXU matmul.
    w1f = w1[...].astype(jnp.float32)                   # (4, 256)
    y = b1[...] + x[:, 0:1] * w1f[0:1, :]
    for k in range(1, INPUT_PARAM_DIM):
        y = y + x[:, k:k + 1] * w1f[k:k + 1, :]
    h = _ln_leaky(y, g1[...], be1[...])

    # Layers 2..5: bf16 MXU matmuls with f32 accumulation, f32 LN/activation.
    for (w, b, g, be) in ((w2, b2, g2, be2), (w3, b3, g3, be3),
                          (w4, b4, g4, be4), (w5, b5, g5, be5)):
        y = jnp.dot(h.astype(jnp.bfloat16), w[...],
                    preferred_element_type=jnp.float32) + b[...]
        h = _ln_leaky(y, g[...], be[...])

    # Final Linear (padded to 384 output lanes; padded columns are zero).
    out = jnp.dot(h.astype(jnp.bfloat16), w6[...],
                  preferred_element_type=jnp.float32) + b6[...]
    out_ref[...] = out.astype(out_ref.dtype)


def init_params(key, input_dim=INPUT_PARAM_DIM, hidden_dims=HIDDEN_DIMS,
                total_out=TOTAL_OUTPUT_DIM):
    """Deterministic synthetic params (module shapes, not a checkpoint).

    Weights are stored in bf16; biases / LayerNorm gamma,beta stay f32.
    The final layer is zero-padded to PADDED_OUTPUT_DIM columns.
    """
    dims = [input_dim] + list(hidden_dims) + [total_out]
    params = []
    for i in range(len(dims) - 1):
        d_in, d_out = dims[i], dims[i + 1]
        key, kw, kb = jax.random.split(key, 3)
        scale = 1.0 / float(d_in) ** 0.5
        w = jax.random.uniform(kw, (d_in, d_out), jnp.float32, -scale, scale)
        b = jax.random.uniform(kb, (1, d_out), jnp.float32, -scale, scale)
        if i == len(dims) - 2:  # pad final layer to a lane-dense width
            pad = PADDED_OUTPUT_DIM - d_out
            w = jnp.pad(w, ((0, 0), (0, pad)))
            b = jnp.pad(b, ((0, 0), (0, pad)))
        params.append(w.astype(jnp.bfloat16))   # bf16 weights (halve HBM/VMEM)
        params.append(b)                        # f32 bias
        if i < len(dims) - 2:                   # LayerNorm after hidden linears
            params.append(jnp.ones((1, d_out), jnp.float32))
            params.append(jnp.zeros((1, d_out), jnp.float32))
    return tuple(params)


@functools.partial(jax.jit, static_argnames=("max_batch_tile",))
def forward_model(x, params, max_batch_tile=256):
    """Run the fused MLP. Returns (spectrum (B,250), metrics (B,8))."""
    batch = x.shape[0]
    padded_b = _round_up(batch, 8)
    if padded_b > max_batch_tile:
        tb = max_batch_tile                     # 256 works for v6e/v7x (128 also fine on v5e)
        padded_b = _round_up(padded_b, tb)
    else:
        tb = padded_b
    x_pad = jnp.pad(x.astype(jnp.float32), ((0, padded_b - batch), (0, 0)))

    x_spec = pl.BlockSpec((tb, INPUT_PARAM_DIM), lambda i: (i, 0))
    # Weights / biases / LN params: full-array blocks, constant index -> stay
    # resident in VMEM across the batch grid (no re-DMA per step).
    param_specs = [pl.BlockSpec(p.shape, lambda i: (0, 0)) for p in params]
    out_spec = pl.BlockSpec((tb, PADDED_OUTPUT_DIM), lambda i: (i, 0))

    out = pl.pallas_call(
        forward_model_kernel,
        out_shape=jax.ShapeDtypeStruct((padded_b, PADDED_OUTPUT_DIM), jnp.float32),
        grid=(padded_b // tb,),
        in_specs=[x_spec] + param_specs,
        out_specs=out_spec,
        compiler_params=pltpu.CompilerParams(
            dimension_semantics=("parallel",),   # megacore sharding on v7x
            vmem_limit_bytes=32 << 20,           # ~3 MB weights + small activations
        ),
    )(x_pad, *params)

    predicted_spectrum = out[:batch, :OUTPUT_SPECTRUM_DIM]
    predicted_metrics = out[:batch, OUTPUT_SPECTRUM_DIM:TOTAL_OUTPUT_DIM]
    return predicted_spectrum, predicted_metrics


def _ln_leaky_ref(y, gamma, beta):
    mean = jnp.mean(y, axis=-1, keepdims=True)
    var = jnp.mean((y - mean) ** 2, axis=-1, keepdims=True)
    yn = (y - mean) / jnp.sqrt(var + LN_EPS) * gamma + beta
    return jnp.where(yn > 0, yn, LEAKY_SLOPE * yn)


def _reference(x, params):
    """Pure-JAX reference with the same dtypes (bf16 matmul inputs, f32 accum)."""
    (w1, b1, g1, be1,
     w2, b2, g2, be2,
     w3, b3, g3, be3,
     w4, b4, g4, be4,
     w5, b5, g5, be5,
     w6, b6) = params
    h = x.astype(jnp.float32) @ w1.astype(jnp.float32) + b1
    h = _ln_leaky_ref(h, g1, be1)
    for (w, b, g, be) in ((w2, b2, g2, be2), (w3, b3, g3, be3),
                          (w4, b4, g4, be4), (w5, b5, g5, be5)):
        y = jnp.dot(h.astype(jnp.bfloat16), w,
                    preferred_element_type=jnp.float32) + b
        h = _ln_leaky_ref(y, g, be)
    out = jnp.dot(h.astype(jnp.bfloat16), w6,
                  preferred_element_type=jnp.float32) + b6
    return (out[:, :OUTPUT_SPECTRUM_DIM],
            out[:, OUTPUT_SPECTRUM_DIM:TOTAL_OUTPUT_DIM])


if __name__ == "__main__":
    key = jax.random.PRNGKey(0)
    k_params, k_x = jax.random.split(key)

    params = init_params(k_params)

    batch = 2
    x = jax.random.uniform(k_x, (batch, INPUT_PARAM_DIM), jnp.float32, 0.0, 1.0)

    spectrum, metrics = forward_model(x, params)
    spectrum = jax.block_until_ready(spectrum)
    metrics = jax.block_until_ready(metrics)

    assert spectrum.shape == (batch, OUTPUT_SPECTRUM_DIM), spectrum.shape
    assert metrics.shape == (batch, OUTPUT_METRICS_DIM), metrics.shape

    ref_spec, ref_metr = _reference(x, params)
    assert jnp.allclose(spectrum, ref_spec, atol=5e-3, rtol=5e-3)
    assert jnp.allclose(metrics, ref_metr, atol=5e-3, rtol=5e-3)

    print("KERNEL_OK")
</pallas_src>

<mosaic_0001>
module attributes {stable_mosaic.version = 11 : i64} {
  func.func @forward_model_kernel(%arg0: i32, %arg1: memref<8x4xf32, #tpu.memory_space<vmem>>, %arg2: memref<4x256xbf16, #tpu.memory_space<vmem>>, %arg3: memref<1x256xf32, #tpu.memory_space<vmem>>, %arg4: memref<1x256xf32, #tpu.memory_space<vmem>>, %arg5: memref<1x256xf32, #tpu.memory_space<vmem>>, %arg6: memref<256x512xbf16, #tpu.memory_space<vmem>>, %arg7: memref<1x512xf32, #tpu.memory_space<vmem>>, %arg8: memref<1x512xf32, #tpu.memory_space<vmem>>, %arg9: memref<1x512xf32, #tpu.memory_space<vmem>>, %arg10: memref<512x1024xbf16, #tpu.memory_space<vmem>>, %arg11: memref<1x1024xf32, #tpu.memory_space<vmem>>, %arg12: memref<1x1024xf32, #tpu.memory_space<vmem>>, %arg13: memref<1x1024xf32, #tpu.memory_space<vmem>>, %arg14: memref<1024x512xbf16, #tpu.memory_space<vmem>>, %arg15: memref<1x512xf32, #tpu.memory_space<vmem>>, %arg16: memref<1x512xf32, #tpu.memory_space<vmem>>, %arg17: memref<1x512xf32, #tpu.memory_space<vmem>>, %arg18: memref<512x256xbf16, #tpu.memory_space<vmem>>, %arg19: memref<1x256xf32, #tpu.memory_space<vmem>>, %arg20: memref<1x256xf32, #tpu.memory_space<vmem>>, %arg21: memref<1x256xf32, #tpu.memory_space<vmem>>, %arg22: memref<256x384xbf16, #tpu.memory_space<vmem>>, %arg23: memref<1x384xf32, #tpu.memory_space<vmem>>, %arg24: memref<8x384xf32, #tpu.memory_space<vmem>>) attributes {dimension_semantics = [#tpu.dimension_semantics<parallel>], iteration_bounds = array<i64: 1>, scalar_prefetch = 0 : i64, scratch_operands = 0 : i64, tpu.core_type = #tpu.core_type<tc>, window_params = [{transform_indices = @transform_0, window_bounds = array<i64: 8, 4>}, {pipeline_mode = #tpu.pipeline_mode<synchronous>, transform_indices = @transform_1, window_bounds = array<i64: 4, 256>}, {pipeline_mode = #tpu.pipeline_mode<synchronous>, transform_indices = @transform_2, window_bounds = array<i64: 1, 256>}, {pipeline_mode = #tpu.pipeline_mode<synchronous>, transform_indices = @transform_3, window_bounds = array<i64: 1, 256>}, {pipeline_mode = #tpu.pipeline_mode<synchronous>, transform_indices = @transform_4, window_bounds = array<i64: 1, 256>}, {pipeline_mode = #tpu.pipeline_mode<synchronous>, transform_indices = @transform_5, window_bounds = array<i64: 256, 512>}, {pipeline_mode = #tpu.pipeline_mode<synchronous>, transform_indices = @transform_6, window_bounds = array<i64: 1, 512>}, {pipeline_mode = #tpu.pipeline_mode<synchronous>, transform_indices = @transform_7, window_bounds = array<i64: 1, 512>}, {pipeline_mode = #tpu.pipeline_mode<synchronous>, transform_indices = @transform_8, window_bounds = array<i64: 1, 512>}, {pipeline_mode = #tpu.pipeline_mode<synchronous>, transform_indices = @transform_9, window_bounds = array<i64: 512, 1024>}, {pipeline_mode = #tpu.pipeline_mode<synchronous>, transform_indices = @transform_10, window_bounds = array<i64: 1, 1024>}, {pipeline_mode = #tpu.pipeline_mode<synchronous>, transform_indices = @transform_11, window_bounds = array<i64: 1, 1024>}, {pipeline_mode = #tpu.pipeline_mode<synchronous>, transform_indices = @transform_12, window_bounds = array<i64: 1, 1024>}, {pipeline_mode = #tpu.pipeline_mode<synchronous>, transform_indices = @transform_13, window_bounds = array<i64: 1024, 512>}, {pipeline_mode = #tpu.pipeline_mode<synchronous>, transform_indices = @transform_14, window_bounds = array<i64: 1, 512>}, {pipeline_mode = #tpu.pipeline_mode<synchronous>, transform_indices = @transform_15, window_bounds = array<i64: 1, 512>}, {pipeline_mode = #tpu.pipeline_mode<synchronous>, transform_indices = @transform_16, window_bounds = array<i64: 1, 512>}, {pipeline_mode = #tpu.pipeline_mode<synchronous>, transform_indices = @transform_17, window_bounds = array<i64: 512, 256>}, {pipeline_mode = #tpu.pipeline_mode<synchronous>, transform_indices = @transform_18, window_bounds = array<i64: 1, 256>}, {pipeline_mode = #tpu.pipeline_mode<synchronous>, transform_indices = @transform_19, window_bounds = array<i64: 1, 256>}, {pipeline_mode = #tpu.pipeline_mode<synchronous>, transform_indices = @transform_20, window_bounds = array<i64: 1, 256>}, {pipeline_mode = #tpu.pipeline_mode<synchronous>, transform_indices = @transform_21, window_bounds = array<i64: 256, 384>}, {pipeline_mode = #tpu.pipeline_mode<synchronous>, transform_indices = @transform_22, window_bounds = array<i64: 1, 384>}, {transform_indices = @transform_23, window_bounds = array<i64: 8, 384>}]} {
    %c0 = arith.constant 0 : index
    %c0_0 = arith.constant 0 : index
    %0 = vector.load %arg1[%c0, %c0_0] : memref<8x4xf32, #tpu.memory_space<vmem>>, vector<8x4xf32>
    %c0_1 = arith.constant 0 : index
    %c0_2 = arith.constant 0 : index
    %1 = vector.load %arg2[%c0_1, %c0_2] : memref<4x256xbf16, #tpu.memory_space<vmem>>, vector<4x256xbf16>
    %2 = arith.extf %1 : vector<4x256xbf16> to vector<4x256xf32>
    %c0_3 = arith.constant 0 : index
    %c0_4 = arith.constant 0 : index
    %3 = vector.load %arg3[%c0_3, %c0_4] : memref<1x256xf32, #tpu.memory_space<vmem>>, vector<1x256xf32>
    %4 = vector.extract_strided_slice %0 {offsets = [0, 0], sizes = [8, 1], strides = [1, 1]} : vector<8x4xf32> to vector<8x1xf32>
    %5 = vector.extract_strided_slice %2 {offsets = [0, 0], sizes = [1, 256], strides = [1, 1]} : vector<4x256xf32> to vector<1x256xf32>
    %6 = vector.broadcast %4 : vector<8x1xf32> to vector<8x256xf32>
    %7 = vector.broadcast %5 : vector<1x256xf32> to vector<8x256xf32>
    %8 = arith.mulf %6, %7 : vector<8x256xf32>
    %9 = vector.broadcast %3 : vector<1x256xf32> to vector<8x256xf32>
    %10 = arith.addf %9, %8 : vector<8x256xf32>
    %11 = vector.extract_strided_slice %0 {offsets = [0, 1], sizes = [8, 1], strides = [1, 1]} : vector<8x4xf32> to vector<8x1xf32>
    %12 = vector.extract_strided_slice %2 {offsets = [1, 0], sizes = [1, 256], strides = [1, 1]} : vector<4x256xf32> to vector<1x256xf32>
    %13 = vector.broadcast %11 : vector<8x1xf32> to vector<8x256xf32>
    %14 = vector.broadcast %12 : vector<1x256xf32> to vector<8x256xf32>
    %15 = arith.mulf %13, %14 : vector<8x256xf32>
    %16 = arith.addf %10, %15 : vector<8x256xf32>
    %17 = vector.extract_strided_slice %0 {offsets = [0, 2], sizes = [8, 1], strides = [1, 1]} : vector<8x4xf32> to vector<8x1xf32>
    %18 = vector.extract_strided_slice %2 {offsets = [2, 0], sizes = [1, 256], strides = [1, 1]} : vector<4x256xf32> to vector<1x256xf32>
    %19 = vector.broadcast %17 : vector<8x1xf32> to vector<8x256xf32>
    %20 = vector.broadcast %18 : vector<1x256xf32> to vector<8x256xf32>
    %21 = arith.mulf %19, %20 : vector<8x256xf32>
    %22 = arith.addf %16, %21 : vector<8x256xf32>
    %23 = vector.extract_strided_slice %0 {offsets = [0, 3], sizes = [8, 1], strides = [1, 1]} : vector<8x4xf32> to vector<8x1xf32>
    %24 = vector.extract_strided_slice %2 {offsets = [3, 0], sizes = [1, 256], strides = [1, 1]} : vector<4x256xf32> to vector<1x256xf32>
    %25 = vector.broadcast %23 : vector<8x1xf32> to vector<8x256xf32>
    %26 = vector.broadcast %24 : vector<1x256xf32> to vector<8x256xf32>
    %27 = arith.mulf %25, %26 : vector<8x256xf32>
    %28 = arith.addf %22, %27 : vector<8x256xf32>
    %c0_5 = arith.constant 0 : index
    %c0_6 = arith.constant 0 : index
    %29 = vector.load %arg4[%c0_5, %c0_6] : memref<1x256xf32, #tpu.memory_space<vmem>>, vector<1x256xf32>
    %c0_7 = arith.constant 0 : index
    %c0_8 = arith.constant 0 : index
    %30 = vector.load %arg5[%c0_7, %c0_8] : memref<1x256xf32, #tpu.memory_space<vmem>>, vector<1x256xf32>
    %cst = arith.constant dense<0.000000e+00> : vector<8xf32>
    %31 = vector.multi_reduction <add>, %28, %cst [1] : vector<8x256xf32> to vector<8xf32>
    %32 = vector.shape_cast %31 : vector<8xf32> to vector<8x1xf32>
    %cst_9 = arith.constant 3.906250e-03 : f32
    %33 = vector.broadcast %cst_9 : f32 to vector<8x1xf32>
    %34 = arith.mulf %32, %33 : vector<8x1xf32>
    %35 = arith.mulf %28, %28 : vector<8x256xf32>
    %cst_10 = arith.constant dense<0.000000e+00> : vector<8xf32>
    %36 = vector.multi_reduction <add>, %35, %cst_10 [1] : vector<8x256xf32> to vector<8xf32>
    %37 = vector.shape_cast %36 : vector<8xf32> to vector<8x1xf32>
    %cst_11 = arith.constant 3.906250e-03 : f32
    %38 = vector.broadcast %cst_11 : f32 to vector<8x1xf32>
    %39 = arith.mulf %37, %38 : vector<8x1xf32>
    %40 = arith.mulf %34, %34 : vector<8x1xf32>
    %41 = arith.subf %39, %40 : vector<8x1xf32>
    %cst_12 = arith.constant 0.000000e+00 : f32
    %42 = vector.broadcast %cst_12 : f32 to vector<8x1xf32>
    %43 = arith.maximumf %41, %42 : vector<8x1xf32>
    %cst_13 = arith.constant 9.99999974E-6 : f32
    %44 = vector.broadcast %cst_13 : f32 to vector<8x1xf32>
    %45 = arith.addf %43, %44 : vector<8x1xf32>
    %46 = math.rsqrt %45 : vector<8x1xf32>
    %47 = vector.broadcast %29 : vector<1x256xf32> to vector<8x256xf32>
    %48 = vector.broadcast %46 : vector<8x1xf32> to vector<8x256xf32>
    %49 = arith.mulf %47, %48 : vector<8x256xf32>
    %50 = vector.broadcast %34 : vector<8x1xf32> to vector<8x256xf32>
    %51 = arith.subf %28, %50 : vector<8x256xf32>
    %52 = arith.mulf %51, %49 : vector<8x256xf32>
    %53 = vector.broadcast %30 : vector<1x256xf32> to vector<8x256xf32>
    %54 = arith.addf %52, %53 : vector<8x256xf32>
    %cst_14 = arith.constant 2.000000e-01 : f32
    %55 = vector.broadcast %cst_14 : f32 to vector<8x256xf32>
    %56 = arith.mulf %55, %54 : vector<8x256xf32>
    %57 = arith.maximumf %54, %56 : vector<8x256xf32>
    %58 = arith.truncf %57 : vector<8x256xf32> to vector<8x256xbf16>
    %c0_15 = arith.constant 0 : index
    %c0_16 = arith.constant 0 : index
    %59 = vector.load %arg6[%c0_15, %c0_16] : memref<256x512xbf16, #tpu.memory_space<vmem>>, vector<256x512xbf16>
    %cst_17 = arith.constant dense<0.000000e+00> : vector<8x512xf32>
    %60 = tpu.matmul %58, %59, %cst_17 {dimension_numbers = #tpu.dot_dimension_numbers<[1], [0], [0], [1], [0, 0, 1, 1], [], []>} : vector<8x256xbf16>, vector<256x512xbf16>, vector<8x512xf32> -> vector<8x512xf32>
    %c0_18 = arith.constant 0 : index
    %c0_19 = arith.constant 0 : index
    %61 = vector.load %arg7[%c0_18, %c0_19] : memref<1x512xf32, #tpu.memory_space<vmem>>, vector<1x512xf32>
    %62 = vector.broadcast %61 : vector<1x512xf32> to vector<8x512xf32>
    %63 = arith.addf %60, %62 : vector<8x512xf32>
    %c0_20 = arith.constant 0 : index
    %c0_21 = arith.constant 0 : index
    %64 = vector.load %arg8[%c0_20, %c0_21] : memref<1x512xf32, #tpu.memory_space<vmem>>, vector<1x512xf32>
    %c0_22 = arith.constant 0 : index
    %c0_23 = arith.constant 0 : index
    %65 = vector.load %arg9[%c0_22, %c0_23] : memref<1x512xf32, #tpu.memory_space<vmem>>, vector<1x512xf32>
    %cst_24 = arith.constant dense<0.000000e+00> : vector<8xf32>
    %66 = vector.multi_reduction <add>, %63, %cst_24 [1] : vector<8x512xf32> to vector<8xf32>
    %67 = vector.shape_cast %66 : vector<8xf32> to vector<8x1xf32>
    %cst_25 = arith.constant 0.001953125 : f32
    %68 = vector.broadcast %cst_25 : f32 to vector<8x1xf32>
    %69 = arith.mulf %67, %68 : vector<8x1xf32>
    %70 = arith.mulf %63, %63 : vector<8x512xf32>
    %cst_26 = arith.constant dense<0.000000e+00> : vector<8xf32>
    %71 = vector.multi_reduction <add>, %70, %cst_26 [1] : vector<8x512xf32> to vector<8xf32>
    %72 = vector.shape_cast %71 : vector<8xf32> to vector<8x1xf32>
    %cst_27 = arith.constant 0.001953125 : f32
    %73 = vector.broadcast %cst_27 : f32 to vector<8x1xf32>
    %74 = arith.mulf %72, %73 : vector<8x1xf32>
    %75 = arith.mulf %69, %69 : vector<8x1xf32>
    %76 = arith.subf %74, %75 : vector<8x1xf32>
    %cst_28 = arith.constant 0.000000e+00 : f32
    %77 = vector.broadcast %cst_28 : f32 to vector<8x1xf32>
    %78 = arith.maximumf %76, %77 : vector<8x1xf32>
    %cst_29 = arith.constant 9.99999974E-6 : f32
    %79 = vector.broadcast %cst_29 : f32 to vector<8x1xf32>
    %80 = arith.addf %78, %79 : vector<8x1xf32>
    %81 = math.rsqrt %80 : vector<8x1xf32>
    %82 = vector.broadcast %64 : vector<1x512xf32> to vector<8x512xf32>
    %83 = vector.broadcast %81 : vector<8x1xf32> to vector<8x512xf32>
    %84 = arith.mulf %82, %83 : vector<8x512xf32>
    %85 = vector.broadcast %69 : vector<8x1xf32> to vector<8x512xf32>
    %86 = arith.subf %63, %85 : vector<8x512xf32>
    %87 = arith.mulf %86, %84 : vector<8x512xf32>
    %88 = vector.broadcast %65 : vector<1x512xf32> to vector<8x512xf32>
    %89 = arith.addf %87, %88 : vector<8x512xf32>
    %cst_30 = arith.constant 2.000000e-01 : f32
    %90 = vector.broadcast %cst_30 : f32 to vector<8x512xf32>
    %91 = arith.mulf %90, %89 : vector<8x512xf32>
    %92 = arith.maximumf %89, %91 : vector<8x512xf32>
    %93 = arith.truncf %92 : vector<8x512xf32> to vector<8x512xbf16>
    %c0_31 = arith.constant 0 : index
    %c0_32 = arith.constant 0 : index
    %94 = vector.load %arg10[%c0_31, %c0_32] : memref<512x1024xbf16, #tpu.memory_space<vmem>>, vector<512x1024xbf16>
    %cst_33 = arith.constant dense<0.000000e+00> : vector<8x1024xf32>
    %95 = tpu.matmul %93, %94, %cst_33 {dimension_numbers = #tpu.dot_dimension_numbers<[1], [0], [0], [1], [0, 0, 1, 1], [], []>} : vector<8x512xbf16>, vector<512x1024xbf16>, vector<8x1024xf32> -> vector<8x1024xf32>
    %c0_34 = arith.constant 0 : index
    %c0_35 = arith.constant 0 : index
    %96 = vector.load %arg11[%c0_34, %c0_35] : memref<1x1024xf32, #tpu.memory_space<vmem>>, vector<1x1024xf32>
    %97 = vector.broadcast %96 : vector<1x1024xf32> to vector<8x1024xf32>
    %98 = arith.addf %95, %97 : vector<8x1024xf32>
    %c0_36 = arith.constant 0 : index
    %c0_37 = arith.constant 0 : index
    %99 = vector.load %arg12[%c0_36, %c0_37] : memref<1x1024xf32, #tpu.memory_space<vmem>>, vector<1x1024xf32>
    %c0_38 = arith.constant 0 : index
    %c0_39 = arith.constant 0 : index
    %100 = vector.load %arg13[%c0_38, %c0_39] : memref<1x1024xf32, #tpu.memory_space<vmem>>, vector<1x1024xf32>
    %cst_40 = arith.constant dense<0.000000e+00> : vector<8xf32>
    %101 = vector.multi_reduction <add>, %98, %cst_40 [1] : vector<8x1024xf32> to vector<8xf32>
    %102 = vector.shape_cast %101 : vector<8xf32> to vector<8x1xf32>
    %cst_41 = arith.constant 9.765625E-4 : f32
    %103 = vector.broadcast %cst_41 : f32 to vector<8x1xf32>
    %104 = arith.mulf %102, %103 : vector<8x1xf32>
    %105 = arith.mulf %98, %98 : vector<8x1024xf32>
    %cst_42 = arith.constant dense<0.000000e+00> : vector<8xf32>
    %106 = vector.multi_reduction <add>, %105, %cst_42 [1] : vector<8x1024xf32> to vector<8xf32>
    %107 = vector.shape_cast %106 : vector<8xf32> to vector<8x1xf32>
    %cst_43 = arith.constant 9.765625E-4 : f32
    %108 = vector.broadcast %cst_43 : f32 to vector<8x1xf32>
    %109 = arith.mulf %107, %108 : vector<8x1xf32>
    %110 = arith.mulf %104, %104 : vector<8x1xf32>
    %111 = arith.subf %109, %110 : vector<8x1xf32>
    %cst_44 = arith.constant 0.000000e+00 : f32
    %112 = vector.broadcast %cst_44 : f32 to vector<8x1xf32>
    %113 = arith.maximumf %111, %112 : vector<8x1xf32>
    %cst_45 = arith.constant 9.99999974E-6 : f32
    %114 = vector.broadcast %cst_45 : f32 to vector<8x1xf32>
    %115 = arith.addf %113, %114 : vector<8x1xf32>
    %116 = math.rsqrt %115 : vector<8x1xf32>
    %117 = vector.broadcast %99 : vector<1x1024xf32> to vector<8x1024xf32>
    %118 = vector.broadcast %116 : vector<8x1xf32> to vector<8x1024xf32>
    %119 = arith.mulf %117, %118 : vector<8x1024xf32>
    %120 = vector.broadcast %104 : vector<8x1xf32> to vector<8x1024xf32>
    %121 = arith.subf %98, %120 : vector<8x1024xf32>
    %122 = arith.mulf %121, %119 : vector<8x1024xf32>
    %123 = vector.broadcast %100 : vector<1x1024xf32> to vector<8x1024xf32>
    %124 = arith.addf %122, %123 : vector<8x1024xf32>
    %cst_46 = arith.constant 2.000000e-01 : f32
    %125 = vector.broadcast %cst_46 : f32 to vector<8x1024xf32>
    %126 = arith.mulf %125, %124 : vector<8x1024xf32>
    %127 = arith.maximumf %124, %126 : vector<8x1024xf32>
    %128 = arith.truncf %127 : vector<8x1024xf32> to vector<8x1024xbf16>
    %c0_47 = arith.constant 0 : index
    %c0_48 = arith.constant 0 : index
    %129 = vector.load %arg14[%c0_47, %c0_48] : memref<1024x512xbf16, #tpu.memory_space<vmem>>, vector<1024x512xbf16>
    %cst_49 = arith.constant dense<0.000000e+00> : vector<8x512xf32>
    %130 = tpu.matmul %128, %129, %cst_49 {dimension_numbers = #tpu.dot_dimension_numbers<[1], [0], [0], [1], [0, 0, 1, 1], [], []>} : vector<8x1024xbf16>, vector<1024x512xbf16>, vector<8x512xf32> -> vector<8x512xf32>
    %c0_50 = arith.constant 0 : index
    %c0_51 = arith.constant 0 : index
    %131 = vector.load %arg15[%c0_50, %c0_51] : memref<1x512xf32, #tpu.memory_space<vmem>>, vector<1x512xf32>
    %132 = vector.broadcast %131 : vector<1x512xf32> to vector<8x512xf32>
    %133 = arith.addf %130, %132 : vector<8x512xf32>
    %c0_52 = arith.constant 0 : index
    %c0_53 = arith.constant 0 : index
    %134 = vector.load %arg16[%c0_52, %c0_53] : memref<1x512xf32, #tpu.memory_space<vmem>>, vector<1x512xf32>
    %c0_54 = arith.constant 0 : index
    %c0_55 = arith.constant 0 : index
    %135 = vector.load %arg17[%c0_54, %c0_55] : memref<1x512xf32, #tpu.memory_space<vmem>>, vector<1x512xf32>
    %cst_56 = arith.constant dense<0.000000e+00> : vector<8xf32>
    %136 = vector.multi_reduction <add>, %133, %cst_56 [1] : vector<8x512xf32> to vector<8xf32>
    %137 = vector.shape_cast %136 : vector<8xf32> to vector<8x1xf32>
    %cst_57 = arith.constant 0.001953125 : f32
    %138 = vector.broadcast %cst_57 : f32 to vector<8x1xf32>
    %139 = arith.mulf %137, %138 : vector<8x1xf32>
    %140 = arith.mulf %133, %133 : vector<8x512xf32>
    %cst_58 = arith.constant dense<0.000000e+00> : vector<8xf32>
    %141 = vector.multi_reduction <add>, %140, %cst_58 [1] : vector<8x512xf32> to vector<8xf32>
    %142 = vector.shape_cast %141 : vector<8xf32> to vector<8x1xf32>
    %cst_59 = arith.constant 0.001953125 : f32
    %143 = vector.broadcast %cst_59 : f32 to vector<8x1xf32>
    %144 = arith.mulf %142, %143 : vector<8x1xf32>
    %145 = arith.mulf %139, %139 : vector<8x1xf32>
    %146 = arith.subf %144, %145 : vector<8x1xf32>
    %cst_60 = arith.constant 0.000000e+00 : f32
    %147 = vector.broadcast %cst_60 : f32 to vector<8x1xf32>
    %148 = arith.maximumf %146, %147 : vector<8x1xf32>
    %cst_61 = arith.constant 9.99999974E-6 : f32
    %149 = vector.broadcast %cst_61 : f32 to vector<8x1xf32>
    %150 = arith.addf %148, %149 : vector<8x1xf32>
    %151 = math.rsqrt %150 : vector<8x1xf32>
    %152 = vector.broadcast %134 : vector<1x512xf32> to vector<8x512xf32>
    %153 = vector.broadcast %151 : vector<8x1xf32> to vector<8x512xf32>
    %154 = arith.mulf %152, %153 : vector<8x512xf32>
    %155 = vector.broadcast %139 : vector<8x1xf32> to vector<8x512xf32>
    %156 = arith.subf %133, %155 : vector<8x512xf32>
    %157 = arith.mulf %156, %154 : vector<8x512xf32>
    %158 = vector.broadcast %135 : vector<1x512xf32> to vector<8x512xf32>
    %159 = arith.addf %157, %158 : vector<8x512xf32>
    %cst_62 = arith.constant 2.000000e-01 : f32
    %160 = vector.broadcast %cst_62 : f32 to vector<8x512xf32>
    %161 = arith.mulf %160, %159 : vector<8x512xf32>
    %162 = arith.maximumf %159, %161 : vector<8x512xf32>
    %163 = arith.truncf %162 : vector<8x512xf32> to vector<8x512xbf16>
    %c0_63 = arith.constant 0 : index
    %c0_64 = arith.constant 0 : index
    %164 = vector.load %arg18[%c0_63, %c0_64] : memref<512x256xbf16, #tpu.memory_space<vmem>>, vector<512x256xbf16>
    %cst_65 = arith.constant dense<0.000000e+00> : vector<8x256xf32>
    %165 = tpu.matmul %163, %164, %cst_65 {dimension_numbers = #tpu.dot_dimension_numbers<[1], [0], [0], [1], [0, 0, 1, 1], [], []>} : vector<8x512xbf16>, vector<512x256xbf16>, vector<8x256xf32> -> vector<8x256xf32>
    %c0_66 = arith.constant 0 : index
    %c0_67 = arith.constant 0 : index
    %166 = vector.load %arg19[%c0_66, %c0_67] : memref<1x256xf32, #tpu.memory_space<vmem>>, vector<1x256xf32>
    %167 = vector.broadcast %166 : vector<1x256xf32> to vector<8x256xf32>
    %168 = arith.addf %165, %167 : vector<8x256xf32>
    %c0_68 = arith.constant 0 : index
    %c0_69 = arith.constant 0 : index
    %169 = vector.load %arg20[%c0_68, %c0_69] : memref<1x256xf32, #tpu.memory_space<vmem>>, vector<1x256xf32>
    %c0_70 = arith.constant 0 : index
    %c0_71 = arith.constant 0 : index
    %170 = vector.load %arg21[%c0_70, %c0_71] : memref<1x256xf32, #tpu.memory_space<vmem>>, vector<1x256xf32>
    %cst_72 = arith.constant dense<0.000000e+00> : vector<8xf32>
    %171 = vector.multi_reduction <add>, %168, %cst_72 [1] : vector<8x256xf32> to vector<8xf32>
    %172 = vector.shape_cast %171 : vector<8xf32> to vector<8x1xf32>
    %cst_73 = arith.constant 3.906250e-03 : f32
    %173 = vector.broadcast %cst_73 : f32 to vector<8x1xf32>
    %174 = arith.mulf %172, %173 : vector<8x1xf32>
    %175 = arith.mulf %168, %168 : vector<8x256xf32>
    %cst_74 = arith.constant dense<0.000000e+00> : vector<8xf32>
    %176 = vector.multi_reduction <add>, %175, %cst_74 [1] : vector<8x256xf32> to vector<8xf32>
    %177 = vector.shape_cast %176 : vector<8xf32> to vector<8x1xf32>
    %cst_75 = arith.constant 3.906250e-03 : f32
    %178 = vector.broadcast %cst_75 : f32 to vector<8x1xf32>
    %179 = arith.mulf %177, %178 : vector<8x1xf32>
    %180 = arith.mulf %174, %174 : vector<8x1xf32>
    %181 = arith.subf %179, %180 : vector<8x1xf32>
    %cst_76 = arith.constant 0.000000e+00 : f32
    %182 = vector.broadcast %cst_76 : f32 to vector<8x1xf32>
    %183 = arith.maximumf %181, %182 : vector<8x1xf32>
    %cst_77 = arith.constant 9.99999974E-6 : f32
    %184 = vector.broadcast %cst_77 : f32 to vector<8x1xf32>
    %185 = arith.addf %183, %184 : vector<8x1xf32>
    %186 = math.rsqrt %185 : vector<8x1xf32>
    %187 = vector.broadcast %169 : vector<1x256xf32> to vector<8x256xf32>
    %188 = vector.broadcast %186 : vector<8x1xf32> to vector<8x256xf32>
    %189 = arith.mulf %187, %188 : vector<8x256xf32>
    %190 = vector.broadcast %174 : vector<8x1xf32> to vector<8x256xf32>
    %191 = arith.subf %168, %190 : vector<8x256xf32>
    %192 = arith.mulf %191, %189 : vector<8x256xf32>
    %193 = vector.broadcast %170 : vector<1x256xf32> to vector<8x256xf32>
    %194 = arith.addf %192, %193 : vector<8x256xf32>
    %cst_78 = arith.constant 2.000000e-01 : f32
    %195 = vector.broadcast %cst_78 : f32 to vector<8x256xf32>
    %196 = arith.mulf %195, %194 : vector<8x256xf32>
    %197 = arith.maximumf %194, %196 : vector<8x256xf32>
    %198 = arith.truncf %197 : vector<8x256xf32> to vector<8x256xbf16>
    %c0_79 = arith.constant 0 : index
    %c0_80 = arith.constant 0 : index
    %199 = vector.load %arg22[%c0_79, %c0_80] : memref<256x384xbf16, #tpu.memory_space<vmem>>, vector<256x384xbf16>
    %cst_81 = arith.constant dense<0.000000e+00> : vector<8x384xf32>
    %200 = tpu.matmul %198, %199, %cst_81 {dimension_numbers = #tpu.dot_dimension_numbers<[1], [0], [0], [1], [0, 0, 1, 1], [], []>} : vector<8x256xbf16>, vector<256x384xbf16>, vector<8x384xf32> -> vector<8x384xf32>
    %c0_82 = arith.constant 0 : index
    %c0_83 = arith.constant 0 : index
    %201 = vector.load %arg23[%c0_82, %c0_83] : memref<1x384xf32, #tpu.memory_space<vmem>>, vector<1x384xf32>
    %202 = vector.broadcast %201 : vector<1x384xf32> to vector<8x384xf32>
    %203 = arith.addf %200, %202 : vector<8x384xf32>
    %c0_84 = arith.constant 0 : index
    %c0_85 = arith.constant 0 : index
    %204 = vector.load %arg24[%c0_84, %c0_85] : memref<8x384xf32, #tpu.memory_space<vmem>>, vector<8x384xf32>
    tpu.vector_store %arg24[%c0_84, %c0_85], %203 {strides = array<i32>} : memref<8x384xf32, #tpu.memory_space<vmem>>, vector<8x384xf32>,
    return
  }
  func.func @transform_0(%arg0: i32) -> (i32, i32) {
    %c0_i32 = arith.constant 0 : i32
    %c0_i32_0 = arith.constant 0 : i32
    return %arg0, %c0_i32 : i32, i32
  }
  func.func @transform_1(%arg0: i32) -> (i32, i32) {
    %c0_i32 = arith.constant 0 : i32
    %c0_i32_0 = arith.constant 0 : i32
    %c0_i32_1 = arith.constant 0 : i32
    return %c0_i32, %c0_i32_0 : i32, i32
  }
  func.func @transform_2(%arg0: i32) -> (i32, i32) {
    %c0_i32 = arith.constant 0 : i32
    %c0_i32_0 = arith.constant 0 : i32
    %c0_i32_1 = arith.constant 0 : i32
    return %c0_i32, %c0_i32_0 : i32, i32
  }
  func.func @transform_3(%arg0: i32) -> (i32, i32) {
    %c0_i32 = arith.constant 0 : i32
    %c0_i32_0 = arith.constant 0 : i32
    %c0_i32_1 = arith.constant 0 : i32
    return %c0_i32, %c0_i32_0 : i32, i32
  }
  func.func @transform_4(%arg0: i32) -> (i32, i32) {
    %c0_i32 = arith.constant 0 : i32
    %c0_i32_0 = arith.constant 0 : i32
    %c0_i32_1 = arith.constant 0 : i32
    return %c0_i32, %c0_i32_0 : i32, i32
  }
  func.func @transform_5(%arg0: i32) -> (i32, i32) {
    %c0_i32 = arith.constant 0 : i32
    %c0_i32_0 = arith.constant 0 : i32
    %c0_i32_1 = arith.constant 0 : i32
    return %c0_i32, %c0_i32_0 : i32, i32
  }
  func.func @transform_6(%arg0: i32) -> (i32, i32) {
    %c0_i32 = arith.constant 0 : i32
    %c0_i32_0 = arith.constant 0 : i32
    %c0_i32_1 = arith.constant 0 : i32
    return %c0_i32, %c0_i32_0 : i32, i32
  }
  func.func @transform_7(%arg0: i32) -> (i32, i32) {
    %c0_i32 = arith.constant 0 : i32
    %c0_i32_0 = arith.constant 0 : i32
    %c0_i32_1 = arith.constant 0 : i32
    return %c0_i32, %c0_i32_0 : i32, i32
  }
  func.func @transform_8(%arg0: i32) -> (i32, i32) {
    %c0_i32 = arith.constant 0 : i32
    %c0_i32_0 = arith.constant 0 : i32
    %c0_i32_1 = arith.constant 0 : i32
    return %c0_i32, %c0_i32_0 : i32, i32
  }
  func.func @transform_9(%arg0: i32) -> (i32, i32) {
    %c0_i32 = arith.constant 0 : i32
    %c0_i32_0 = arith.constant 0 : i32
    %c0_i32_1 = arith.constant 0 : i32
    return %c0_i32, %c0_i32_0 : i32, i32
  }
  func.func @transform_10(%arg0: i32) -> (i32, i32) {
    %c0_i32 = arith.constant 0 : i32
    %c0_i32_0 = arith.constant 0 : i32
    %c0_i32_1 = arith.constant 0 : i32
    return %c0_i32, %c0_i32_0 : i32, i32
  }
  func.func @transform_11(%arg0: i32) -> (i32, i32) {
    %c0_i32 = arith.constant 0 : i32
    %c0_i32_0 = arith.constant 0 : i32
    %c0_i32_1 = arith.constant 0 : i32
    return %c0_i32, %c0_i32_0 : i32, i32
  }
  func.func @transform_12(%arg0: i32) -> (i32, i32) {
    %c0_i32 = arith.constant 0 : i32
    %c0_i32_0 = arith.constant 0 : i32
    %c0_i32_1 = arith.constant 0 : i32
    return %c0_i32, %c0_i32_0 : i32, i32
  }
  func.func @transform_13(%arg0: i32) -> (i32, i32) {
    %c0_i32 = arith.constant 0 : i32
    %c0_i32_0 = arith.constant 0 : i32
    %c0_i32_1 = arith.constant 0 : i32
    return %c0_i32, %c0_i32_0 : i32, i32
  }
  func.func @transform_14(%arg0: i32) -> (i32, i32) {
    %c0_i32 = arith.constant 0 : i32
    %c0_i32_0 = arith.constant 0 : i32
    %c0_i32_1 = arith.constant 0 : i32
    return %c0_i32, %c0_i32_0 : i32, i32
  }
  func.func @transform_15(%arg0: i32) -> (i32, i32) {
    %c0_i32 = arith.constant 0 : i32
    %c0_i32_0 = arith.constant 0 : i32
    %c0_i32_1 = arith.constant 0 : i32
    return %c0_i32, %c0_i32_0 : i32, i32
  }
  func.func @transform_16(%arg0: i32) -> (i32, i32) {
    %c0_i32 = arith.constant 0 : i32
    %c0_i32_0 = arith.constant 0 : i32
    %c0_i32_1 = arith.constant 0 : i32
    return %c0_i32, %c0_i32_0 : i32, i32
  }
  func.func @transform_17(%arg0: i32) -> (i32, i32) {
    %c0_i32 = arith.constant 0 : i32
    %c0_i32_0 = arith.constant 0 : i32
    %c0_i32_1 = arith.constant 0 : i32
    return %c0_i32, %c0_i32_0 : i32, i32
  }
  func.func @transform_18(%arg0: i32) -> (i32, i32) {
    %c0_i32 = arith.constant 0 : i32
    %c0_i32_0 = arith.constant 0 : i32
    %c0_i32_1 = arith.constant 0 : i32
    return %c0_i32, %c0_i32_0 : i32, i32
  }
  func.func @transform_19(%arg0: i32) -> (i32, i32) {
    %c0_i32 = arith.constant 0 : i32
    %c0_i32_0 = arith.constant 0 : i32
    %c0_i32_1 = arith.constant 0 : i32
    return %c0_i32, %c0_i32_0 : i32, i32
  }
  func.func @transform_20(%arg0: i32) -> (i32, i32) {
    %c0_i32 = arith.constant 0 : i32
    %c0_i32_0 = arith.constant 0 : i32
    %c0_i32_1 = arith.constant 0 : i32
    return %c0_i32, %c0_i32_0 : i32, i32
  }
  func.func @transform_21(%arg0: i32) -> (i32, i32) {
    %c0_i32 = arith.constant 0 : i32
    %c0_i32_0 = arith.constant 0 : i32
    %c0_i32_1 = arith.constant 0 : i32
    return %c0_i32, %c0_i32_0 : i32, i32
  }
  func.func @transform_22(%arg0: i32) -> (i32, i32) {
    %c0_i32 = arith.constant 0 : i32
    %c0_i32_0 = arith.constant 0 : i32
    %c0_i32_1 = arith.constant 0 : i32
    return %c0_i32, %c0_i32_0 : i32, i32
  }
  func.func @transform_23(%arg0: i32) -> (i32, i32) {
    %c0_i32 = arith.constant 0 : i32
    %c0_i32_0 = arith.constant 0 : i32
    return %arg0, %c0_i32 : i32, i32
  }
}

</mosaic_0001>

<bundles_post_ra>
// kernel: forward_model.1
= control target key start
LH: loop header
LB: loop body
LE: loop exit
PB: predicated region body
PF: predicated region fallthrough
CT: control target
= control target key end

     0   :  { %s8216_s0 = inlined_call_operand.vmem [shape: f32[8,4], index: 0, kind: input, shape index: {}]   ;;  %s8217_s1 = inlined_call_operand.hbm [shape: bf16[4,256], index: 1, kind: input, shape index: {}]   ;;  %s8218_s2 = inlined_call_operand.hbm [shape: f32[1,256], index: 2, kind: input, shape index: {}]   ;;  %s8219_s3 = inlined_call_operand.hbm [shape: f32[1,256], index: 3, kind: input, shape index: {}]   ;;  %s8220_s4 = inlined_call_operand.hbm [shape: f32[1,256], index: 4, kind: input, shape index: {}]   ;;  %s8221_s5 = inlined_call_operand.hbm [shape: bf16[256,512], index: 5, kind: input, shape index: {}]   ;;  %s8222_s6 = inlined_call_operand.vmem [shape: f32[1,512], index: 6, kind: input, shape index: {}]   ;;  %s8223_s7 = inlined_call_operand.vmem [shape: f32[1,512], index: 7, kind: input, shape index: {}]   ;;  %s8224_s8 = inlined_call_operand.vmem [shape: f32[1,512], index: 8, kind: input, shape index: {}]   ;;  %s8225_s9 = inlined_call_operand.hbm [shape: bf16[512,1024], index: 9, kind: input, shape index: {}]   ;;  %s8226_s10 = inlined_call_operand.vmem [shape: f32[1,1024], index: 10, kind: input, shape index: {}]   ;;  %s8227_s11 = inlined_call_operand.vmem [shape: f32[1,1024], index: 11, kind: input, shape index: {}]   ;;  %s8228_s12 = inlined_call_operand.vmem [shape: f32[1,1024], index: 12, kind: input, shape index: {}]   ;;  %s8229_s13 = inlined_call_operand.hbm [shape: bf16[1024,512], index: 13, kind: input, shape index: {}]   ;;  %s8230_s14 = inlined_call_operand.vmem [shape: f32[1,512], index: 14, kind: input, shape index: {}]   ;;  %s8231_s15 = inlined_call_operand.vmem [shape: f32[1,512], index: 15, kind: input, shape index: {}]   ;;  %s8232_s16 = inlined_call_operand.vmem [shape: f32[1,512], index: 16, kind: input, shape index: {}]   ;;  %s8233_s17 = inlined_call_operand.hbm [shape: bf16[512,256], index: 17, kind: input, shape index: {}]   ;;  %s8234_s18 = inlined_call_operand.vmem [shape: f32[1,256], index: 18, kind: input, shape index: {}]   ;;  %s8235_s19 = inlined_call_operand.vmem [shape: f32[1,256], index: 19, kind: input, shape index: {}]   ;;  %s8236_s20 = inlined_call_operand.vmem [shape: f32[1,256], index: 20, kind: input, shape index: {}]   ;;  %s8237_s21 = inlined_call_operand.hbm [shape: bf16[256,384], index: 21, kind: input, shape index: {}]   ;;  %s8238_s22 = inlined_call_operand.vmem [shape: f32[1,384], index: 22, kind: input, shape index: {}]   ;;  %s8239_s23 = inlined_call_operand.vmem [shape: f32[8,384], index: 23, kind: output, shape index: {}]  }
   0x1   :  { %8246 = sst [smem:[#allocation21_spill]] %s8216_s0 }
   0x2   :  { %8247 = sst [smem:[#allocation22_spill]] %s8217_s1 }
   0x3   :  { %8248 = sst [smem:[#allocation23_spill]] %s8218_s2 }
   0x4   :  { %8249 = sst [smem:[#allocation24_spill]] %s8219_s3 }
   0x5   :  { %8250 = sst [smem:[#allocation25_spill]] %s8220_s4 }
   0x6   :  { %8251 = sst [smem:[#allocation26_spill]] %s8221_s5 }
   0x7   :  { %8252 = sst [smem:[#allocation27_spill]] %s8222_s6 }
   0x8   :  { %8253 = sst [smem:[#allocation28_spill]] %s8223_s7 }
   0x9   :  { %8254 = sst [smem:[#allocation29_spill]] %s8239_s23 }
   0xa   :  { %28 = vsyncpa [#allocation3], 0 }
   0xb   :  { %29 = vsyncpa [#allocation5], 0 }
   0xc   :  { %30 = vsyncpa [#allocation8], 0 }
   0xd   :  { %31 = vsyncpa [#allocation11], 0 }
   0xe   :  { %32 = vsyncpa [#allocation14], 0  ;;  %s7615_s4 = smov [#allocation4]   ;;  %s7616_s24 = smov [#allocation7]  }
   0xf   :  { %s51_s30 = sshll.u32 %s7615_s4, 4  ;;  %s71_s25 = sshll.u32 %s7616_s24, 4  ;;  %s52_s30 = int_to_ptr.vmem [resolvable:$true] %s51_s30  ;;  %s72_s25 = int_to_ptr.vmem [resolvable:$true] %s71_s25 }
  0x10   :  { %s8255_s26 = sld [smem:[#allocation23_spill]] }
  0x16   :  { %s7407_s2 = scalar_lea.hbm %s8255_s26, 32 }
  0x17   :  { %p7408_p0 = scmp.ne.s32.totalorder %s8255_s26, %s7407_s2  ;;  %p7411_p1 = scmp.lt.u32.totalorder %s7407_s2, %s8255_s26 }
  0x19   :  { %p7413_p2 = pnand %p7411_p1, %p7408_p0 }
  0x1b   :  { %7416 = shalt.err (!%p7413_p2)
}
  0x1c   :  { %s7417_s29 = scalar_lea.vmem %s52_s30, 32  ;;  %p7422_p4 = scmp.lt.s32.totalorder %s52_s30, %s52_s30 }
  0x1d   :  { %p7418_p3 = scmp.ne.s32.totalorder %s52_s30, %s7417_s29  ;;  %p7423_p5 = scmp.lt.s32.totalorder %s7417_s29, %s7417_s29 }
  0x1f   :  { %p7424_p6 = por %p7423_p5, %p7422_p4 }
  0x21   :  { %p7425_p7 = pnand %p7424_p6, %p7418_p3 }
  0x23   :  { %7428 = shalt.err (!%p7425_p7)
}
  0x24   :  { %54 = dma.hbm_to_vmem [thread:$0]  %s8255_s26, 32, %s52_s30, [#allocation5]  }
  0x25   :  { %s8256_s5 = sld [smem:[#allocation25_spill]] }
  0x2b   :  { %s7429_s1 = scalar_lea.hbm %s8256_s5, 32 }
  0x2c   :  { %p7430_p8 = scmp.ne.s32.totalorder %s8256_s5, %s7429_s1  ;;  %p7433_p9 = scmp.lt.u32.totalorder %s7429_s1, %s8256_s5 }
  0x2e   :  { %p7435_p10 = pnand %p7433_p9, %p7430_p8 }
  0x30   :  { %7438 = shalt.err (!%p7435_p10)
}
  0x31   :  { %s7439_s28 = scalar_lea.vmem %s72_s25, 32  ;;  %p7444_p12 = scmp.lt.s32.totalorder %s72_s25, %s72_s25 }
  0x32   :  { %p7440_p11 = scmp.ne.s32.totalorder %s72_s25, %s7439_s28  ;;  %p7445_p13 = scmp.lt.s32.totalorder %s7439_s28, %s7439_s28 }
  0x34   :  { %p7446_p0 = por %p7445_p13, %p7444_p12 }
  0x36   :  { %p7447_p1 = pnand %p7446_p0, %p7440_p11 }
  0x38   :  { %7450 = shalt.err (!%p7447_p1)
}
  0x39   :  { %74 = dma.hbm_to_vmem [thread:$0]  %s8256_s5, 32, %s72_s25, [#allocation8]  }
  0x3a   :  { %s7617_s29 = smov [#allocation10]   ;;  %s7451_s24 = scalar_lea.hbm %s8225_s9, 32768 }
  0x3b   :  { %s98_s3 = sshll.u32 %s7617_s29, 4  ;;  %p7452_p2 = scmp.ne.s32.totalorder %s8225_s9, %s7451_s24  ;;  %s99_s3 = int_to_ptr.vmem [resolvable:$true] %s98_s3 }
  0x3c   :  { %p7455_p3 = scmp.lt.u32.totalorder %s7451_s24, %s8225_s9 }
  0x3e   :  { %p7457_p4 = pnand %p7455_p3, %p7452_p2 }
  0x40   :  { %7460 = shalt.err (!%p7457_p4)
}
  0x41   :  { %s7461_s7 = scalar_lea.vmem %s99_s3, 32768  ;;  %p7466_p6 = scmp.lt.s32.totalorder %s99_s3, %s99_s3 }
  0x42   :  { %p7462_p5 = scmp.ne.s32.totalorder %s99_s3, %s7461_s7  ;;  %p7467_p7 = scmp.lt.s32.totalorder %s7461_s7, %s7461_s7 }
  0x44   :  { %p7468_p8 = por %p7467_p7, %p7466_p6 }
  0x46   :  { %p7469_p9 = pnand %p7468_p8, %p7462_p5 }
  0x48   :  { %7472 = shalt.err (!%p7469_p9)
}
  0x49   :  { %s7618_s25 = smov 512   ;;  %s7619_s5 = smov 32  }
  0x4a   :  { %104 = dma.hbm_to_vmem [thread:$0]  %s8225_s9, 32768, %s99_s3, [#allocation11], %s7618_s25, %s7618_s25, %s7619_s5  }
  0x4b   :  { %s7620_s26 = smov [#allocation13]   ;;  %s7473_s24 = scalar_lea.hbm %s8233_s17, 8192 }
  0x4c   :  { %s134_s29 = sshll.u32 %s7620_s26, 4  ;;  %p7474_p10 = scmp.ne.s32.totalorder %s8233_s17, %s7473_s24  ;;  %s135_s29 = int_to_ptr.vmem [resolvable:$true] %s134_s29 }
  0x4d   :  { %p7477_p11 = scmp.lt.u32.totalorder %s7473_s24, %s8233_s17 }
  0x4f   :  { %p7479_p12 = pnand %p7477_p11, %p7474_p10 }
  0x51   :  { %7482 = shalt.err (!%p7479_p12)
}
  0x52   :  { %s7483_s7 = scalar_lea.vmem %s135_s29, 8192  ;;  %p7488_p0 = scmp.lt.s32.totalorder %s135_s29, %s135_s29 }
  0x53   :  { %p7484_p13 = scmp.ne.s32.totalorder %s135_s29, %s7483_s7  ;;  %p7489_p1 = scmp.lt.s32.totalorder %s7483_s7, %s7483_s7 }
  0x55   :  { %p7490_p2 = por %p7489_p1, %p7488_p0 }
  0x57   :  { %p7491_p3 = pnand %p7490_p2, %p7484_p13 }
  0x59   :  { %7494 = shalt.err (!%p7491_p3)
}
  0x5a   :  { %s7621_s9 = smov 128   ;;  %s7622_s3 = smov 8  }
  0x5b   :  { %140 = dma.hbm_to_vmem [thread:$0]  %s8233_s17, 8192, %s135_s29, [#allocation14], %s7621_s9, %s7621_s9, %s7622_s3  }
  0x5c   :  { %s7623_s28 = smov [#allocation2]   ;;  %s7624_s26 = smov [#allocation6]  }
  0x5d   :  { %s41_s30 = sshll.u32 %s7623_s28, 4  ;;  %s61_s0 = sshll.u32 %s7624_s26, 4  ;;  %s42_s30 = int_to_ptr.vmem [resolvable:$true] %s41_s30  ;;  %s62_s0 = int_to_ptr.vmem [resolvable:$true] %s61_s0 }
  0x5e   :  { %s8257_s1 = sld [smem:[#allocation22_spill]] }
  0x64   :  { %s7495_s6 = scalar_lea.hbm %s8257_s1, 64 }
  0x65   :  { %p7496_p4 = scmp.ne.s32.totalorder %s8257_s1, %s7495_s6  ;;  %p7499_p5 = scmp.lt.u32.totalorder %s7495_s6, %s8257_s1 }
  0x67   :  { %p7501_p6 = pnand %p7499_p5, %p7496_p4 }
  0x69   :  { %7504 = shalt.err (!%p7501_p6)
}
  0x6a   :  { %s7505_s17 = scalar_lea.vmem %s42_s30, 64  ;;  %p7510_p8 = scmp.lt.s32.totalorder %s42_s30, %s42_s30 }
  0x6b   :  { %p7506_p7 = scmp.ne.s32.totalorder %s42_s30, %s7505_s17  ;;  %p7511_p9 = scmp.lt.s32.totalorder %s7505_s17, %s7505_s17 }
  0x6d   :  { %p7512_p10 = por %p7511_p9, %p7510_p8 }
  0x6f   :  { %p7513_p11 = pnand %p7512_p10, %p7506_p7 }
  0x71   :  { %7516 = shalt.err (!%p7513_p11)
}
  0x72   :  { %44 = dma.hbm_to_vmem [thread:$0]  %s8257_s1, 64, %s42_s30, [#allocation3]  }
  0x73   :  { %s8258_s5 = sld [smem:[#allocation24_spill]] }
  0x79   :  { %s7517_s28 = scalar_lea.hbm %s8258_s5, 32 }
  0x7a   :  { %p7518_p12 = scmp.ne.s32.totalorder %s8258_s5, %s7517_s28  ;;  %p7521_p13 = scmp.lt.u32.totalorder %s7517_s28, %s8258_s5 }
  0x7c   :  { %p7523_p0 = pnand %p7521_p13, %p7518_p12 }
  0x7e   :  { %7526 = shalt.err (!%p7523_p0)
}
  0x7f   :  { %s7527_s6 = scalar_lea.vmem %s62_s0, 32  ;;  %p7532_p2 = scmp.lt.s32.totalorder %s62_s0, %s62_s0 }
  0x80   :  { %p7528_p1 = scmp.ne.s32.totalorder %s62_s0, %s7527_s6  ;;  %p7533_p3 = scmp.lt.s32.totalorder %s7527_s6, %s7527_s6 }
  0x82   :  { %p7534_p4 = por %p7533_p3, %p7532_p2 }
  0x84   :  { %p7535_p5 = pnand %p7534_p4, %p7528_p1 }
  0x86   :  { %7538 = shalt.err (!%p7535_p5)
}
  0x87   :  { %64 = dma.hbm_to_vmem [thread:$0]  %s8258_s5, 32, %s62_s0, [#allocation5]  }
  0x88   :  { %s7625_s27 = smov [#allocation9]   ;;  %s8259_s29 = sld [smem:[#allocation26_spill]] }
  0x89   :  { %s80_s2 = sshll.u32 %s7625_s27, 4  ;;  %s81_s2 = int_to_ptr.vmem [resolvable:$true] %s80_s2 }
  0x8e   :  { %s7539_s9 = scalar_lea.hbm %s8259_s29, 8192 }
  0x8f   :  { %p7540_p6 = scmp.ne.s32.totalorder %s8259_s29, %s7539_s9  ;;  %p7543_p7 = scmp.lt.u32.totalorder %s7539_s9, %s8259_s29 }
  0x91   :  { %p7545_p8 = pnand %p7543_p7, %p7540_p6 }
  0x93   :  { %7548 = shalt.err (!%p7545_p8)
}
  0x94   :  { %s7549_s23 = scalar_lea.vmem %s81_s2, 8192  ;;  %p7554_p10 = scmp.lt.s32.totalorder %s81_s2, %s81_s2 }
  0x95   :  { %p7550_p9 = scmp.ne.s32.totalorder %s81_s2, %s7549_s23  ;;  %p7555_p11 = scmp.lt.s32.totalorder %s7549_s23, %s7549_s23 }
  0x97   :  { %p7556_p12 = por %p7555_p11, %p7554_p10 }
  0x99   :  { %p7557_p13 = pnand %p7556_p12, %p7550_p9 }
  0x9b   :  { %7560 = shalt.err (!%p7557_p13)
}
  0x9c   :  { %s7626_s0 = smov 256   ;;  %s7627_s5 = smov 16  }
  0x9d   :  { %86 = dma.hbm_to_vmem [thread:$0]  %s8259_s29, 8192, %s81_s2, [#allocation8], %s7626_s0, %s7626_s0, %s7627_s5  }
  0x9e   :  { %s7628_s6 = smov [#allocation12]   ;;  %s7629_s1 = smov [#allocation15]  }
  0x9f   :  { %s116_s30 = sshll.u32 %s7628_s6, 4  ;;  %s152_s27 = sshll.u32 %s7629_s1, 4  ;;  %s117_s30 = int_to_ptr.vmem [resolvable:$true] %s116_s30  ;;  %s153_s27 = int_to_ptr.vmem [resolvable:$true] %s152_s27 }
  0xa0   :  { %s7561_s9 = scalar_lea.hbm %s8229_s13, 32768 }
  0xa1   :  { %p7562_p0 = scmp.ne.s32.totalorder %s8229_s13, %s7561_s9  ;;  %p7565_p1 = scmp.lt.u32.totalorder %s7561_s9, %s8229_s13 }
  0xa3   :  { %p7567_p2 = pnand %p7565_p1, %p7562_p0 }
  0xa5   :  { %7570 = shalt.err (!%p7567_p2)
}
  0xa6   :  { %s7571_s2 = scalar_lea.vmem %s117_s30, 32768  ;;  %p7576_p4 = scmp.lt.s32.totalorder %s117_s30, %s117_s30 }
  0xa7   :  { %p7572_p3 = scmp.ne.s32.totalorder %s117_s30, %s7571_s2  ;;  %p7577_p5 = scmp.lt.s32.totalorder %s7571_s2, %s7571_s2 }
  0xa9   :  { %p7578_p6 = por %p7577_p5, %p7576_p4 }
  0xab   :  { %p7579_p7 = pnand %p7578_p6, %p7572_p3 }
  0xad   :  { %7582 = shalt.err (!%p7579_p7)
}
  0xae   :  { %122 = dma.hbm_to_vmem [thread:$0]  %s8229_s13, 32768, %s117_s30, [#allocation11], %s7626_s0, %s7626_s0, %s7627_s5  }
  0xaf   :  { %s7583_s6 = scalar_lea.hbm %s8237_s21, 6144 }
  0xb0   :  { %p7584_p8 = scmp.ne.s32.totalorder %s8237_s21, %s7583_s6  ;;  %p7587_p9 = scmp.lt.u32.totalorder %s7583_s6, %s8237_s21 }
  0xb2   :  { %p7589_p10 = pnand %p7587_p9, %p7584_p8 }
  0xb4   :  { %7592 = shalt.err (!%p7589_p10)
}
  0xb5   :  { %s7593_s3 = scalar_lea.vmem %s153_s27, 6144  ;;  %p7598_p12 = scmp.lt.s32.totalorder %s153_s27, %s153_s27 }
  0xb6   :  { %p7594_p11 = scmp.ne.s32.totalorder %s153_s27, %s7593_s3  ;;  %p7599_p13 = scmp.lt.s32.totalorder %s7593_s3, %s7593_s3 }
  0xb8   :  { %p7600_p0 = por %p7599_p13, %p7598_p12 }
  0xba   :  { %p7601_p1 = pnand %p7600_p0, %p7594_p11 }
  0xbc   :  { %7604 = shalt.err (!%p7601_p1)
}
  0xbd   :  { %s7630_s13 = smov 192   ;;  %s7631_s0 = smov 12  }
  0xbe   :  { %158 = dma.hbm_to_vmem [thread:$0]  %s8237_s21, 6144, %s153_s27, [#allocation14], %s7630_s13, %s7630_s13, %s7631_s0  }
  0xbf   :  { %7605 = dma.done.wait [#allocation3], 64  }
  0xc0   :  { %7606 = vsyncadd [#allocation3], 4294967232 }
  0xc1   :  { %7607 = dma.done.wait [#allocation5], 64  }
  0xc2   :  { %7608 = vsyncadd [#allocation5], 4294967232 }
  0xc3   :  { %7609 = dma.done.wait [#allocation8], 8224  }
  0xc4   :  { %7610 = vsyncadd [#allocation8], 4294959072 }
  0xc5   :  { %7611 = dma.done.wait [#allocation11], 65536  }
  0xc6   :  { %7612 = vsyncadd [#allocation11], 4294901760 }
  0xc7   :  { %7613 = dma.done.wait [#allocation14], 14336  }
  0xc8   :  { %7614 = vsyncadd [#allocation14], 4294952960  ;;  %v7632_v0 = vmov 0   ;;  %v7633_v1 = vmov 2   ;;  %s8260_s26 = sld [smem:[#allocation21_spill]]  ;;  %v7634_v3 = vmov 1   ;;  %v199_v37 = vlaneseq }
  0xc9   :  { %6752 = vset.pattern.permute.xlu0 %v7632_v0  ;;  %6754 = vset.pattern.permute.xlu1 %v7633_v1  ;;  %v7635_v4 = vmov 3   ;;  %v6757_v5 = vld [vmem:[#allocation9 + $0x4] ss:$16 sps:$4 sm:$0xff]   ;;  %v6759_v6 = vld [vmem:[#allocation9 + $0xc] ss:$16 sps:$4 sm:$0xff]   ;;  %s8261_s2 = sld [smem:[#allocation27_spill]] }
  0xca   :  { %v6761_v7 = vld [vmem:[#allocation9] ss:$16 sps:$4 sm:$0xff]   ;;  %v6762_v8 = vld [vmem:[#allocation9 + $0x8] ss:$16 sps:$4 sm:$0xff]   ;;  %v6763_v9 = vld [vmem:[#allocation9 + $0x24] ss:$16 sps:$4 sm:$0xff]   ;;  %769 = vmatprep.subr.bf16.mxu0 %v6757_v5  ;;  %810 = vmatprep.subr.bf16.mxu1 %v6759_v6 }
  0xcb   :  { %v6765_v10 = vld [vmem:[#allocation9 + $0x2c] ss:$16 sps:$4 sm:$0xff]   ;;  %770 = vmatpush1.bf16.msra.mxu0 %v6761_v7  ;;  %811 = vmatpush1.bf16.msra.mxu1 %v6762_v8  ;;  %v6767_v11 = vld [vmem:[#allocation9 + $0x20] ss:$16 sps:$4 sm:$0xff]   ;;  %v6768_v12 = vld [vmem:[#allocation9 + $0x28] ss:$16 sps:$4 sm:$0xff]  }
  0xcc   :  { %771 = vmatprep.subr.bf16.mxu0 %v6763_v9  ;;  %812 = vmatprep.subr.bf16.mxu1 %v6765_v10  ;;  %v6769_v13 = vld [vmem:[#allocation9 + $0x44] ss:$16 sps:$4 sm:$0xff]   ;;  %v6771_v14 = vld [vmem:[#allocation9 + $0x4c] ss:$16 sps:$4 sm:$0xff]   ;;  %v6773_v15 = vld [vmem:[#allocation9 + $0x40] ss:$16 sps:$4 sm:$0xff]  }
  0xcd   :  { %v6774_v16 = vld [vmem:[#allocation9 + $0x48] ss:$16 sps:$4 sm:$0xff]   ;;  %v6775_v17 = vld [vmem:[#allocation9 + $0x64] ss:$16 sps:$4 sm:$0xff]   ;;  %v6777_v18 = vld [vmem:[#allocation9 + $0x6c] ss:$16 sps:$4 sm:$0xff]  }
  0xce   :  { %v189_v2 = vld [vmem:[%s8260_s26] sm:$0xff]  ;;  %v6779_v19 = vld [vmem:[#allocation9 + $0x60] ss:$16 sps:$4 sm:$0xff]   ;;  %v200_v39 = vshrl.u32 %v199_v37, 7  ;;  %s8262_s4 = sld [smem:[#allocation28_spill]]  ;;  %s8263_s21 = sld [smem:[#allocation29_spill]] }
  0xcf   :  { %195 = vperm.xlu0 %6752, %v189_v2   ;;  %259 = vperm.xlu1 %6754, %v189_v2   ;;  %v6780_v20 = vld [vmem:[#allocation9 + $0x68] ss:$16 sps:$4 sm:$0xff]   ;;  %v6781_v21 = vld [vmem:[#allocation9 + $0x84] ss:$16 sps:$4 sm:$0xff]   ;;  %v6783_v22 = vld [vmem:[#allocation9 + $0x8c] ss:$16 sps:$4 sm:$0xff]  }
  0xd0   :  { %772 = vmatpush1.bf16.msra.mxu0 %v6767_v11  ;;  %813 = vmatpush1.bf16.msra.mxu1 %v6768_v12  ;;  %v6785_v23 = vld [vmem:[#allocation9 + $0x80] ss:$16 sps:$4 sm:$0xff]   ;;  %v6786_v24 = vld [vmem:[#allocation9 + $0x88] ss:$16 sps:$4 sm:$0xff]   ;;  %v6787_v25 = vld [vmem:[#allocation9 + $0xa4] ss:$16 sps:$4 sm:$0xff]  }
  0xd1   :  { %773 = vmatprep.subr.bf16.mxu0 %v6769_v13  ;;  %814 = vmatprep.subr.bf16.mxu1 %v6771_v14  ;;  %v6789_v26 = vld [vmem:[#allocation9 + $0xac] ss:$16 sps:$4 sm:$0xff]   ;;  %v6791_v27 = vld [vmem:[#allocation9 + $0xa0] ss:$16 sps:$4 sm:$0xff]   ;;  %v6792_v28 = vld [vmem:[#allocation9 + $0xa8] ss:$16 sps:$4 sm:$0xff]  }
  0xd2   :  { %v6793_v29 = vld [vmem:[#allocation9 + $0xc4] ss:$16 sps:$4 sm:$0xff]   ;;  %v6795_v30 = vld [vmem:[#allocation9 + $0xcc] ss:$16 sps:$4 sm:$0xff]   ;;  %v6797_v31 = vld [vmem:[#allocation9 + $0xc0] ss:$16 sps:$4 sm:$0xff]  }
  0xd3   :  { %6753 = vset.pattern.permute.xlu0 %v7634_v3  ;;  %6755 = vset.pattern.permute.xlu1 %v7635_v4  ;;  %v6798_v32 = vld [vmem:[#allocation9 + $0xc8] ss:$16 sps:$4 sm:$0xff]   ;;  %v6799_v33 = vld [vmem:[#allocation9 + $0xe4] ss:$16 sps:$4 sm:$0xff]   ;;  %v6801_v34 = vld [vmem:[#allocation9 + $0xec] ss:$16 sps:$4 sm:$0xff]  }
  0xd4   :  { %233 = vperm.xlu0 %6753, %v189_v2   ;;  %285 = vperm.xlu1 %6755, %v189_v2   ;;  %v6803_v35 = vld [vmem:[#allocation9 + $0xe0] ss:$16 sps:$4 sm:$0xff]   ;;  %v6804_v36 = vld [vmem:[#allocation9 + $0xe8] ss:$16 sps:$4 sm:$0xff]   ;;  %v7867_v41 = vsub.s32 0, %v200_v39  ;;  %v7869_v42 = vsub.s32 4, %v200_v39 }
  0xd5   :  { %774 = vmatpush1.bf16.msra.mxu0 %v6773_v15  ;;  %815 = vmatpush1.bf16.msra.mxu1 %v6774_v16  ;;  %v190_v38 = vld [vmem:[#allocation2] sm:$0xf]  ;;  %v7873_v45 = vsub.s32 1, %v200_v39  ;;  %v7875_v46 = vsub.s32 5, %v200_v39  ;;  %v7877_v47 = vsub.s32 2, %v200_v39  ;;  %v7879_v48 = vsub.s32 6, %v200_v39 }
  0xd6   :  { %775 = vmatprep.subr.bf16.mxu0 %v6775_v17  ;;  %816 = vmatprep.subr.bf16.mxu1 %v6777_v18  ;;  %v191_v40 = vunpack.c.l.bf16 %v190_v38  ;;  %v192_v49 = vld [vmem:[#allocation4] sm:$0x3]  ;;  %v7881_v50 = vsub.s32 3, %v200_v39  ;;  %v7883_v51 = vsub.s32 7, %v200_v39  ;;  %v6819_v37 = vld [vmem:[#allocation9 + $0x14c] ss:$16 sps:$4 sm:$0xff]  }
  0xd7   :  { %v223_v62 = vrot.slane %v192_v49, %v7867_v41  ;;  %v227_v63 = vrot.slane %v192_v49, %v7873_v45  ;;  %v6821_v38 = vld [vmem:[#allocation9 + $0x140] ss:$16 sps:$4 sm:$0xff]   ;;  %v6822_v39 = vld [vmem:[#allocation9 + $0x148] ss:$16 sps:$4 sm:$0xff]  }
  0xd8   :  { %6756 = vset.pattern.permute.xlu0 %v7635_v4  ;;  %v202_v43 = vrot.slane %v191_v40, %v7867_v41  ;;  %v206_v44 = vrot.slane %v191_v40, %v7869_v42  ;;  %v239_v54 = vrot.slane %v191_v40, %v7873_v45  ;;  %v243_v55 = vrot.slane %v191_v40, %v7875_v46  ;;  %v6828_v49 = vld [vmem:[#allocation9 + $0x168] ss:$16 sps:$4 sm:$0xff]  }
  0xd9   :  { %776 = vmatpush1.bf16.msra.mxu0 %v6779_v19  ;;  %817 = vmatpush1.bf16.msra.mxu1 %v6780_v20  ;;  %v265_v56 = vrot.slane %v191_v40, %v7877_v47  ;;  %v269_v57 = vrot.slane %v191_v40, %v7879_v48  ;;  %v291_v60 = vrot.slane %v191_v40, %v7881_v50 }
  0xda   :  { %777 = vmatprep.subr.bf16.mxu0 %v6781_v21  ;;  %818 = vmatprep.subr.bf16.mxu1 %v6783_v22  ;;  %v212_v52 = vrot.slane %v202_v43, %v7867_v41  ;;  %v216_v53 = vrot.slane %v206_v44, %v7867_v41  ;;  %v295_v61 = vrot.slane %v191_v40, %v7883_v51  ;;  %v6823_v40 = vld [vmem:[#allocation9 + $0x164] ss:$16 sps:$4 sm:$0xff]   ;;  %v6825_v43 = vld [vmem:[#allocation9 + $0x16c] ss:$16 sps:$4 sm:$0xff]   ;;  %v6827_v44 = vld [vmem:[#allocation9 + $0x160] ss:$16 sps:$4 sm:$0xff]  }
  0xdb   :  { %v249_v2 = vrot.slane %v239_v54, %v7873_v45  ;;  %v253_v3 = vrot.slane %v243_v55, %v7873_v45  ;;  %v275_v4 = vrot.slane %v265_v56, %v7877_v47  ;;  %v279_v5 = vrot.slane %v269_v57, %v7877_v47  ;;  %v6833_v54 = vld [vmem:[#allocation9 + $0x180] ss:$16 sps:$4 sm:$0xff]   ;;  %v6834_v55 = vld [vmem:[#allocation9 + $0x188] ss:$16 sps:$4 sm:$0xff]   ;;  %v6835_v56 = vld [vmem:[#allocation9 + $0x1a4] ss:$16 sps:$4 sm:$0xff]  }
  0xdc   :  { %v301_v6 = vrot.slane %v291_v60, %v7881_v50  ;;  %v305_v7 = vrot.slane %v295_v61, %v7881_v50  ;;  %v6837_v57 = vld [vmem:[#allocation9 + $0x1ac] ss:$16 sps:$4 sm:$0xff]   ;;  %v6841_v60 = vld [vmem:[#allocation9 + $0x1c4] ss:$16 sps:$4 sm:$0xff]  }
  0xdd   :  { %778 = vmatpush1.bf16.msra.mxu0 %v6785_v23  ;;  %819 = vmatpush1.bf16.msra.mxu1 %v6786_v24  ;;  %v6843_v61 = vld [vmem:[#allocation9 + $0x1cc] ss:$16 sps:$4 sm:$0xff]  }
  0xde   :  { %779 = vmatprep.subr.bf16.mxu0 %v6787_v25  ;;  %820 = vmatprep.subr.bf16.mxu1 %v6789_v26 }
  0xe1   :  { %780 = vmatpush1.bf16.msra.mxu0 %v6791_v27  ;;  %821 = vmatpush1.bf16.msra.mxu1 %v6792_v28  ;;  %v6805_v28 = vld [vmem:[#allocation9 + $0x104] ss:$16 sps:$4 sm:$0xff]  }
  0xe2   :  { %781 = vmatprep.subr.bf16.mxu0 %v6793_v29  ;;  %822 = vmatprep.subr.bf16.mxu1 %v6795_v30  ;;  %v6807_v29 = vld [vmem:[#allocation9 + $0x10c] ss:$16 sps:$4 sm:$0xff]   ;;  %v6809_v30 = vld [vmem:[#allocation9 + $0x100] ss:$16 sps:$4 sm:$0xff]  }
  0xe5   :  { %782 = vmatpush1.bf16.msra.mxu0 %v6797_v31  ;;  %823 = vmatpush1.bf16.msra.mxu1 %v6798_v32  ;;  %v6810_v31 = vld [vmem:[#allocation9 + $0x108] ss:$16 sps:$4 sm:$0xff]   ;;  %v6811_v32 = vld [vmem:[#allocation9 + $0x124] ss:$16 sps:$4 sm:$0xff]  }
  0xe6   :  { %783 = vmatprep.subr.bf16.mxu0 %v6799_v33  ;;  %824 = vmatprep.subr.bf16.mxu1 %v6801_v34  ;;  %v6813_v33 = vld [vmem:[#allocation9 + $0x12c] ss:$16 sps:$4 sm:$0xff]   ;;  %v6815_v34 = vld [vmem:[#allocation9 + $0x120] ss:$16 sps:$4 sm:$0xff]  }
  0xe9   :  { %784 = vmatpush1.bf16.msra.mxu0 %v6803_v35  ;;  %825 = vmatpush1.bf16.msra.mxu1 %v6804_v36  ;;  %v6816_v35 = vld [vmem:[#allocation9 + $0x128] ss:$16 sps:$4 sm:$0xff]   ;;  %v6817_v36 = vld [vmem:[#allocation9 + $0x144] ss:$16 sps:$4 sm:$0xff]  }
  0xea   :  { %785 = vmatprep.subr.bf16.mxu0 %v6805_v28  ;;  %826 = vmatprep.subr.bf16.mxu1 %v6807_v29 }
  0xed   :  { %786 = vmatpush1.bf16.msra.mxu0 %v6809_v30  ;;  %827 = vmatpush1.bf16.msra.mxu1 %v6810_v31 }
  0xee   :  { %787 = vmatprep.subr.bf16.mxu0 %v6811_v32  ;;  %828 = vmatprep.subr.bf16.mxu1 %v6813_v33 }
  0xf1   :  { %788 = vmatpush1.bf16.msra.mxu0 %v6815_v34  ;;  %829 = vmatpush1.bf16.msra.mxu1 %v6816_v35  ;;  %v944_v35 = vld [vmem:[#allocation10] sm:$0xff] }
  0xf2   :  { %789 = vmatprep.subr.bf16.mxu0 %v6817_v36  ;;  %830 = vmatprep.subr.bf16.mxu1 %v6819_v37  ;;  %v945_v36 = vld [vmem:[#allocation10 + $0x8] sm:$0xff] }
  0xf5   :  { %790 = vmatpush1.bf16.msra.mxu0 %v6821_v38  ;;  %831 = vmatpush1.bf16.msra.mxu1 %v6822_v39  ;;  %v949_v38 = vld [vmem:[#allocation10 + $0x28] sm:$0xff]  ;;  %v952_v39 = vld [vmem:[#allocation10 + $0x40] sm:$0xff] }
  0xf6   :  { %791 = vmatprep.subr.bf16.mxu0 %v6823_v40  ;;  %832 = vmatprep.subr.bf16.mxu1 %v6825_v43  ;;  %v956_v40 = vld [vmem:[#allocation10 + $0x60] sm:$0xff]  ;;  %v6029_v43 = vcombine.low %v945_v36, %v949_v38 }
  0xf9   :  { %792 = vmatpush1.bf16.msra.mxu0 %v6827_v44  ;;  %833 = vmatpush1.bf16.msra.mxu1 %v6828_v49  ;;  %v6030_v44 = vcombine.high %v945_v36, %v949_v38  ;;  %v6036_v49 = vcombine.high %v952_v39, %v956_v40 }
 0x14e   :  { %v196_v58 = vpop.permute.xlu0 %195  ;;  %v260_v59 = vpop.permute.xlu1 %259 }
 0x14f   :  { %v217_v0 = vmul.f32 %v212_v52, %v196_v58  ;;  %v218_v1 = vmul.f32 %v216_v53, %v196_v58  ;;  %v280_v14 = vmul.f32 %v275_v4, %v260_v59  ;;  %v281_v15 = vmul.f32 %v279_v5, %v260_v59  ;;  %v6829_v52 = vld [vmem:[#allocation9 + $0x184] ss:$16 sps:$4 sm:$0xff]   ;;  %v6831_v53 = vld [vmem:[#allocation9 + $0x18c] ss:$16 sps:$4 sm:$0xff]   ;;  %v6839_v58 = vld [vmem:[#allocation9 + $0x1a0] ss:$16 sps:$4 sm:$0xff]  }
 0x150   :  { %793 = vmatprep.subr.bf16.mxu0 %v6829_v52  ;;  %834 = vmatprep.subr.bf16.mxu1 %v6831_v53  ;;  %v6840_v59 = vld [vmem:[#allocation9 + $0x1a8] ss:$16 sps:$4 sm:$0xff]  }
 0x151   :  { %v230_v10 = vadd.f32 %v223_v62, %v217_v0  ;;  %v231_v11 = vadd.f32 %v227_v63, %v218_v1  ;;  %794 = vmatpush1.bf16.msra.mxu0 %v6833_v54  ;;  %835 = vmatpush1.bf16.msra.mxu1 %v6834_v55  ;;  %v6845_v62 = vld [vmem:[#allocation9 + $0x1c0] ss:$16 sps:$4 sm:$0xff]   ;;  %v6846_v63 = vld [vmem:[#allocation9 + $0x1c8] ss:$16 sps:$4 sm:$0xff]   ;;  %v6847_v0 = vld [vmem:[#allocation9 + $0x1e4] ss:$16 sps:$4 sm:$0xff]  }
 0x152   :  { %795 = vmatprep.subr.bf16.mxu0 %v6835_v56  ;;  %836 = vmatprep.subr.bf16.mxu1 %v6837_v57  ;;  %v6849_v1 = vld [vmem:[#allocation9 + $0x1ec] ss:$16 sps:$4 sm:$0xff]   ;;  %v960_v54 = vld [vmem:[#allocation10 + $0x80] sm:$0xff] }
 0x153   :  { %v234_v8 = vpop.permute.xlu0 %233  ;;  %v286_v9 = vpop.permute.xlu1 %285  ;;  %v953_v52 = vld [vmem:[#allocation10 + $0x48] sm:$0xff]  ;;  %v964_v56 = vld [vmem:[#allocation10 + $0xa0] sm:$0xff] }
 0x154   :  { %v254_v12 = vmul.f32 %v249_v2, %v234_v8  ;;  %v255_v13 = vmul.f32 %v253_v3, %v234_v8  ;;  %v306_v18 = vmul.f32 %v301_v6, %v286_v9  ;;  %v307_v19 = vmul.f32 %v305_v7, %v286_v9  ;;  %v6851_v2 = vld [vmem:[#allocation9 + $0x1e0] ss:$16 sps:$4 sm:$0xff]   ;;  %v6852_v3 = vld [vmem:[#allocation9 + $0x1e8] ss:$16 sps:$4 sm:$0xff]  }
 0x155   :  { %796 = vmatpush1.bf16.msra.mxu0 %v6839_v58  ;;  %837 = vmatpush1.bf16.msra.mxu1 %v6840_v59  ;;  %v957_v53 = vld [vmem:[#allocation10 + $0x68] sm:$0xff]  ;;  %v6035_v59 = vcombine.low %v952_v39, %v956_v40 }
 0x156   :  { %v256_v16 = vadd.f32 %v254_v12, %v230_v10  ;;  %v257_v17 = vadd.f32 %v255_v13, %v231_v11  ;;  %797 = vmatprep.subr.bf16.mxu0 %v6841_v60  ;;  %838 = vmatprep.subr.bf16.mxu1 %v6843_v61  ;;  %v310_v12 = vld [vmem:[#allocation6] sm:$0x3]  ;;  %v311_v13 = vld [vmem:[#allocation7] sm:$0x3]  ;;  %v6038_v55 = vcombine.high %v953_v52, %v957_v53  ;;  %v961_v57 = vld [vmem:[#allocation10 + $0x88] sm:$0xff] }
 0x157   :  { %v965_v58 = vld [vmem:[#allocation10 + $0xa8] sm:$0xff]  ;;  %v6037_v60 = vcombine.low %v953_v52, %v957_v53  ;;  %v6044_v61 = vcombine.high %v960_v54, %v964_v56 }
 0x158   :  { %v282_v20 = vadd.f32 %v280_v14, %v256_v16  ;;  %v283_v21 = vadd.f32 %v281_v15, %v257_v17  ;;  %v331_v14 = vrot.slane %v310_v12, %v7867_v41  ;;  %v335_v15 = vrot.slane %v310_v12, %v7873_v45 }
 0x159   :  { %798 = vmatpush1.bf16.msra.mxu0 %v6845_v62  ;;  %839 = vmatpush1.bf16.msra.mxu1 %v6846_v63  ;;  %v348_v17 = vrot.slane %v311_v13, %v7867_v41  ;;  %v6046_v62 = vcombine.high %v961_v57, %v965_v58  ;;  %v968_v63 = vld [vmem:[#allocation10 + $0xc0] sm:$0xff] }
 0x15a   :  { %v7901_v22 = vadd.f32 %v306_v18, %v282_v20  ;;  %v7903_v23 = vadd.f32 %v307_v19, %v283_v21  ;;  %799 = vmatprep.subr.bf16.mxu0 %v6847_v0  ;;  %840 = vmatprep.subr.bf16.mxu1 %v6849_v1  ;;  %v352_v18 = vrot.slane %v311_v13, %v7873_v45  ;;  %v972_v0 = vld [vmem:[#allocation10 + $0xe0] sm:$0xff]  ;;  %v969_v1 = vld [vmem:[#allocation10 + $0xc8] sm:$0xff] }
 0x15c   :  { %v312_v24 = vadd.f32 %v7903_v23, %v7901_v22  ;;  %v316_v25 = vmul.f32 %v7901_v22, %v7901_v22  ;;  %v317_v26 = vmul.f32 %v7903_v23, %v7903_v23 }
 0x15d   :  { %800 = vmatpush1.bf16.msra.mxu0 %v6851_v2  ;;  %841 = vmatpush1.bf16.msra.mxu1 %v6852_v3  ;;  %v973_v2 = vld [vmem:[#allocation10 + $0xe8] sm:$0xff]  ;;  %v6043_v3 = vcombine.low %v960_v54, %v964_v56 }
 0x15e   :  { %313 = vadd.xlane.f32.xlu1 %v312_v24  ;;  %v318_v27 = vadd.f32 %v317_v26, %v316_v25  ;;  %2604 = vmatprep.subr.bf16.mxu1 %v6030_v44  ;;  %v6053_v12 = vcombine.low %v969_v1, %v973_v2 }
 0x160   :  { %319 = vadd.xlane.f32.xlu0 %v318_v27 }
 0x1eb   :  { %v314_v4 = vpop.xlane.xlu1 %313 }
 0x1ec   :  { %v315_v5 = vmul.f32 0.00390625, %v314_v4  ;;  %v6045_v4 = vcombine.low %v961_v57, %v965_v58 }
 0x1ed   :  { %v320_v6 = vpop.xlane.xlu0 %319 }
 0x1ee   :  { %v321_v7 = vmul.f32 0.00390625, %v320_v6  ;;  %v322_v8 = vmul.f32 %v315_v5, %v315_v5  ;;  %v340_v19 = vsub.f32 %v7901_v22, %v315_v5  ;;  %v341_v20 = vsub.f32 %v7903_v23, %v315_v5  ;;  %v948_v22 = vld [vmem:[#allocation10 + $0x20] sm:$0xff] }
 0x1ef   :  { %v6027_v23 = vcombine.low %v944_v35, %v948_v22  ;;  %v6028_v37 = vcombine.high %v944_v35, %v948_v22  ;;  %v6052_v5 = vcombine.high %v968_v63, %v972_v0  ;;  %v6054_v6 = vcombine.high %v969_v1, %v973_v2  ;;  %v1001_v35 = vld [vmem:[#allocation10 + $0x1c8] sm:$0xff] }
 0x1f0   :  { %v323_v9 = vsub.f32 %v321_v7, %v322_v8  ;;  %v976_v7 = vld [vmem:[#allocation10 + $0x100] sm:$0xff]  ;;  %v1005_v22 = vld [vmem:[#allocation10 + $0x1e8] sm:$0xff] }
 0x1f1   :  { %2522 = vmatprep.subr.bf16.mxu0 %v6028_v37  ;;  %v980_v8 = vld [vmem:[#allocation10 + $0x120] sm:$0xff]  ;;  %v6086_v38 = vcombine.high %v1001_v35, %v1005_v22  ;;  %v6085_v40 = vcombine.low %v1001_v35, %v1005_v22 }
 0x1f2   :  { %v324_v10 = vmax.f32 %v323_v9, 0.0  ;;  %v977_v9 = vld [vmem:[#allocation10 + $0x108] sm:$0xff]  ;;  %v6060_v13 = vcombine.high %v976_v7, %v980_v8 }
 0x1f4   :  { %v325_v11 = vadd.f32 1e-05, %v324_v10  ;;  %v981_v10 = vld [vmem:[#allocation10 + $0x128] sm:$0xff] }
 0x1f6   :  { %7397 = vrsqrt.f32 %v325_v11  ;;  %v6051_v11 = vcombine.low %v968_v63, %v972_v0 }
 0x200   :  { %v7398_v16 = vpop.eup %7397 }
 0x201   :  { %v339_v21 = vmul.f32 %v7398_v16, %v335_v15  ;;  %v338_v24 = vmul.f32 %v7398_v16, %v331_v14  ;;  %v6062_v14 = vcombine.high %v977_v9, %v981_v10  ;;  %v984_v15 = vld [vmem:[#allocation10 + $0x140] sm:$0xff] }
 0x202   :  { %v988_v16 = vld [vmem:[#allocation10 + $0x160] sm:$0xff] }
 0x203   :  { %v343_v25 = vmul.f32 %v341_v20, %v339_v21  ;;  %v342_v26 = vmul.f32 %v340_v19, %v338_v24  ;;  %v6059_v19 = vcombine.low %v976_v7, %v980_v8  ;;  %v6061_v20 = vcombine.low %v977_v9, %v981_v10 }
 0x204   :  { %v6068_v21 = vcombine.high %v984_v15, %v988_v16 }
 0x205   :  { %v356_v27 = vadd.f32 %v352_v18, %v343_v25  ;;  %v355_v28 = vadd.f32 %v348_v17, %v342_v26  ;;  %v985_v17 = vld [vmem:[#allocation10 + $0x148] sm:$0xff]  ;;  %v992_v25 = vld [vmem:[#allocation10 + $0x180] sm:$0xff] }
 0x206   :  { %v989_v18 = vld [vmem:[#allocation10 + $0x168] sm:$0xff]  ;;  %v996_v26 = vld [vmem:[#allocation10 + $0x1a0] sm:$0xff] }
 0x207   :  { %v358_v29 = vmul.f32 0.2, %v356_v27  ;;  %v357_v30 = vmul.f32 0.2, %v355_v28  ;;  %v6070_v24 = vcombine.high %v985_v17, %v989_v18  ;;  %v6075_v36 = vcombine.low %v992_v25, %v996_v26 }
 0x209   :  { %v360_v31 = vmax.f32 %v356_v27, %v358_v29  ;;  %v359_v32 = vmax.f32 %v355_v28, %v357_v30  ;;  %v993_v27 = vld [vmem:[#allocation10 + $0x188] sm:$0xff]  ;;  %v6067_v29 = vcombine.low %v984_v15, %v988_v16  ;;  %v6069_v30 = vcombine.low %v985_v17, %v989_v18 }
 0x20a   :  { %v997_v28 = vld [vmem:[#allocation10 + $0x1a8] sm:$0xff] }
 0x20b   :  { %v362_v33 = vpack.c.bf16 %v360_v31, %v360_v31  ;;  %v361_v34 = vpack.c.bf16 %v359_v32, %v359_v32  ;;  %v6076_v31 = vcombine.high %v992_v25, %v996_v26  ;;  %v6078_v32 = vcombine.high %v993_v27, %v997_v28  ;;  %v1013_v16 = vld [vmem:[#allocation10 + $0x228] sm:$0xff] }
 0x20c   :  { %v1021_v26 = vld [vmem:[#allocation10 + $0x268] sm:$0xff] }
 0x20d   :  { %801 = vmatprep.mubr.bf16.mxu0 %v362_v33  ;;  %842 = vmatprep.mubr.bf16.mxu1 %v362_v33  ;;  %v1000_v33 = vld [vmem:[#allocation10 + $0x1c0] sm:$0xff] }
 0x20e   :  { %802 = vmatmul.mubr.bf16.vlgmr.msra.gmra.mrb[0].mxu0 %v361_v34  ;;  %843 = vmatmul.mubr.bf16.vlgmr.msra.gmra.mrb[0].mxu1 %v361_v34  ;;  %v1004_v34 = vld [vmem:[#allocation10 + $0x1e0] sm:$0xff] }
 0x20f   :  { %2523 = vmatpush1.bf16.msra.mxu0 %v6027_v23  ;;  %2605 = vmatpush1.bf16.msra.mxu1 %v6029_v43  ;;  %v6077_v23 = vcombine.low %v993_v27, %v997_v28  ;;  %v6084_v37 = vcombine.high %v1000_v33, %v1004_v34  ;;  %v6083_v39 = vcombine.low %v1000_v33, %v1004_v34  ;;  %v427_v43 = vld [vmem:[%s8261_s2] sm:$0xf]  ;;  %v1029_v34 = vld [vmem:[#allocation10 + $0x2a8] sm:$0xff] }
 0x210   :  { %2524 = vmatprep.subr.bf16.mxu0 %v6036_v49  ;;  %2606 = vmatprep.subr.bf16.mxu1 %v6038_v55  ;;  %v432_v44 = vrot.slane %v427_v43, %v7867_v41  ;;  %v440_v49 = vrot.slane %v427_v43, %v7877_v47  ;;  %v436_v52 = vrot.slane %v427_v43, %v7873_v45 }
 0x211   :  { %v444_v55 = vrot.slane %v427_v43, %v7881_v50  ;;  %v1037_v43 = vld [vmem:[#allocation10 + $0x2e8] sm:$0xff] }
 0x213   :  { %2525 = vmatpush1.bf16.msra.mxu0 %v6035_v59  ;;  %2607 = vmatpush1.bf16.msra.mxu1 %v6037_v60 }
 0x214   :  { %2526 = vmatprep.subr.bf16.mxu0 %v6044_v61  ;;  %2608 = vmatprep.subr.bf16.mxu1 %v6046_v62 }
 0x217   :  { %2527 = vmatpush1.bf16.msra.mxu0 %v6043_v3  ;;  %2609 = vmatpush1.bf16.msra.mxu1 %v6045_v4 }
 0x218   :  { %2528 = vmatprep.subr.bf16.mxu0 %v6052_v5  ;;  %2610 = vmatprep.subr.bf16.mxu1 %v6054_v6 }
 0x21b   :  { %2529 = vmatpush1.bf16.msra.mxu0 %v6051_v11  ;;  %2611 = vmatpush1.bf16.msra.mxu1 %v6053_v12  ;;  %v1008_v12 = vld [vmem:[#allocation10 + $0x200] sm:$0xff] }
 0x21c   :  { %2530 = vmatprep.subr.bf16.mxu0 %v6060_v13  ;;  %2612 = vmatprep.subr.bf16.mxu1 %v6062_v14  ;;  %v1012_v13 = vld [vmem:[#allocation10 + $0x220] sm:$0xff]  ;;  %v1009_v14 = vld [vmem:[#allocation10 + $0x208] sm:$0xff] }
 0x21d   :  { %v6092_v15 = vcombine.high %v1008_v12, %v1012_v13  ;;  %v6091_v17 = vcombine.low %v1008_v12, %v1012_v13  ;;  %v6093_v18 = vcombine.low %v1009_v14, %v1013_v16 }
 0x21f   :  { %2531 = vmatpush1.bf16.msra.mxu0 %v6059_v19  ;;  %2613 = vmatpush1.bf16.msra.mxu1 %v6061_v20  ;;  %v6094_v19 = vcombine.high %v1009_v14, %v1013_v16  ;;  %v1016_v20 = vld [vmem:[#allocation10 + $0x240] sm:$0xff]  ;;  %v1065_v16 = vld [vmem:[#allocation10 + $0x3c8] sm:$0xff] }
 0x220   :  { %2532 = vmatprep.subr.bf16.mxu0 %v6068_v21  ;;  %2614 = vmatprep.subr.bf16.mxu1 %v6070_v24  ;;  %v1020_v21 = vld [vmem:[#allocation10 + $0x260] sm:$0xff]  ;;  %v1017_v24 = vld [vmem:[#allocation10 + $0x248] sm:$0xff] }
 0x221   :  { %v6100_v25 = vcombine.high %v1016_v20, %v1020_v21  ;;  %v6099_v27 = vcombine.low %v1016_v20, %v1020_v21  ;;  %v6101_v28 = vcombine.low %v1017_v24, %v1021_v26  ;;  %v1064_v14 = vld [vmem:[#allocation10 + $0x3c0] sm:$0xff] }
 0x223   :  { %2533 = vmatpush1.bf16.msra.mxu0 %v6067_v29  ;;  %2615 = vmatpush1.bf16.msra.mxu1 %v6069_v30  ;;  %v6102_v29 = vcombine.high %v1017_v24, %v1021_v26  ;;  %v1024_v30 = vld [vmem:[#allocation10 + $0x280] sm:$0xff] }
 0x224   :  { %2534 = vmatprep.subr.bf16.mxu0 %v6076_v31  ;;  %2616 = vmatprep.subr.bf16.mxu1 %v6078_v32  ;;  %v1028_v31 = vld [vmem:[#allocation10 + $0x2a0] sm:$0xff]  ;;  %v1025_v32 = vld [vmem:[#allocation10 + $0x288] sm:$0xff] }
 0x225   :  { %v6108_v33 = vcombine.high %v1024_v30, %v1028_v31  ;;  %v6107_v35 = vcombine.low %v1024_v30, %v1028_v31  ;;  %v6109_v22 = vcombine.low %v1025_v32, %v1029_v34  ;;  %v7944_v26 = vld [vmem:[#allocation10 + $0x400] sm:$0xff]  ;;  %v7952_v30 = vld [vmem:[#allocation10 + $0x428] sm:$0xff] }
 0x227   :  { %2535 = vmatpush1.bf16.msra.mxu0 %v6075_v36  ;;  %2617 = vmatpush1.bf16.msra.mxu1 %v6077_v23  ;;  %v6110_v36 = vcombine.high %v1025_v32, %v1029_v34  ;;  %v1032_v23 = vld [vmem:[#allocation10 + $0x2c0] sm:$0xff] }
 0x228   :  { %2536 = vmatprep.subr.bf16.mxu0 %v6084_v37  ;;  %2618 = vmatprep.subr.bf16.mxu1 %v6086_v38  ;;  %v1036_v37 = vld [vmem:[#allocation10 + $0x2e0] sm:$0xff]  ;;  %v1033_v38 = vld [vmem:[#allocation10 + $0x2c8] sm:$0xff] }
 0x22b   :  { %2537 = vmatpush1.bf16.msra.mxu0 %v6083_v39  ;;  %2619 = vmatpush1.bf16.msra.mxu1 %v6085_v40  ;;  %v6115_v39 = vcombine.low %v1032_v23, %v1036_v37  ;;  %v6116_v40 = vcombine.high %v1032_v23, %v1036_v37 }
 0x22c   :  { %2538 = vmatprep.subr.bf16.mxu0 %v6092_v15  ;;  %2620 = vmatprep.subr.bf16.mxu1 %v6094_v19  ;;  %v1068_v15 = vld [vmem:[#allocation10 + $0x3e0] sm:$0xff] }
 0x22d   :  { %v6148_v20 = vcombine.high %v1064_v14, %v1068_v15  ;;  %v6147_v24 = vcombine.low %v1064_v14, %v1068_v15 }
 0x22f   :  { %2539 = vmatpush1.bf16.msra.mxu0 %v6091_v17  ;;  %2621 = vmatpush1.bf16.msra.mxu1 %v6093_v18  ;;  %v1069_v17 = vld [vmem:[#allocation10 + $0x3e8] sm:$0xff] }
 0x230   :  { %2540 = vmatprep.subr.bf16.mxu0 %v6100_v25  ;;  %2622 = vmatprep.subr.bf16.mxu1 %v6102_v29  ;;  %v6150_v21 = vcombine.high %v1065_v16, %v1069_v17  ;;  %v6149_v25 = vcombine.low %v1065_v16, %v1069_v17  ;;  %v1080_v17 = vld [vmem:[#allocation10 + $0x440] sm:$0xff] }
 0x233   :  { %2541 = vmatpush1.bf16.msra.mxu0 %v6099_v27  ;;  %2623 = vmatpush1.bf16.msra.mxu1 %v6101_v28  ;;  %v7946_v27 = vld [vmem:[#allocation10 + $0x420] sm:$0xff]  ;;  %v7948_v28 = vld [vmem:[#allocation10 + $0x408] sm:$0xff] }
 0x234   :  { %2542 = vmatprep.subr.bf16.mxu0 %v6108_v33  ;;  %2624 = vmatprep.subr.bf16.mxu1 %v6110_v36  ;;  %v6156_v29 = vcombine.high %v7944_v26, %v7946_v27  ;;  %v6155_v31 = vcombine.low %v7944_v26, %v7946_v27  ;;  %v6157_v32 = vcombine.low %v7948_v28, %v7952_v30 }
 0x235   :  { %v6158_v33 = vcombine.high %v7948_v28, %v7952_v30 }
 0x237   :  { %2543 = vmatpush1.bf16.msra.mxu0 %v6107_v35  ;;  %2625 = vmatpush1.bf16.msra.mxu1 %v6109_v22 }
 0x238   :  { %2544 = vmatprep.subr.bf16.mxu0 %v6116_v40  ;;  %v851_v40 = vld [vmem:[%s8262_s4] sm:$0xf] }
 0x23b   :  { %2545 = vmatpush1.bf16.msra.mxu0 %v6115_v39 }
 0x2e1   :  { %v803_v53 = vpop.f32.mrb[0].mxu0  ;;  %v844_v54 = vpop.f32.mrb[0].mxu1 }
 0x2e2   :  { %v7924_v56 = vadd.f32 %v803_v53, %v432_v44  ;;  %v805_v57 = vpop.f32.mrb[1].mxu0  ;;  %v846_v58 = vpop.f32.mrb[1].mxu1  ;;  %v7926_v59 = vadd.f32 %v844_v54, %v440_v49  ;;  %v1040_v44 = vld [vmem:[#allocation10 + $0x300] sm:$0xff]  ;;  %v6118_v53 = vcombine.high %v1033_v38, %v1037_v43 }
 0x2e3   :  { %v7928_v60 = vadd.f32 %v805_v57, %v436_v52  ;;  %v807_v61 = vpop.f32.mrb[2].mxu0  ;;  %v848_v62 = vpop.f32.mrb[2].mxu1  ;;  %v7936_v4 = vadd.f32 %v846_v58, %v444_v55  ;;  %v1044_v49 = vld [vmem:[#allocation10 + $0x320] sm:$0xff]  ;;  %v6117_v52 = vcombine.low %v1033_v38, %v1037_v43  ;;  %v1041_v55 = vld [vmem:[#allocation10 + $0x308] sm:$0xff]  ;;  %v852_v43 = vld [vmem:[%s8224_s8] sm:$0xf] }
 0x2e4   :  { %v859_v63 = vmul.f32 %v7924_v56, %v7924_v56  ;;  %v808_v0 = vpop.f32.mrb[3].mxu0  ;;  %v849_v1 = vpop.f32.mrb[3].mxu1  ;;  %v861_v5 = vmul.f32 %v7926_v59, %v7926_v59  ;;  %v6124_v54 = vcombine.high %v1040_v44, %v1044_v49  ;;  %v1045_v57 = vld [vmem:[#allocation10 + $0x328] sm:$0xff]  ;;  %v1048_v58 = vld [vmem:[#allocation10 + $0x340] sm:$0xff]  ;;  %2626 = vmatprep.subr.bf16.mxu1 %v6118_v53  ;;  %v886_v53 = vrot.slane %v851_v40, %v7877_v47 }
 0x2e5   :  { %v853_v2 = vadd.f32 %v7928_v60, %v7924_v56  ;;  %v860_v3 = vmul.f32 %v7928_v60, %v7928_v60  ;;  %v862_v9 = vmul.f32 %v7936_v4, %v7936_v4  ;;  %v6126_v61 = vcombine.high %v1041_v55, %v1045_v57  ;;  %v1052_v62 = vld [vmem:[#allocation10 + $0x360] sm:$0xff]  ;;  %v1053_v0 = vld [vmem:[#allocation10 + $0x368] sm:$0xff]  ;;  %2627 = vmatpush1.bf16.msra.mxu1 %v6117_v52 }
 0x2e6   :  { %v6123_v1 = vcombine.low %v1040_v44, %v1044_v49  ;;  %2546 = vmatprep.subr.bf16.mxu0 %v6124_v54  ;;  %v882_v44 = vrot.slane %v851_v40, %v7873_v45  ;;  %v878_v49 = vrot.slane %v851_v40, %v7867_v41  ;;  %v890_v52 = vrot.slane %v851_v40, %v7881_v50  ;;  %v1096_v40 = vld [vmem:[#allocation10 + $0x4c0] sm:$0xff] }
 0x2e7   :  { %v854_v6 = vadd.f32 %v853_v2, %v7926_v59  ;;  %v863_v7 = vadd.f32 %v860_v3, %v859_v63  ;;  %v1049_v63 = vld [vmem:[#allocation10 + $0x348] sm:$0xff]  ;;  %v6125_v2 = vcombine.low %v1041_v55, %v1045_v57  ;;  %v6132_v3 = vcombine.high %v1048_v58, %v1052_v62  ;;  %2628 = vmatprep.subr.bf16.mxu1 %v6126_v61 }
 0x2e8   :  { %2547 = vmatpush1.bf16.msra.mxu0 %v6123_v1  ;;  %v915_v54 = vrot.slane %v852_v43, %v7873_v45  ;;  %v911_v55 = vrot.slane %v852_v43, %v7867_v41  ;;  %v923_v57 = vrot.slane %v852_v43, %v7881_v50 }
 0x2e9   :  { %v855_v8 = vadd.f32 %v854_v6, %v7936_v4  ;;  %v864_v10 = vadd.f32 %v863_v7, %v861_v5  ;;  %v6134_v5 = vcombine.high %v1049_v63, %v1053_v0  ;;  %v1056_v6 = vld [vmem:[#allocation10 + $0x380] sm:$0xff]  ;;  %2629 = vmatpush1.bf16.msra.mxu1 %v6125_v2  ;;  %2548 = vmatprep.subr.bf16.mxu0 %v6132_v3 }
 0x2ea   :  { %v1060_v7 = vld [vmem:[#allocation10 + $0x3a0] sm:$0xff] }
 0x2eb   :  { %856 = vadd.xlane.f32.xlu0 %v855_v8  ;;  %v865_v11 = vadd.f32 %v864_v10, %v862_v9  ;;  %v1057_v8 = vld [vmem:[#allocation10 + $0x388] sm:$0xff]  ;;  %v6131_v10 = vcombine.low %v1048_v58, %v1052_v62  ;;  %v6140_v12 = vcombine.high %v1056_v6, %v1060_v7  ;;  %2630 = vmatprep.subr.bf16.mxu1 %v6134_v5 }
 0x2ec   :  { %v1061_v9 = vld [vmem:[#allocation10 + $0x3a8] sm:$0xff]  ;;  %v6139_v18 = vcombine.low %v1056_v6, %v1060_v7  ;;  %v919_v58 = vrot.slane %v852_v43, %v7877_v47  ;;  %v1100_v43 = vld [vmem:[#allocation10 + $0x4e0] sm:$0xff] }
 0x2ed   :  { %866 = vadd.xlane.f32.xlu1 %v865_v11  ;;  %v6133_v11 = vcombine.low %v1049_v63, %v1053_v0  ;;  %v6142_v13 = vcombine.high %v1057_v8, %v1061_v9  ;;  %2549 = vmatpush1.bf16.msra.mxu0 %v6131_v10  ;;  %v6141_v19 = vcombine.low %v1057_v8, %v1061_v9 }
 0x2ee   :  { %2550 = vmatprep.subr.bf16.mxu0 %v6140_v12  ;;  %v6180_v28 = vcombine.high %v1096_v40, %v1100_v43 }
 0x2ef   :  { %2631 = vmatpush1.bf16.msra.mxu1 %v6133_v11 }
 0x2f0   :  { %2632 = vmatprep.subr.bf16.mxu1 %v6142_v13 }
 0x2f1   :  { %2551 = vmatpush1.bf16.msra.mxu0 %v6139_v18  ;;  %v1084_v18 = vld [vmem:[#allocation10 + $0x460] sm:$0xff] }
 0x2f2   :  { %2552 = vmatprep.subr.bf16.mxu0 %v6148_v20  ;;  %v1085_v20 = vld [vmem:[#allocation10 + $0x468] sm:$0xff] }
 0x2f3   :  { %2633 = vmatpush1.bf16.msra.mxu1 %v6141_v19  ;;  %v1081_v19 = vld [vmem:[#allocation10 + $0x448] sm:$0xff] }
 0x2f4   :  { %2634 = vmatprep.subr.bf16.mxu1 %v6150_v21 }
 0x2f5   :  { %2553 = vmatpush1.bf16.msra.mxu0 %v6147_v24 }
 0x2f6   :  { %2563 = vmatprep.subr.bf16.mxu0 %v6156_v29  ;;  %v6164_v29 = vcombine.high %v1080_v17, %v1084_v18 }
 0x2f7   :  { %2635 = vmatpush1.bf16.msra.mxu1 %v6149_v25  ;;  %v1088_v25 = vld [vmem:[#allocation10 + $0x480] sm:$0xff] }
 0x2f8   :  { %2645 = vmatprep.subr.bf16.mxu1 %v6158_v33  ;;  %v6166_v33 = vcombine.high %v1081_v19, %v1085_v20 }
 0x378   :  { %v857_v34 = vpop.xlane.xlu0 %856 }
 0x379   :  { %v858_v35 = vmul.f32 0.001953125, %v857_v34  ;;  %v1092_v34 = vld [vmem:[#allocation10 + $0x4a0] sm:$0xff] }
 0x37a   :  { %v867_v22 = vpop.xlane.xlu1 %866  ;;  %v6171_v26 = vcombine.low %v1088_v25, %v1092_v34 }
 0x37b   :  { %v868_v36 = vmul.f32 0.001953125, %v867_v22  ;;  %v869_v23 = vmul.f32 %v858_v35, %v858_v35  ;;  %v899_v62 = vsub.f32 %v7924_v56, %v858_v35  ;;  %v900_v63 = vsub.f32 %v7928_v60, %v858_v35  ;;  %v1093_v22 = vld [vmem:[#allocation10 + $0x4a8] sm:$0xff] }
 0x37c   :  { %v901_v0 = vsub.f32 %v7926_v59, %v858_v35  ;;  %v902_v1 = vsub.f32 %v7936_v4, %v858_v35  ;;  %v1089_v35 = vld [vmem:[#allocation10 + $0x488] sm:$0xff] }
 0x37d   :  { %v870_v37 = vsub.f32 %v868_v36, %v869_v23  ;;  %v6163_v23 = vcombine.low %v1080_v17, %v1084_v18  ;;  %v6173_v27 = vcombine.low %v1089_v35, %v1093_v22 }
 0x37f   :  { %v871_v38 = vmax.f32 %v870_v37, 0.0  ;;  %v6165_v37 = vcombine.low %v1081_v19, %v1085_v20  ;;  %v1136_v19 = vld [vmem:[#allocation10 + $0x600] sm:$0xff] }
 0x380   :  { %v1140_v20 = vld [vmem:[#allocation10 + $0x620] sm:$0xff] }
 0x381   :  { %v872_v39 = vadd.f32 1e-05, %v871_v38  ;;  %v6172_v38 = vcombine.high %v1088_v25, %v1092_v34  ;;  %v1137_v25 = vld [vmem:[#allocation10 + $0x608] sm:$0xff] }
 0x383   :  { %7399 = vrsqrt.f32 %v872_v39  ;;  %v6174_v39 = vcombine.high %v1089_v35, %v1093_v22  ;;  %v6220_v35 = vcombine.high %v1136_v19, %v1140_v20 }
 0x38d   :  { %v7400_v61 = vpop.eup %7399 }
 0x38e   :  { %v896_v2 = vmul.f32 %v7400_v61, %v882_v44  ;;  %v895_v3 = vmul.f32 %v7400_v61, %v878_v49  ;;  %v898_v5 = vmul.f32 %v7400_v61, %v890_v52  ;;  %v897_v6 = vmul.f32 %v7400_v61, %v886_v53  ;;  %v1097_v44 = vld [vmem:[#allocation10 + $0x4c8] sm:$0xff]  ;;  %v1112_v61 = vld [vmem:[#allocation10 + $0x540] sm:$0xff] }
 0x38f   :  { %v1101_v49 = vld [vmem:[#allocation10 + $0x4e8] sm:$0xff] }
 0x390   :  { %v904_v7 = vmul.f32 %v900_v63, %v896_v2  ;;  %v903_v8 = vmul.f32 %v899_v62, %v895_v3  ;;  %v906_v9 = vmul.f32 %v902_v1, %v898_v5  ;;  %v905_v10 = vmul.f32 %v901_v0, %v897_v6  ;;  %v1105_v52 = vld [vmem:[#allocation10 + $0x508] sm:$0xff]  ;;  %v1116_v62 = vld [vmem:[#allocation10 + $0x560] sm:$0xff] }
 0x391   :  { %v6182_v30 = vcombine.high %v1097_v44, %v1101_v49  ;;  %v1109_v53 = vld [vmem:[#allocation10 + $0x528] sm:$0xff]  ;;  %v6196_v3 = vcombine.high %v1112_v61, %v1116_v62  ;;  %v1120_v6 = vld [vmem:[#allocation10 + $0x580] sm:$0xff] }
 0x392   :  { %v929_v11 = vadd.f32 %v915_v54, %v904_v7  ;;  %v928_v12 = vadd.f32 %v911_v55, %v903_v8  ;;  %v931_v13 = vadd.f32 %v923_v57, %v906_v9  ;;  %v7978_v14 = vadd.f32 %v919_v58, %v905_v10  ;;  %v1113_v63 = vld [vmem:[#allocation10 + $0x548] sm:$0xff]  ;;  %v1124_v7 = vld [vmem:[#allocation10 + $0x5a0] sm:$0xff] }
 0x393   :  { %v6179_v54 = vcombine.low %v1096_v40, %v1100_v43  ;;  %v6181_v55 = vcombine.low %v1097_v44, %v1101_v49  ;;  %v6190_v58 = vcombine.high %v1105_v52, %v1109_v53  ;;  %v1117_v0 = vld [vmem:[#allocation10 + $0x568] sm:$0xff]  ;;  %v6189_v2 = vcombine.low %v1105_v52, %v1109_v53 }
 0x394   :  { %v933_v56 = vmul.f32 0.2, %v929_v11  ;;  %v932_v15 = vmul.f32 0.2, %v928_v12  ;;  %v935_v60 = vmul.f32 0.2, %v931_v13  ;;  %v6198_v5 = vcombine.high %v1113_v63, %v1117_v0 }
 0x395   :  { %v1121_v8 = vld [vmem:[#allocation10 + $0x588] sm:$0xff]  ;;  %v6195_v10 = vcombine.low %v1112_v61, %v1116_v62  ;;  %v6219_v40 = vcombine.low %v1136_v19, %v1140_v20 }
 0x396   :  { %v937_v16 = vmax.f32 %v929_v11, %v933_v56  ;;  %v936_v59 = vmax.f32 %v928_v12, %v932_v15  ;;  %v939_v4 = vmax.f32 %v931_v13, %v935_v60  ;;  %v1125_v9 = vld [vmem:[#allocation10 + $0x5a8] sm:$0xff]  ;;  %v6197_v11 = vcombine.low %v1113_v63, %v1117_v0  ;;  %v1128_v56 = vld [vmem:[#allocation10 + $0x5c0] sm:$0xff] }
 0x397   :  { %v6204_v12 = vcombine.high %v1120_v6, %v1124_v7  ;;  %v6206_v13 = vcombine.high %v1121_v8, %v1125_v9  ;;  %v1132_v15 = vld [vmem:[#allocation10 + $0x5e0] sm:$0xff]  ;;  %v1129_v60 = vld [vmem:[#allocation10 + $0x5c8] sm:$0xff]  ;;  %v6205_v17 = vcombine.low %v1121_v8, %v1125_v9 }
 0x398   :  { %v7980_v21 = vpack.c.bf16 %v937_v16, %v937_v16  ;;  %v7982_v24 = vpack.c.bf16 %v936_v59, %v936_v59  ;;  %v7988_v36 = vpack.c.bf16 %v939_v4, %v939_v4  ;;  %v1133_v16 = vld [vmem:[#allocation10 + $0x5e8] sm:$0xff]  ;;  %v6203_v59 = vcombine.low %v1120_v6, %v1124_v7 }
 0x399   :  { %v6212_v4 = vcombine.high %v1128_v56, %v1132_v15  ;;  %v6214_v18 = vcombine.high %v1129_v60, %v1133_v16  ;;  %v6213_v34 = vcombine.low %v1129_v60, %v1133_v16 }
 0x39a   :  { %2554 = vmatprep.mubr.bf16.mxu0 %v7980_v21  ;;  %2636 = vmatprep.mubr.bf16.mxu1 %v7980_v21 }
 0x39b   :  { %2555 = vmatmul.mubr.bf16.vlgmr.msra.gmra.mrb[4].mxu0 %v7982_v24  ;;  %2637 = vmatmul.mubr.bf16.vlgmr.msra.gmra.mrb[4].mxu1 %v7982_v24 }
 0x39c   :  { %2564 = vmatpush1.bf16.msra.mxu0 %v6155_v31  ;;  %2646 = vmatpush1.bf16.msra.mxu1 %v6157_v32  ;;  %v1104_v31 = vld [vmem:[#allocation10 + $0x500] sm:$0xff] }
 0x39d   :  { %2595 = vmatprep.mubr.bf16.mxu0 %v7988_v36  ;;  %2677 = vmatprep.mubr.bf16.mxu1 %v7988_v36  ;;  %v1108_v32 = vld [vmem:[#allocation10 + $0x520] sm:$0xff] }
 0x39e   :  { %2565 = vmatprep.subr.bf16.mxu0 %v6164_v29  ;;  %2647 = vmatprep.subr.bf16.mxu1 %v6166_v33  ;;  %v6188_v57 = vcombine.high %v1104_v31, %v1108_v32  ;;  %v6187_v1 = vcombine.low %v1104_v31, %v1108_v32  ;;  %v1141_v29 = vld [vmem:[#allocation10 + $0x628] sm:$0xff]  ;;  %v6211_v33 = vcombine.low %v1128_v56, %v1132_v15 }
 0x39f   :  { %v6222_v22 = vcombine.high %v1137_v25, %v1141_v29  ;;  %v6221_v43 = vcombine.low %v1137_v25, %v1141_v29 }
 0x3a0   :  { %2566 = vmatpush1.bf16.msra.mxu0 %v6163_v23  ;;  %2648 = vmatpush1.bf16.msra.mxu1 %v6165_v37  ;;  %v1144_v23 = vld [vmem:[#allocation10 + $0x640] sm:$0xff] }
 0x3a1   :  { %2567 = vmatprep.subr.bf16.mxu0 %v6172_v38  ;;  %2649 = vmatprep.subr.bf16.mxu1 %v6174_v39  ;;  %v1148_v37 = vld [vmem:[#allocation10 + $0x660] sm:$0xff]  ;;  %v1145_v38 = vld [vmem:[#allocation10 + $0x648] sm:$0xff] }
 0x3a2   :  { %v1149_v39 = vld [vmem:[#allocation10 + $0x668] sm:$0xff]  ;;  %v6228_v44 = vcombine.high %v1144_v23, %v1148_v37  ;;  %v6227_v31 = vcombine.low %v1144_v23, %v1148_v37 }
 0x3a3   :  { %v6230_v49 = vcombine.high %v1145_v38, %v1149_v39  ;;  %v6229_v32 = vcombine.low %v1145_v38, %v1149_v39 }
 0x3a4   :  { %2568 = vmatpush1.bf16.msra.mxu0 %v6171_v26  ;;  %2650 = vmatpush1.bf16.msra.mxu1 %v6173_v27  ;;  %v1152_v26 = vld [vmem:[#allocation10 + $0x680] sm:$0xff] }
 0x3a5   :  { %2569 = vmatprep.subr.bf16.mxu0 %v6180_v28  ;;  %2651 = vmatprep.subr.bf16.mxu1 %v6182_v30  ;;  %v1156_v27 = vld [vmem:[#allocation10 + $0x6a0] sm:$0xff]  ;;  %v1153_v28 = vld [vmem:[#allocation10 + $0x688] sm:$0xff] }
 0x3a6   :  { %v1157_v30 = vld [vmem:[#allocation10 + $0x6a8] sm:$0xff]  ;;  %v6236_v52 = vcombine.high %v1152_v26, %v1156_v27  ;;  %v6235_v61 = vcombine.low %v1152_v26, %v1156_v27  ;;  %v951_v26 = vld [vmem:[#allocation10 + $0x38] sm:$0xff] }
 0x3a7   :  { %v6238_v53 = vcombine.high %v1153_v28, %v1157_v30  ;;  %v6237_v62 = vcombine.low %v1153_v28, %v1157_v30 }
 0x3a8   :  { %2570 = vmatpush1.bf16.msra.mxu0 %v6179_v54  ;;  %2652 = vmatpush1.bf16.msra.mxu1 %v6181_v55  ;;  %v1160_v54 = vld [vmem:[#allocation10 + $0x6c0] sm:$0xff] }
 0x3a9   :  { %2571 = vmatprep.subr.bf16.mxu0 %v6188_v57  ;;  %2653 = vmatprep.subr.bf16.mxu1 %v6190_v58  ;;  %v1164_v55 = vld [vmem:[#allocation10 + $0x6e0] sm:$0xff]  ;;  %v1161_v57 = vld [vmem:[#allocation10 + $0x6c8] sm:$0xff] }
 0x3aa   :  { %v1165_v58 = vld [vmem:[#allocation10 + $0x6e8] sm:$0xff]  ;;  %v6244_v63 = vcombine.high %v1160_v54, %v1164_v55  ;;  %v6243_v6 = vcombine.low %v1160_v54, %v1164_v55  ;;  %v955_v54 = vld [vmem:[#allocation10 + $0x58] sm:$0xff] }
 0x3ab   :  { %v6246_v0 = vcombine.high %v1161_v57, %v1165_v58  ;;  %v6245_v7 = vcombine.low %v1161_v57, %v1165_v58  ;;  %v959_v55 = vld [vmem:[#allocation10 + $0x78] sm:$0xff] }
 0x3ac   :  { %2572 = vmatpush1.bf16.msra.mxu0 %v6187_v1  ;;  %2654 = vmatpush1.bf16.msra.mxu1 %v6189_v2  ;;  %v1168_v1 = vld [vmem:[#allocation10 + $0x700] sm:$0xff] }
 0x3ad   :  { %2573 = vmatprep.subr.bf16.mxu0 %v6196_v3  ;;  %2655 = vmatprep.subr.bf16.mxu1 %v6198_v5  ;;  %v1172_v2 = vld [vmem:[#allocation10 + $0x720] sm:$0xff]  ;;  %v1169_v3 = vld [vmem:[#allocation10 + $0x708] sm:$0xff] }
 0x3ae   :  { %v1173_v5 = vld [vmem:[#allocation10 + $0x728] sm:$0xff]  ;;  %v6252_v8 = vcombine.high %v1168_v1, %v1172_v2  ;;  %v6251_v56 = vcombine.low %v1168_v1, %v1172_v2  ;;  %v966_v1 = vld [vmem:[#allocation10 + $0xb0] sm:$0xff]  ;;  %v967_v2 = vld [vmem:[#allocation10 + $0xb8] sm:$0xff] }
 0x3af   :  { %v6254_v9 = vcombine.high %v1169_v3, %v1173_v5  ;;  %v6253_v15 = vcombine.low %v1169_v3, %v1173_v5  ;;  %v6041_v5 = vcombine.low %v955_v54, %v959_v55 }
 0x3b0   :  { %2574 = vmatpush1.bf16.msra.mxu0 %v6195_v10  ;;  %2656 = vmatpush1.bf16.msra.mxu1 %v6197_v11  ;;  %v1176_v10 = vld [vmem:[#allocation10 + $0x740] sm:$0xff] }
 0x3b1   :  { %2575 = vmatprep.subr.bf16.mxu0 %v6204_v12  ;;  %2657 = vmatprep.subr.bf16.mxu1 %v6206_v13  ;;  %v1180_v11 = vld [vmem:[#allocation10 + $0x760] sm:$0xff]  ;;  %v1177_v12 = vld [vmem:[#allocation10 + $0x748] sm:$0xff] }
 0x3b2   :  { %v1181_v13 = vld [vmem:[#allocation10 + $0x768] sm:$0xff]  ;;  %v6260_v60 = vcombine.high %v1176_v10, %v1180_v11  ;;  %v6259_v19 = vcombine.low %v1176_v10, %v1180_v11  ;;  %v971_v10 = vld [vmem:[#allocation10 + $0xd8] sm:$0xff] }
 0x3b3   :  { %v6262_v16 = vcombine.high %v1177_v12, %v1181_v13  ;;  %v6261_v20 = vcombine.low %v1177_v12, %v1181_v13  ;;  %v975_v11 = vld [vmem:[#allocation10 + $0xf8] sm:$0xff] }
 0x3b4   :  { %2576 = vmatpush1.bf16.msra.mxu0 %v6203_v59  ;;  %2658 = vmatpush1.bf16.msra.mxu1 %v6205_v17  ;;  %v1184_v59 = vld [vmem:[#allocation10 + $0x780] sm:$0xff] }
 0x3b5   :  { %2577 = vmatprep.subr.bf16.mxu0 %v6212_v4  ;;  %2659 = vmatprep.subr.bf16.mxu1 %v6214_v18  ;;  %v1188_v17 = vld [vmem:[#allocation10 + $0x7a0] sm:$0xff]  ;;  %v1185_v4 = vld [vmem:[#allocation10 + $0x788] sm:$0xff] }
 0x3b6   :  { %v1189_v18 = vld [vmem:[#allocation10 + $0x7a8] sm:$0xff]  ;;  %v6268_v25 = vcombine.high %v1184_v59, %v1188_v17  ;;  %v6267_v23 = vcombine.low %v1184_v59, %v1188_v17  ;;  %v983_v59 = vld [vmem:[#allocation10 + $0x138] sm:$0xff] }
 0x3b7   :  { %v6270_v29 = vcombine.high %v1185_v4, %v1189_v18  ;;  %v6269_v37 = vcombine.low %v1185_v4, %v1189_v18  ;;  %v6057_v4 = vcombine.low %v971_v10, %v975_v11 }
 0x3b8   :  { %2578 = vmatpush1.bf16.msra.mxu0 %v6211_v33  ;;  %2660 = vmatpush1.bf16.msra.mxu1 %v6213_v34  ;;  %v1192_v33 = vld [vmem:[#allocation10 + $0x7c0] sm:$0xff] }
 0x3b9   :  { %2579 = vmatprep.subr.bf16.mxu0 %v6220_v35  ;;  %2661 = vmatprep.subr.bf16.mxu1 %v6222_v22  ;;  %v1196_v34 = vld [vmem:[#allocation10 + $0x7e0] sm:$0xff]  ;;  %v1193_v35 = vld [vmem:[#allocation10 + $0x7c8] sm:$0xff] }
 0x3ba   :  { %v1197_v22 = vld [vmem:[#allocation10 + $0x7e8] sm:$0xff]  ;;  %v6276_v38 = vcombine.high %v1192_v33, %v1196_v34  ;;  %v6275_v27 = vcombine.low %v1192_v33, %v1196_v34  ;;  %v991_v33 = vld [vmem:[#allocation10 + $0x178] sm:$0xff] }
 0x3bb   :  { %v6278_v39 = vcombine.high %v1193_v35, %v1197_v22  ;;  %v6277_v28 = vcombine.low %v1193_v35, %v1197_v22 }
 0x3bc   :  { %2580 = vmatpush1.bf16.msra.mxu0 %v6219_v40  ;;  %2662 = vmatpush1.bf16.msra.mxu1 %v6221_v43  ;;  %v934_v40 = vmul.f32 0.2, %v7978_v14  ;;  %v946_v43 = vld [vmem:[#allocation10 + $0x10] sm:$0xff] }
 0x3bd   :  { %2581 = vmatprep.subr.bf16.mxu0 %v6228_v44  ;;  %2663 = vmatprep.subr.bf16.mxu1 %v6230_v49  ;;  %v950_v44 = vld [vmem:[#allocation10 + $0x30] sm:$0xff]  ;;  %v947_v49 = vld [vmem:[#allocation10 + $0x18] sm:$0xff] }
 0x3be   :  { %v938_v30 = vmax.f32 %v7978_v14, %v934_v40  ;;  %v6031_v57 = vcombine.low %v946_v43, %v950_v44  ;;  %v963_v14 = vld [vmem:[#allocation10 + $0x98] sm:$0xff] }
 0x3bf   :  { %v6049_v13 = vcombine.low %v963_v14, %v967_v2  ;;  %v999_v40 = vld [vmem:[#allocation10 + $0x1b8] sm:$0xff] }
 0x3c0   :  { %2582 = vmatpush1.bf16.msra.mxu0 %v6227_v31  ;;  %2664 = vmatpush1.bf16.msra.mxu1 %v6229_v32  ;;  %v6032_v31 = vcombine.high %v946_v43, %v950_v44  ;;  %v6034_v32 = vcombine.high %v947_v49, %v951_v26  ;;  %v8000_v58 = vpack.c.bf16 %v938_v30, %v938_v30  ;;  %v1003_v30 = vld [vmem:[#allocation10 + $0x1d8] sm:$0xff] }
 0x3c1   :  { %2583 = vmatprep.subr.bf16.mxu0 %v6236_v52  ;;  %2665 = vmatprep.subr.bf16.mxu1 %v6238_v53  ;;  %v954_v52 = vld [vmem:[#allocation10 + $0x50] sm:$0xff] }
 0x3c2   :  { %v958_v53 = vld [vmem:[#allocation10 + $0x70] sm:$0xff] }
 0x3c3   :  { %v6039_v3 = vcombine.low %v954_v52, %v958_v53 }
 0x3c4   :  { %2584 = vmatpush1.bf16.msra.mxu0 %v6235_v61  ;;  %2666 = vmatpush1.bf16.msra.mxu1 %v6237_v62  ;;  %v6033_v61 = vcombine.low %v947_v49, %v951_v26  ;;  %v6040_v62 = vcombine.high %v954_v52, %v958_v53 }
 0x3c5   :  { %2585 = vmatprep.subr.bf16.mxu0 %v6244_v63  ;;  %2667 = vmatprep.subr.bf16.mxu1 %v6246_v0  ;;  %v6042_v63 = vcombine.high %v955_v54, %v959_v55  ;;  %v962_v0 = vld [vmem:[#allocation10 + $0x90] sm:$0xff] }
 0x3c6   :  { %v6047_v12 = vcombine.low %v962_v0, %v966_v1  ;;  %v1010_v55 = vld [vmem:[#allocation10 + $0x210] sm:$0xff] }
 0x3c8   :  { %2586 = vmatpush1.bf16.msra.mxu0 %v6243_v6  ;;  %2668 = vmatpush1.bf16.msra.mxu1 %v6245_v7  ;;  %v6048_v6 = vcombine.high %v962_v0, %v966_v1  ;;  %v6050_v7 = vcombine.high %v963_v14, %v967_v2  ;;  %v1018_v2 = vld [vmem:[#allocation10 + $0x250] sm:$0xff] }
 0x3c9   :  { %2587 = vmatprep.subr.bf16.mxu0 %v6252_v8  ;;  %2669 = vmatprep.subr.bf16.mxu1 %v6254_v9  ;;  %v970_v8 = vld [vmem:[#allocation10 + $0xd0] sm:$0xff] }
 0x3ca   :  { %v974_v9 = vld [vmem:[#allocation10 + $0xf0] sm:$0xff] }
 0x3cb   :  { %v6055_v17 = vcombine.low %v970_v8, %v974_v9 }
 0x3cc   :  { %2588 = vmatpush1.bf16.msra.mxu0 %v6251_v56  ;;  %2670 = vmatpush1.bf16.msra.mxu1 %v6253_v15  ;;  %v6056_v56 = vcombine.high %v970_v8, %v974_v9  ;;  %v6058_v15 = vcombine.high %v971_v10, %v975_v11  ;;  %v1026_v11 = vld [vmem:[#allocation10 + $0x290] sm:$0xff] }
 0x3cd   :  { %2589 = vmatprep.subr.bf16.mxu0 %v6260_v60  ;;  %2671 = vmatprep.subr.bf16.mxu1 %v6262_v16  ;;  %v978_v60 = vld [vmem:[#allocation10 + $0x110] sm:$0xff] }
 0x3ce   :  { %v982_v16 = vld [vmem:[#allocation10 + $0x130] sm:$0xff] }
 0x3cf   :  { %v6064_v18 = vcombine.high %v978_v60, %v982_v16  ;;  %v6063_v34 = vcombine.low %v978_v60, %v982_v16 }
 0x3d0   :  { %2590 = vmatpush1.bf16.msra.mxu0 %v6259_v19  ;;  %2672 = vmatpush1.bf16.msra.mxu1 %v6261_v20  ;;  %v986_v20 = vld [vmem:[#allocation10 + $0x150] sm:$0xff] }
 0x3d1   :  { %2591 = vmatprep.subr.bf16.mxu0 %v6268_v25  ;;  %2673 = vmatprep.subr.bf16.mxu1 %v6270_v29  ;;  %v990_v25 = vld [vmem:[#allocation10 + $0x170] sm:$0xff]  ;;  %v987_v29 = vld [vmem:[#allocation10 + $0x158] sm:$0xff] }
 0x3d2   :  { %v6072_v22 = vcombine.high %v986_v20, %v990_v25  ;;  %v6071_v43 = vcombine.low %v986_v20, %v990_v25  ;;  %v6073_v44 = vcombine.low %v987_v29, %v991_v33 }
 0x3d4   :  { %2592 = vmatpush1.bf16.msra.mxu0 %v6267_v23  ;;  %2674 = vmatpush1.bf16.msra.mxu1 %v6269_v37  ;;  %v6074_v23 = vcombine.high %v987_v29, %v991_v33  ;;  %v994_v37 = vld [vmem:[#allocation10 + $0x190] sm:$0xff] }
 0x3d5   :  { %2593 = vmatprep.subr.bf16.mxu0 %v6276_v38  ;;  %2675 = vmatprep.subr.bf16.mxu1 %v6278_v39  ;;  %v998_v38 = vld [vmem:[#allocation10 + $0x1b0] sm:$0xff]  ;;  %v995_v39 = vld [vmem:[#allocation10 + $0x198] sm:$0xff] }
 0x3d6   :  { %v6080_v49 = vcombine.high %v994_v37, %v998_v38  ;;  %v6082_v26 = vcombine.high %v995_v39, %v999_v40  ;;  %v6081_v52 = vcombine.low %v995_v39, %v999_v40  ;;  %v1042_v33 = vld [vmem:[#allocation10 + $0x310] sm:$0xff] }
 0x3d7   :  { %v1050_v40 = vld [vmem:[#allocation10 + $0x350] sm:$0xff] }
 0x3d8   :  { %2594 = vmatpush1.bf16.msra.mxu0 %v6275_v27  ;;  %2676 = vmatpush1.bf16.msra.mxu1 %v6277_v28  ;;  %v1002_v27 = vld [vmem:[#allocation10 + $0x1d0] sm:$0xff] }
 0x3d9   :  { %2686 = vmatprep.subr.bf16.mxu0 %v6032_v31  ;;  %2768 = vmatprep.subr.bf16.mxu1 %v6034_v32  ;;  %v1006_v28 = vld [vmem:[#allocation10 + $0x1f0] sm:$0xff]  ;;  %v1007_v31 = vld [vmem:[#allocation10 + $0x1f8] sm:$0xff]  ;;  %v6079_v32 = vcombine.low %v994_v37, %v998_v38 }
 0x3da   :  { %v6088_v53 = vcombine.high %v1002_v27, %v1006_v28  ;;  %v6090_v54 = vcombine.high %v1003_v30, %v1007_v31  ;;  %v6089_v0 = vcombine.low %v1003_v30, %v1007_v31  ;;  %v1058_v31 = vld [vmem:[#allocation10 + $0x390] sm:$0xff] }
 0x3db   :  { %2596 = vmatmul.mubr.bf16.vlgmr.msra.gmra.mrb[4].mxu0 %v8000_v58  ;;  %2678 = vmatmul.mubr.bf16.vlgmr.msra.gmra.mrb[4].mxu1 %v8000_v58 }
 0x3dc   :  { %2687 = vmatpush1.bf16.msra.mxu0 %v6031_v57  ;;  %2718 = vmatprep.mubr.bf16.mxu0 %v7980_v21  ;;  %v1014_v57 = vld [vmem:[#allocation10 + $0x230] sm:$0xff] }
 0x3dd   :  { %2769 = vmatpush1.bf16.msra.mxu1 %v6033_v61  ;;  %2800 = vmatprep.mubr.bf16.mxu1 %v7980_v21  ;;  %v979_v21 = vld [vmem:[#allocation10 + $0x118] sm:$0xff]  ;;  %v6096_v1 = vcombine.high %v1010_v55, %v1014_v57 }
 0x3de   :  { %2688 = vmatprep.subr.bf16.mxu0 %v6040_v62  ;;  %2770 = vmatprep.subr.bf16.mxu1 %v6042_v63  ;;  %v6066_v19 = vcombine.high %v979_v21, %v983_v59  ;;  %v6065_v35 = vcombine.low %v979_v21, %v983_v59  ;;  %v1011_v61 = vld [vmem:[#allocation10 + $0x218] sm:$0xff]  ;;  %v6087_v63 = vcombine.low %v1002_v27, %v1006_v28  ;;  %v1034_v59 = vld [vmem:[#allocation10 + $0x2d0] sm:$0xff] }
 0x3df   :  { %v1015_v62 = vld [vmem:[#allocation10 + $0x238] sm:$0xff] }
 0x3e0   :  { %2689 = vmatpush1.bf16.msra.mxu0 %v6039_v3  ;;  %v6098_v14 = vcombine.high %v1011_v61, %v1015_v62  ;;  %v1022_v3 = vld [vmem:[#allocation10 + $0x270] sm:$0xff]  ;;  %v6097_v8 = vcombine.low %v1011_v61, %v1015_v62 }
 0x3e1   :  { %2771 = vmatpush1.bf16.msra.mxu1 %v6041_v5  ;;  %2690 = vmatprep.subr.bf16.mxu0 %v6048_v6  ;;  %v1019_v5 = vld [vmem:[#allocation10 + $0x258] sm:$0xff]  ;;  %v6104_v9 = vcombine.high %v1018_v2, %v1022_v3  ;;  %v1066_v62 = vld [vmem:[#allocation10 + $0x3d0] sm:$0xff] }
 0x3e2   :  { %2772 = vmatprep.subr.bf16.mxu1 %v6050_v7  ;;  %v1023_v6 = vld [vmem:[#allocation10 + $0x278] sm:$0xff]  ;;  %v6095_v7 = vcombine.low %v1010_v55, %v1014_v57 }
 0x3e3   :  { %v6106_v10 = vcombine.high %v1019_v5, %v1023_v6  ;;  %v6105_v60 = vcombine.low %v1019_v5, %v1023_v6  ;;  %v1074_v6 = vld [vmem:[#allocation10 + $0x410] sm:$0xff] }
 0x3e4   :  { %2691 = vmatpush1.bf16.msra.mxu0 %v6047_v12  ;;  %v1030_v12 = vld [vmem:[#allocation10 + $0x2b0] sm:$0xff] }
 0x3e5   :  { %2773 = vmatpush1.bf16.msra.mxu1 %v6049_v13  ;;  %2692 = vmatprep.subr.bf16.mxu0 %v6056_v56  ;;  %v1027_v13 = vld [vmem:[#allocation10 + $0x298] sm:$0xff]  ;;  %v6112_v16 = vcombine.high %v1026_v11, %v1030_v12 }
 0x3e6   :  { %2774 = vmatprep.subr.bf16.mxu1 %v6058_v15  ;;  %v1031_v56 = vld [vmem:[#allocation10 + $0x2b8] sm:$0xff]  ;;  %v6103_v15 = vcombine.low %v1018_v2, %v1022_v3 }
 0x3e7   :  { %v6114_v21 = vcombine.high %v1027_v13, %v1031_v56  ;;  %v6113_v20 = vcombine.low %v1027_v13, %v1031_v56  ;;  %v1082_v56 = vld [vmem:[#allocation10 + $0x450] sm:$0xff] }
 0x3e8   :  { %2693 = vmatpush1.bf16.msra.mxu0 %v6055_v17  ;;  %v1038_v17 = vld [vmem:[#allocation10 + $0x2f0] sm:$0xff] }
 0x3e9   :  { %2775 = vmatpush1.bf16.msra.mxu1 %v6057_v4  ;;  %2694 = vmatprep.subr.bf16.mxu0 %v6064_v18  ;;  %v1035_v4 = vld [vmem:[#allocation10 + $0x2d8] sm:$0xff]  ;;  %v6120_v25 = vcombine.high %v1034_v59, %v1038_v17 }
 0x3ea   :  { %2776 = vmatprep.subr.bf16.mxu1 %v6066_v19  ;;  %v1039_v18 = vld [vmem:[#allocation10 + $0x2f8] sm:$0xff]  ;;  %v6111_v19 = vcombine.low %v1026_v11, %v1030_v12 }
 0x3eb   :  { %v6122_v29 = vcombine.high %v1035_v4, %v1039_v18  ;;  %v6121_v37 = vcombine.low %v1035_v4, %v1039_v18  ;;  %v1090_v4 = vld [vmem:[#allocation10 + $0x490] sm:$0xff] }
 0x3ec   :  { %2695 = vmatpush1.bf16.msra.mxu0 %v6063_v34  ;;  %v1046_v34 = vld [vmem:[#allocation10 + $0x330] sm:$0xff] }
 0x3ed   :  { %2777 = vmatpush1.bf16.msra.mxu1 %v6065_v35  ;;  %2696 = vmatprep.subr.bf16.mxu0 %v6072_v22  ;;  %v1043_v35 = vld [vmem:[#allocation10 + $0x318] sm:$0xff]  ;;  %v6128_v38 = vcombine.high %v1042_v33, %v1046_v34  ;;  %v1094_v18 = vld [vmem:[#allocation10 + $0x4b0] sm:$0xff] }
 0x3ee   :  { %2778 = vmatprep.subr.bf16.mxu1 %v6074_v23  ;;  %v1047_v22 = vld [vmem:[#allocation10 + $0x338] sm:$0xff]  ;;  %v6119_v23 = vcombine.low %v1034_v59, %v1038_v17 }
 0x3ef   :  { %v6130_v39 = vcombine.high %v1043_v35, %v1047_v22  ;;  %v6129_v27 = vcombine.low %v1043_v35, %v1047_v22  ;;  %v1098_v22 = vld [vmem:[#allocation10 + $0x4d0] sm:$0xff] }
 0x3f0   :  { %2697 = vmatpush1.bf16.msra.mxu0 %v6071_v43  ;;  %v1054_v43 = vld [vmem:[#allocation10 + $0x370] sm:$0xff] }
 0x3f1   :  { %2779 = vmatpush1.bf16.msra.mxu1 %v6073_v44  ;;  %2698 = vmatprep.subr.bf16.mxu0 %v6080_v49  ;;  %v1051_v44 = vld [vmem:[#allocation10 + $0x358] sm:$0xff]  ;;  %v6136_v28 = vcombine.high %v1050_v40, %v1054_v43 }
 0x3f2   :  { %2780 = vmatprep.subr.bf16.mxu1 %v6082_v26  ;;  %v1055_v49 = vld [vmem:[#allocation10 + $0x378] sm:$0xff]  ;;  %v6127_v26 = vcombine.low %v1042_v33, %v1046_v34  ;;  %v6176_v34 = vcombine.high %v1090_v4, %v1094_v18 }
 0x3f3   :  { %v6138_v30 = vcombine.high %v1051_v44, %v1055_v49  ;;  %v6137_v55 = vcombine.low %v1051_v44, %v1055_v49  ;;  %v1106_v44 = vld [vmem:[#allocation10 + $0x510] sm:$0xff] }
 0x3f4   :  { %2699 = vmatpush1.bf16.msra.mxu0 %v6079_v32  ;;  %v1062_v32 = vld [vmem:[#allocation10 + $0x3b0] sm:$0xff] }
 0x3f5   :  { %2781 = vmatpush1.bf16.msra.mxu1 %v6081_v52  ;;  %2700 = vmatprep.subr.bf16.mxu0 %v6088_v53  ;;  %v1059_v52 = vld [vmem:[#allocation10 + $0x398] sm:$0xff]  ;;  %v6144_v57 = vcombine.high %v1058_v31, %v1062_v32  ;;  %v1110_v49 = vld [vmem:[#allocation10 + $0x530] sm:$0xff] }
 0x3f6   :  { %2782 = vmatprep.subr.bf16.mxu1 %v6090_v54  ;;  %v1063_v53 = vld [vmem:[#allocation10 + $0x3b8] sm:$0xff]  ;;  %v6135_v54 = vcombine.low %v1050_v40, %v1054_v43 }
 0x3f7   :  { %v6146_v61 = vcombine.high %v1059_v52, %v1063_v53  ;;  %v6145_v2 = vcombine.low %v1059_v52, %v1063_v53  ;;  %v1118_v52 = vld [vmem:[#allocation10 + $0x570] sm:$0xff]  ;;  %v1115_v53 = vld [vmem:[#allocation10 + $0x558] sm:$0xff] }
 0x3f8   :  { %2701 = vmatpush1.bf16.msra.mxu0 %v6087_v63  ;;  %v1070_v63 = vld [vmem:[#allocation10 + $0x3f0] sm:$0xff] }
 0x3f9   :  { %2783 = vmatpush1.bf16.msra.mxu1 %v6089_v0  ;;  %2702 = vmatprep.subr.bf16.mxu0 %v6096_v1  ;;  %v1067_v0 = vld [vmem:[#allocation10 + $0x3d8] sm:$0xff]  ;;  %v6152_v3 = vcombine.high %v1066_v62, %v1070_v63 }
 0x3fa   :  { %2784 = vmatprep.subr.bf16.mxu1 %v6098_v14  ;;  %v1071_v1 = vld [vmem:[#allocation10 + $0x3f8] sm:$0xff]  ;;  %v6143_v14 = vcombine.low %v1058_v31, %v1062_v32  ;;  %v1114_v32 = vld [vmem:[#allocation10 + $0x550] sm:$0xff] }
 0x3fb   :  { %v6154_v5 = vcombine.high %v1067_v0, %v1071_v1  ;;  %v6153_v11 = vcombine.low %v1067_v0, %v1071_v1  ;;  %v1126_v0 = vld [vmem:[#allocation10 + $0x5b0] sm:$0xff]  ;;  %v1123_v1 = vld [vmem:[#allocation10 + $0x598] sm:$0xff] }
 0x3fc   :  { %2703 = vmatpush1.bf16.msra.mxu0 %v6095_v7  ;;  %v1078_v7 = vld [vmem:[#allocation10 + $0x430] sm:$0xff] }
 0x3fd   :  { %2785 = vmatpush1.bf16.msra.mxu1 %v6097_v8  ;;  %2704 = vmatprep.subr.bf16.mxu0 %v6104_v9  ;;  %v1075_v8 = vld [vmem:[#allocation10 + $0x418] sm:$0xff]  ;;  %v6160_v12 = vcombine.high %v1074_v6, %v1078_v7 }
 0x3fe   :  { %2786 = vmatprep.subr.bf16.mxu1 %v6106_v10  ;;  %v1079_v9 = vld [vmem:[#allocation10 + $0x438] sm:$0xff]  ;;  %v6151_v10 = vcombine.low %v1066_v62, %v1070_v63  ;;  %v1122_v63 = vld [vmem:[#allocation10 + $0x590] sm:$0xff] }
 0x3ff   :  { %v6162_v13 = vcombine.high %v1075_v8, %v1079_v9  ;;  %v6161_v59 = vcombine.low %v1075_v8, %v1079_v9  ;;  %v1134_v8 = vld [vmem:[#allocation10 + $0x5f0] sm:$0xff]  ;;  %v1131_v9 = vld [vmem:[#allocation10 + $0x5d8] sm:$0xff] }
 0x400   :  { %2705 = vmatpush1.bf16.msra.mxu0 %v6103_v15  ;;  %v1086_v15 = vld [vmem:[#allocation10 + $0x470] sm:$0xff] }
 0x401   :  { %2787 = vmatpush1.bf16.msra.mxu1 %v6105_v60  ;;  %2706 = vmatprep.subr.bf16.mxu0 %v6112_v16  ;;  %v6159_v60 = vcombine.low %v1074_v6, %v1078_v7  ;;  %v1083_v16 = vld [vmem:[#allocation10 + $0x458] sm:$0xff]  ;;  %v6168_v17 = vcombine.high %v1082_v56, %v1086_v15  ;;  %v1130_v7 = vld [vmem:[#allocation10 + $0x5d0] sm:$0xff] }
 0x402   :  { %2788 = vmatprep.subr.bf16.mxu1 %v6114_v21  ;;  %v1087_v21 = vld [vmem:[#allocation10 + $0x478] sm:$0xff] }
 0x403   :  { %v6169_v33 = vcombine.low %v1083_v16, %v1087_v21 }
 0x404   :  { %2707 = vmatpush1.bf16.msra.mxu0 %v6111_v19  ;;  %v6170_v19 = vcombine.high %v1083_v16, %v1087_v21  ;;  %v1139_v16 = vld [vmem:[#allocation10 + $0x618] sm:$0xff] }
 0x405   :  { %2789 = vmatpush1.bf16.msra.mxu1 %v6113_v20  ;;  %2708 = vmatprep.subr.bf16.mxu0 %v6120_v25  ;;  %v1091_v20 = vld [vmem:[#allocation10 + $0x498] sm:$0xff] }
 0x406   :  { %2790 = vmatprep.subr.bf16.mxu1 %v6122_v29  ;;  %v1095_v25 = vld [vmem:[#allocation10 + $0x4b8] sm:$0xff]  ;;  %v6167_v29 = vcombine.low %v1082_v56, %v1086_v15  ;;  %v1138_v15 = vld [vmem:[#allocation10 + $0x610] sm:$0xff] }
 0x407   :  { %v6178_v35 = vcombine.high %v1091_v20, %v1095_v25  ;;  %v1143_v21 = vld [vmem:[#allocation10 + $0x638] sm:$0xff] }
 0x408   :  { %2709 = vmatpush1.bf16.msra.mxu0 %v6119_v23  ;;  %v1102_v23 = vld [vmem:[#allocation10 + $0x4f0] sm:$0xff] }
 0x409   :  { %2791 = vmatpush1.bf16.msra.mxu1 %v6121_v37  ;;  %2710 = vmatprep.subr.bf16.mxu0 %v6128_v38  ;;  %v1099_v37 = vld [vmem:[#allocation10 + $0x4d8] sm:$0xff]  ;;  %v6184_v40 = vcombine.high %v1098_v22, %v1102_v23 }
 0x40a   :  { %2792 = vmatprep.subr.bf16.mxu1 %v6130_v39  ;;  %v1103_v38 = vld [vmem:[#allocation10 + $0x4f8] sm:$0xff]  ;;  %v6175_v39 = vcombine.low %v1090_v4, %v1094_v18  ;;  %v6226_v18 = vcombine.high %v1139_v16, %v1143_v21 }
 0x40b   :  { %v6186_v43 = vcombine.high %v1099_v37, %v1103_v38 }
 0x40c   :  { %2711 = vmatpush1.bf16.msra.mxu0 %v6127_v26  ;;  %v1107_v26 = vld [vmem:[#allocation10 + $0x518] sm:$0xff] }
 0x40d   :  { %2793 = vmatpush1.bf16.msra.mxu1 %v6129_v27  ;;  %2712 = vmatprep.subr.bf16.mxu0 %v6136_v28  ;;  %v1111_v27 = vld [vmem:[#allocation10 + $0x538] sm:$0xff]  ;;  %v6185_v28 = vcombine.low %v1099_v37, %v1103_v38  ;;  %v1158_v37 = vld [vmem:[#allocation10 + $0x6b0] sm:$0xff] }
 0x40e   :  { %2794 = vmatprep.subr.bf16.mxu1 %v6138_v30  ;;  %v6192_v30 = vcombine.high %v1106_v44, %v1110_v49  ;;  %v6194_v31 = vcombine.high %v1107_v26, %v1111_v27  ;;  %v1155_v38 = vld [vmem:[#allocation10 + $0x698] sm:$0xff] }
 0x410   :  { %2713 = vmatpush1.bf16.msra.mxu0 %v6135_v54  ;;  %v1119_v54 = vld [vmem:[#allocation10 + $0x578] sm:$0xff] }
 0x411   :  { %2795 = vmatpush1.bf16.msra.mxu1 %v6137_v55  ;;  %2714 = vmatprep.subr.bf16.mxu0 %v6144_v57  ;;  %v6191_v55 = vcombine.low %v1106_v44, %v1110_v49  ;;  %v6193_v57 = vcombine.low %v1107_v26, %v1111_v27  ;;  %v6202_v62 = vcombine.high %v1115_v53, %v1119_v54  ;;  %v1162_v49 = vld [vmem:[#allocation10 + $0x6d0] sm:$0xff]  ;;  %v1163_v27 = vld [vmem:[#allocation10 + $0x6d8] sm:$0xff] }
 0x412   :  { %2796 = vmatprep.subr.bf16.mxu1 %v6146_v61  ;;  %v6200_v61 = vcombine.high %v1114_v32, %v1118_v52  ;;  %v1166_v26 = vld [vmem:[#allocation10 + $0x6f0] sm:$0xff] }
 0x414   :  { %2715 = vmatpush1.bf16.msra.mxu0 %v6143_v14  ;;  %v1127_v14 = vld [vmem:[#allocation10 + $0x5b8] sm:$0xff] }
 0x415   :  { %2797 = vmatpush1.bf16.msra.mxu1 %v6145_v2  ;;  %2716 = vmatprep.subr.bf16.mxu0 %v6152_v3  ;;  %v6199_v2 = vcombine.low %v1114_v32, %v1118_v52  ;;  %v6201_v3 = vcombine.low %v1115_v53, %v1119_v54  ;;  %v6210_v6 = vcombine.high %v1123_v1, %v1127_v14  ;;  %v1170_v52 = vld [vmem:[#allocation10 + $0x710] sm:$0xff]  ;;  %v1171_v54 = vld [vmem:[#allocation10 + $0x718] sm:$0xff] }
 0x416   :  { %2798 = vmatprep.subr.bf16.mxu1 %v6154_v5  ;;  %v6208_v5 = vcombine.high %v1122_v63, %v1126_v0  ;;  %v1174_v53 = vld [vmem:[#allocation10 + $0x730] sm:$0xff] }
 0x418   :  { %2717 = vmatpush1.bf16.msra.mxu0 %v6151_v10  ;;  %v1135_v10 = vld [vmem:[#allocation10 + $0x5f8] sm:$0xff] }
 0x419   :  { %2799 = vmatpush1.bf16.msra.mxu1 %v6153_v11  ;;  %2727 = vmatprep.subr.bf16.mxu0 %v6160_v12  ;;  %v6207_v11 = vcombine.low %v1122_v63, %v1126_v0  ;;  %v6209_v12 = vcombine.low %v1123_v1, %v1127_v14  ;;  %v6218_v56 = vcombine.high %v1131_v9, %v1135_v10  ;;  %v1178_v0 = vld [vmem:[#allocation10 + $0x750] sm:$0xff]  ;;  %v1179_v14 = vld [vmem:[#allocation10 + $0x758] sm:$0xff] }
 0x41a   :  { %2809 = vmatprep.subr.bf16.mxu1 %v6162_v13  ;;  %v6216_v13 = vcombine.high %v1130_v7, %v1134_v8  ;;  %v1182_v1 = vld [vmem:[#allocation10 + $0x770] sm:$0xff] }
 0x41b   :  { %2719 = vmatmul.mubr.bf16.vlgmr.msra.gmra.mrb[8].mxu0 %v7982_v24 }
 0x41c   :  { %2801 = vmatmul.mubr.bf16.vlgmr.msra.gmra.mrb[8].mxu1 %v7982_v24  ;;  %2728 = vmatpush1.bf16.msra.mxu0 %v6159_v60  ;;  %v6177_v24 = vcombine.low %v1091_v20, %v1095_v25  ;;  %v1142_v60 = vld [vmem:[#allocation10 + $0x630] sm:$0xff]  ;;  %v1147_v25 = vld [vmem:[#allocation10 + $0x658] sm:$0xff] }
 0x41d   :  { %2759 = vmatprep.mubr.bf16.mxu0 %v7988_v36  ;;  %2810 = vmatpush1.bf16.msra.mxu1 %v6161_v59  ;;  %v6215_v59 = vcombine.low %v1130_v7, %v1134_v8  ;;  %v6224_v4 = vcombine.high %v1138_v15, %v1142_v60  ;;  %v1150_v20 = vld [vmem:[#allocation10 + $0x670] sm:$0xff] }
 0x41e   :  { %2841 = vmatprep.mubr.bf16.mxu1 %v7988_v36  ;;  %2729 = vmatprep.subr.bf16.mxu0 %v6168_v17  ;;  %v6183_v36 = vcombine.low %v1098_v22, %v1102_v23  ;;  %v6217_v17 = vcombine.low %v1131_v9, %v1135_v10  ;;  %v1154_v23 = vld [vmem:[#allocation10 + $0x690] sm:$0xff]  ;;  %v1187_v10 = vld [vmem:[#allocation10 + $0x798] sm:$0xff] }
 0x41f   :  { %2811 = vmatprep.subr.bf16.mxu1 %v6170_v19  ;;  %v1146_v19 = vld [vmem:[#allocation10 + $0x650] sm:$0xff] }
 0x420   :  { %2730 = vmatpush1.bf16.msra.mxu0 %v6167_v29  ;;  %v1151_v29 = vld [vmem:[#allocation10 + $0x678] sm:$0xff]  ;;  %v1186_v8 = vld [vmem:[#allocation10 + $0x790] sm:$0xff] }
 0x421   :  { %2812 = vmatpush1.bf16.msra.mxu1 %v6169_v33  ;;  %2731 = vmatprep.subr.bf16.mxu0 %v6176_v34  ;;  %v6223_v33 = vcombine.low %v1138_v15, %v1142_v60  ;;  %v6225_v34 = vcombine.low %v1139_v16, %v1143_v21  ;;  %v6234_v22 = vcombine.high %v1147_v25, %v1151_v29  ;;  %v1190_v9 = vld [vmem:[#allocation10 + $0x7b0] sm:$0xff]  ;;  %v1195_v21 = vld [vmem:[#allocation10 + $0x7d8] sm:$0xff] }
 0x422   :  { %2813 = vmatprep.subr.bf16.mxu1 %v6178_v35  ;;  %v6232_v35 = vcombine.high %v1146_v19, %v1150_v20  ;;  %v1194_v60 = vld [vmem:[#allocation10 + $0x7d0] sm:$0xff] }
 0x423   :  { %v1198_v16 = vld [vmem:[#allocation10 + $0x7f0] sm:$0xff] }
 0x424   :  { %2732 = vmatpush1.bf16.msra.mxu0 %v6175_v39  ;;  %v1159_v39 = vld [vmem:[#allocation10 + $0x6b8] sm:$0xff] }
 0x425   :  { %2814 = vmatpush1.bf16.msra.mxu1 %v6177_v24  ;;  %2733 = vmatprep.subr.bf16.mxu0 %v6184_v40  ;;  %v6231_v24 = vcombine.low %v1146_v19, %v1150_v20  ;;  %v6233_v40 = vcombine.low %v1147_v25, %v1151_v29  ;;  %v6242_v44 = vcombine.high %v1155_v38, %v1159_v39 }
 0x426   :  { %2815 = vmatprep.subr.bf16.mxu1 %v6186_v43  ;;  %v6240_v43 = vcombine.high %v1154_v23, %v1158_v37  ;;  %v6279_v20 = vcombine.low %v1194_v60, %v1198_v16 }
 0x428   :  { %2734 = vmatpush1.bf16.msra.mxu0 %v6183_v36  ;;  %v1167_v36 = vld [vmem:[#allocation10 + $0x6f8] sm:$0xff] }
 0x429   :  { %2816 = vmatpush1.bf16.msra.mxu1 %v6185_v28  ;;  %2735 = vmatprep.subr.bf16.mxu0 %v6192_v30  ;;  %v6239_v28 = vcombine.low %v1154_v23, %v1158_v37  ;;  %v6241_v30 = vcombine.low %v1155_v38, %v1159_v39  ;;  %v6250_v32 = vcombine.high %v1163_v27, %v1167_v36  ;;  %v6853_v39 = vld [vmem:[#allocation12] ss:$16 sps:$4 sm:$0xff]  }
 0x42a   :  { %2817 = vmatprep.subr.bf16.mxu1 %v6194_v31  ;;  %v6248_v31 = vcombine.high %v1162_v49, %v1166_v26 }
 0x42c   :  { %2736 = vmatpush1.bf16.msra.mxu0 %v6191_v55  ;;  %v1175_v55 = vld [vmem:[#allocation10 + $0x738] sm:$0xff] }
 0x42d   :  { %2818 = vmatpush1.bf16.msra.mxu1 %v6193_v57  ;;  %2737 = vmatprep.subr.bf16.mxu0 %v6200_v61  ;;  %v6247_v57 = vcombine.low %v1162_v49, %v1166_v26  ;;  %v6249_v61 = vcombine.low %v1163_v27, %v1167_v36  ;;  %v6258_v63 = vcombine.high %v1171_v54, %v1175_v55  ;;  %v6864_v49 = vld [vmem:[#allocation12 + $0x2c] ss:$16 sps:$4 sm:$0xff]   ;;  %v6862_v26 = vld [vmem:[#allocation12 + $0x28] ss:$16 sps:$4 sm:$0xff]   ;;  %v6867_v27 = vld [vmem:[#allocation12 + $0x44] ss:$16 sps:$4 sm:$0xff]  }
 0x42e   :  { %2819 = vmatprep.subr.bf16.mxu1 %v6202_v62  ;;  %v6256_v62 = vcombine.high %v1170_v52, %v1174_v53  ;;  %v6870_v36 = vld [vmem:[#allocation12 + $0x4c] ss:$16 sps:$4 sm:$0xff]  }
 0x430   :  { %2738 = vmatpush1.bf16.msra.mxu0 %v6199_v2  ;;  %v1183_v2 = vld [vmem:[#allocation10 + $0x778] sm:$0xff] }
 0x431   :  { %2820 = vmatpush1.bf16.msra.mxu1 %v6201_v3  ;;  %2739 = vmatprep.subr.bf16.mxu0 %v6208_v5  ;;  %v6255_v3 = vcombine.low %v1170_v52, %v1174_v53  ;;  %v6257_v5 = vcombine.low %v1171_v54, %v1175_v55  ;;  %v6266_v7 = vcombine.high %v1179_v14, %v1183_v2  ;;  %v6871_v52 = vld [vmem:[#allocation12 + $0x60] ss:$16 sps:$4 sm:$0xff]   ;;  %v6874_v53 = vld [vmem:[#allocation12 + $0x68] ss:$16 sps:$4 sm:$0xff]   ;;  %v6879_v54 = vld [vmem:[#allocation12 + $0x84] ss:$16 sps:$4 sm:$0xff]  }
 0x432   :  { %2821 = vmatprep.subr.bf16.mxu1 %v6210_v6  ;;  %v6264_v6 = vcombine.high %v1178_v0, %v1182_v1  ;;  %v6882_v55 = vld [vmem:[#allocation12 + $0x8c] ss:$16 sps:$4 sm:$0xff]  }
 0x434   :  { %2740 = vmatpush1.bf16.msra.mxu0 %v6207_v11  ;;  %v1191_v11 = vld [vmem:[#allocation10 + $0x7b8] sm:$0xff] }
 0x435   :  { %2822 = vmatpush1.bf16.msra.mxu1 %v6209_v12  ;;  %2741 = vmatprep.subr.bf16.mxu0 %v6216_v13  ;;  %v6263_v12 = vcombine.low %v1178_v0, %v1182_v1  ;;  %v6265_v13 = vcombine.low %v1179_v14, %v1183_v2  ;;  %v6274_v15 = vcombine.high %v1187_v10, %v1191_v11  ;;  %v6883_v0 = vld [vmem:[#allocation12 + $0xa0] ss:$16 sps:$4 sm:$0xff]   ;;  %v6886_v1 = vld [vmem:[#allocation12 + $0xa8] ss:$16 sps:$4 sm:$0xff]   ;;  %v6891_v14 = vld [vmem:[#allocation12 + $0xc4] ss:$16 sps:$4 sm:$0xff]  }
 0x436   :  { %2823 = vmatprep.subr.bf16.mxu1 %v6218_v56  ;;  %v6272_v56 = vcombine.high %v1186_v8, %v1190_v9  ;;  %v6894_v2 = vld [vmem:[#allocation12 + $0xcc] ss:$16 sps:$4 sm:$0xff]  }
 0x438   :  { %2742 = vmatpush1.bf16.msra.mxu0 %v6215_v59  ;;  %v1199_v59 = vld [vmem:[#allocation10 + $0x7f8] sm:$0xff] }
 0x439   :  { %2824 = vmatpush1.bf16.msra.mxu1 %v6217_v17  ;;  %2743 = vmatprep.subr.bf16.mxu0 %v6224_v4  ;;  %v6271_v17 = vcombine.low %v1186_v8, %v1190_v9  ;;  %v6273_v4 = vcombine.low %v1187_v10, %v1191_v11  ;;  %v6282_v19 = vcombine.high %v1195_v21, %v1199_v59  ;;  %v6895_v8 = vld [vmem:[#allocation12 + $0xe0] ss:$16 sps:$4 sm:$0xff]   ;;  %v6898_v9 = vld [vmem:[#allocation12 + $0xe8] ss:$16 sps:$4 sm:$0xff]  }
 0x43a   :  { %2825 = vmatprep.subr.bf16.mxu1 %v6226_v18  ;;  %v6280_v18 = vcombine.high %v1194_v60, %v1198_v16  ;;  %v6281_v25 = vcombine.low %v1195_v21, %v1199_v59  ;;  %v1200_v10 = vld [vmem:[%s8226_s10] sm:$0xff] }
 0x43b   :  { %v1205_v11 = vrot.slane %v1200_v10, %v7867_v41 }
 0x43c   :  { %2744 = vmatpush1.bf16.msra.mxu0 %v6223_v33 }
 0x43d   :  { %2826 = vmatpush1.bf16.msra.mxu1 %v6225_v34  ;;  %2745 = vmatprep.subr.bf16.mxu0 %v6232_v35 }
 0x43e   :  { %2827 = vmatprep.subr.bf16.mxu1 %v6234_v22 }
 0x440   :  { %2746 = vmatpush1.bf16.msra.mxu0 %v6231_v24  ;;  %v6855_v24 = vld [vmem:[#allocation12 + $0x4] ss:$16 sps:$4 sm:$0xff]  }
 0x441   :  { %2828 = vmatpush1.bf16.msra.mxu1 %v6233_v40  ;;  %2747 = vmatprep.subr.bf16.mxu0 %v6240_v43  ;;  %v6856_v40 = vld [vmem:[#allocation12 + $0x8] ss:$16 sps:$4 sm:$0xff]   ;;  %v6858_v43 = vld [vmem:[#allocation12 + $0xc] ss:$16 sps:$4 sm:$0xff]  }
 0x442   :  { %2829 = vmatprep.subr.bf16.mxu1 %v6242_v44  ;;  %v6861_v44 = vld [vmem:[#allocation12 + $0x24] ss:$16 sps:$4 sm:$0xff]  }
 0x444   :  { %2748 = vmatpush1.bf16.msra.mxu0 %v6239_v28  ;;  %v6865_v28 = vld [vmem:[#allocation12 + $0x40] ss:$16 sps:$4 sm:$0xff]  }
 0x445   :  { %2830 = vmatpush1.bf16.msra.mxu1 %v6241_v30  ;;  %2749 = vmatprep.subr.bf16.mxu0 %v6248_v31  ;;  %v6868_v30 = vld [vmem:[#allocation12 + $0x48] ss:$16 sps:$4 sm:$0xff]   ;;  %v6873_v31 = vld [vmem:[#allocation12 + $0x64] ss:$16 sps:$4 sm:$0xff]  }
 0x446   :  { %2831 = vmatprep.subr.bf16.mxu1 %v6250_v32  ;;  %v6876_v32 = vld [vmem:[#allocation12 + $0x6c] ss:$16 sps:$4 sm:$0xff]  }
 0x448   :  { %2750 = vmatpush1.bf16.msra.mxu0 %v6247_v57  ;;  %v6877_v57 = vld [vmem:[#allocation12 + $0x80] ss:$16 sps:$4 sm:$0xff]  }
 0x449   :  { %2832 = vmatpush1.bf16.msra.mxu1 %v6249_v61  ;;  %2751 = vmatprep.subr.bf16.mxu0 %v6256_v62  ;;  %v6880_v61 = vld [vmem:[#allocation12 + $0x88] ss:$16 sps:$4 sm:$0xff]   ;;  %v6885_v62 = vld [vmem:[#allocation12 + $0xa4] ss:$16 sps:$4 sm:$0xff]  }
 0x44a   :  { %2833 = vmatprep.subr.bf16.mxu1 %v6258_v63  ;;  %v6888_v63 = vld [vmem:[#allocation12 + $0xac] ss:$16 sps:$4 sm:$0xff]  }
 0x44c   :  { %2752 = vmatpush1.bf16.msra.mxu0 %v6255_v3  ;;  %v6889_v3 = vld [vmem:[#allocation12 + $0xc0] ss:$16 sps:$4 sm:$0xff]  }
 0x44d   :  { %2834 = vmatpush1.bf16.msra.mxu1 %v6257_v5  ;;  %2753 = vmatprep.subr.bf16.mxu0 %v6264_v6  ;;  %v6892_v5 = vld [vmem:[#allocation12 + $0xc8] ss:$16 sps:$4 sm:$0xff]   ;;  %v6897_v6 = vld [vmem:[#allocation12 + $0xe4] ss:$16 sps:$4 sm:$0xff]  }
 0x44e   :  { %2835 = vmatprep.subr.bf16.mxu1 %v6266_v7  ;;  %v6900_v7 = vld [vmem:[#allocation12 + $0xec] ss:$16 sps:$4 sm:$0xff]  }
 0x450   :  { %2754 = vmatpush1.bf16.msra.mxu0 %v6263_v12  ;;  %v1209_v12 = vrot.slane %v1200_v10, %v7873_v45 }
 0x451   :  { %2836 = vmatpush1.bf16.msra.mxu1 %v6265_v13  ;;  %2755 = vmatprep.subr.bf16.mxu0 %v6272_v56 }
 0x452   :  { %2837 = vmatprep.subr.bf16.mxu1 %v6274_v15  ;;  %v1213_v15 = vrot.slane %v1200_v10, %v7877_v47 }
 0x454   :  { %2756 = vmatpush1.bf16.msra.mxu0 %v6271_v17  ;;  %v1217_v17 = vrot.slane %v1200_v10, %v7881_v50 }
 0x455   :  { %2838 = vmatpush1.bf16.msra.mxu1 %v6273_v4  ;;  %2757 = vmatprep.subr.bf16.mxu0 %v6280_v18 }
 0x456   :  { %2839 = vmatprep.subr.bf16.mxu1 %v6282_v19 }
 0x458   :  { %2758 = vmatpush1.bf16.msra.mxu0 %v6279_v20 }
 0x459   :  { %2840 = vmatpush1.bf16.msra.mxu1 %v6281_v25  ;;  %4581 = vmatprep.subr.bf16.mxu0 %v6855_v24  ;;  %v1221_v25 = vrot.slane %v1200_v10, %v7869_v42  ;;  %v1233_v24 = vrot.slane %v1200_v10, %v7883_v51 }
 0x45a   :  { %4745 = vmatprep.subr.bf16.mxu1 %v6858_v43 }
 0x45b   :  { %2760 = vmatmul.mubr.bf16.vlgmr.msra.gmra.mrb[8].mxu0 %v8000_v58 }
 0x45c   :  { %2842 = vmatmul.mubr.bf16.vlgmr.msra.gmra.mrb[8].mxu1 %v8000_v58  ;;  %4582 = vmatpush1.bf16.msra.mxu0 %v6853_v39  ;;  %v6859_v58 = vld [vmem:[#allocation12 + $0x20] ss:$16 sps:$4 sm:$0xff]  }
 0x45d   :  { %4746 = vmatpush1.bf16.msra.mxu1 %v6856_v40  ;;  %4583 = vmatprep.subr.bf16.mxu0 %v6861_v44 }
 0x45e   :  { %4747 = vmatprep.subr.bf16.mxu1 %v6864_v49 }
 0x460   :  { %4584 = vmatpush1.bf16.msra.mxu0 %v6859_v58 }
 0x461   :  { %4748 = vmatpush1.bf16.msra.mxu1 %v6862_v26  ;;  %4585 = vmatprep.subr.bf16.mxu0 %v6867_v27 }
 0x462   :  { %4749 = vmatprep.subr.bf16.mxu1 %v6870_v36 }
 0x464   :  { %4586 = vmatpush1.bf16.msra.mxu0 %v6865_v28 }
 0x465   :  { %4750 = vmatpush1.bf16.msra.mxu1 %v6868_v30  ;;  %4587 = vmatprep.subr.bf16.mxu0 %v6873_v31 }
 0x466   :  { %4751 = vmatprep.subr.bf16.mxu1 %v6876_v32 }
 0x468   :  { %4588 = vmatpush1.bf16.msra.mxu0 %v6871_v52 }
 0x469   :  { %4752 = vmatpush1.bf16.msra.mxu1 %v6874_v53  ;;  %4589 = vmatprep.subr.bf16.mxu0 %v6879_v54 }
 0x46a   :  { %4753 = vmatprep.subr.bf16.mxu1 %v6882_v55 }
 0x46c   :  { %4590 = vmatpush1.bf16.msra.mxu0 %v6877_v57 }
 0x46d   :  { %4754 = vmatpush1.bf16.msra.mxu1 %v6880_v61  ;;  %4591 = vmatprep.subr.bf16.mxu0 %v6885_v62 }
 0x46e   :  { %4755 = vmatprep.subr.bf16.mxu1 %v6888_v63 }
 0x470   :  { %4592 = vmatpush1.bf16.msra.mxu0 %v6883_v0 }
 0x471   :  { %4756 = vmatpush1.bf16.msra.mxu1 %v6886_v1  ;;  %4593 = vmatprep.subr.bf16.mxu0 %v6891_v14  ;;  %v6901_v1 = vld [vmem:[#allocation12 + $0x100] ss:$16 sps:$4 sm:$0xff]   ;;  %v6903_v14 = vld [vmem:[#allocation12 + $0x104] ss:$16 sps:$4 sm:$0xff]  }
 0x472   :  { %4757 = vmatprep.subr.bf16.mxu1 %v6894_v2  ;;  %v6904_v2 = vld [vmem:[#allocation12 + $0x108] ss:$16 sps:$4 sm:$0xff]  }
 0x474   :  { %4594 = vmatpush1.bf16.msra.mxu0 %v6889_v3  ;;  %v6906_v3 = vld [vmem:[#allocation12 + $0x10c] ss:$16 sps:$4 sm:$0xff]  }
 0x475   :  { %4758 = vmatpush1.bf16.msra.mxu1 %v6892_v5  ;;  %4595 = vmatprep.subr.bf16.mxu0 %v6897_v6  ;;  %v6909_v5 = vld [vmem:[#allocation12 + $0x124] ss:$16 sps:$4 sm:$0xff]   ;;  %v6912_v6 = vld [vmem:[#allocation12 + $0x12c] ss:$16 sps:$4 sm:$0xff]  }
 0x476   :  { %4759 = vmatprep.subr.bf16.mxu1 %v6900_v7  ;;  %v6907_v7 = vld [vmem:[#allocation12 + $0x120] ss:$16 sps:$4 sm:$0xff]  }
 0x478   :  { %4596 = vmatpush1.bf16.msra.mxu0 %v6895_v8  ;;  %v6910_v8 = vld [vmem:[#allocation12 + $0x128] ss:$16 sps:$4 sm:$0xff]  }
 0x479   :  { %4760 = vmatpush1.bf16.msra.mxu1 %v6898_v9  ;;  %4597 = vmatprep.subr.bf16.mxu0 %v6903_v14  ;;  %v6915_v9 = vld [vmem:[#allocation12 + $0x144] ss:$16 sps:$4 sm:$0xff]  }
 0x47a   :  { %4761 = vmatprep.subr.bf16.mxu1 %v6906_v3 }
 0x47c   :  { %4598 = vmatpush1.bf16.msra.mxu0 %v6901_v1 }
 0x47d   :  { %4762 = vmatpush1.bf16.msra.mxu1 %v6904_v2  ;;  %4599 = vmatprep.subr.bf16.mxu0 %v6909_v5 }
 0x47e   :  { %4763 = vmatprep.subr.bf16.mxu1 %v6912_v6 }
 0x480   :  { %4600 = vmatpush1.bf16.msra.mxu0 %v6907_v7 }
 0x481   :  { %4764 = vmatpush1.bf16.msra.mxu1 %v6910_v8  ;;  %4601 = vmatprep.subr.bf16.mxu0 %v6915_v9 }
 0x4ae   :  { %v8012_v29 = vpop.f32.mrb[4].mxu0  ;;  %v8014_v33 = vpop.f32.mrb[4].mxu1 }
 0x4af   :  { %v8016_v34 = vpop.f32.mrb[5].mxu0  ;;  %v8018_v35 = vpop.f32.mrb[5].mxu1  ;;  %v8026_v13 = vadd.f32 %v8012_v29, %v1205_v11  ;;  %v8037_v21 = vadd.f32 %v8014_v33, %v1213_v15  ;;  %v1225_v29 = vrot.slane %v1200_v10, %v7875_v46  ;;  %v6913_v11 = vld [vmem:[#allocation12 + $0x140] ss:$16 sps:$4 sm:$0xff]   ;;  %v6921_v15 = vld [vmem:[#allocation12 + $0x164] ss:$16 sps:$4 sm:$0xff]  }
 0x4b0   :  { %v2601_v22 = vpop.f32.mrb[6].mxu0  ;;  %v2683_v23 = vpop.f32.mrb[6].mxu1  ;;  %v8029_v56 = vadd.f32 %v8016_v34, %v1209_v12  ;;  %v8045_v19 = vadd.f32 %v8018_v35, %v1217_v17  ;;  %v1229_v34 = vrot.slane %v1200_v10, %v7879_v48  ;;  %v6918_v10 = vld [vmem:[#allocation12 + $0x14c] ss:$16 sps:$4 sm:$0xff]   ;;  %v6916_v12 = vld [vmem:[#allocation12 + $0x148] ss:$16 sps:$4 sm:$0xff]   ;;  %4602 = vmatpush1.bf16.msra.mxu0 %v6913_v11 }
 0x4b1   :  { %v2602_v37 = vpop.f32.mrb[7].mxu0  ;;  %v2684_v38 = vpop.f32.mrb[7].mxu1  ;;  %v2862_v60 = vmul.f32 %v8026_v13, %v8026_v13  ;;  %v2864_v18 = vmul.f32 %v8037_v21, %v8037_v21  ;;  %4765 = vmatprep.subr.bf16.mxu1 %v6918_v10  ;;  %4603 = vmatprep.subr.bf16.mxu0 %v6921_v15  ;;  %v6927_v17 = vld [vmem:[#allocation12 + $0x184] ss:$16 sps:$4 sm:$0xff]  }
 0x4b2   :  { %v2863_v16 = vmul.f32 %v8029_v56, %v8029_v56  ;;  %v2852_v59 = vadd.f32 %v8029_v56, %v8026_v13  ;;  %v2865_v37 = vmul.f32 %v8045_v19, %v8045_v19  ;;  %4766 = vmatpush1.bf16.msra.mxu1 %v6916_v12 }
 0x4b4   :  { %v2870_v4 = vadd.f32 %v2863_v16, %v2862_v60  ;;  %v2853_v20 = vadd.f32 %v8037_v21, %v2852_v59  ;;  %v6924_v60 = vld [vmem:[#allocation12 + $0x16c] ss:$16 sps:$4 sm:$0xff]   ;;  %v6919_v16 = vld [vmem:[#allocation12 + $0x160] ss:$16 sps:$4 sm:$0xff]   ;;  %v6922_v59 = vld [vmem:[#allocation12 + $0x168] ss:$16 sps:$4 sm:$0xff]  }
 0x4b5   :  { %4767 = vmatprep.subr.bf16.mxu1 %v6924_v60  ;;  %4604 = vmatpush1.bf16.msra.mxu0 %v6919_v16 }
 0x4b6   :  { %v2871_v33 = vadd.f32 %v2870_v4, %v2864_v18  ;;  %v2854_v23 = vadd.f32 %v8045_v19, %v2853_v20  ;;  %v6930_v4 = vld [vmem:[#allocation12 + $0x18c] ss:$16 sps:$4 sm:$0xff]   ;;  %4768 = vmatpush1.bf16.msra.mxu1 %v6922_v59  ;;  %v6925_v18 = vld [vmem:[#allocation12 + $0x180] ss:$16 sps:$4 sm:$0xff]   ;;  %v6928_v20 = vld [vmem:[#allocation12 + $0x188] ss:$16 sps:$4 sm:$0xff]   ;;  %4605 = vmatprep.subr.bf16.mxu0 %v6927_v17 }
 0x4b7   :  { %4769 = vmatprep.subr.bf16.mxu1 %v6930_v4 }
 0x4b8   :  { %v2872_v49 = vadd.f32 %v2871_v33, %v2865_v37  ;;  %v6931_v33 = vld [vmem:[#allocation12 + $0x1a0] ss:$16 sps:$4 sm:$0xff]  }
 0x4b9   :  { %4606 = vmatpush1.bf16.msra.mxu0 %v6925_v18  ;;  %v6937_v37 = vld [vmem:[#allocation12 + $0x1c0] ss:$16 sps:$4 sm:$0xff]  }
 0x4ba   :  { %4770 = vmatpush1.bf16.msra.mxu1 %v6928_v20 }
 0x52e   :  { %v2761_v22 = vpop.f32.mrb[8].mxu0 }
 0x52f   :  { %v8054_v38 = vadd.f32 %v2761_v22, %v1221_v25  ;;  %v2843_v39 = vpop.f32.mrb[8].mxu1  ;;  %v2763_v35 = vpop.f32.mrb[9].mxu0  ;;  %v6933_v25 = vld [vmem:[#allocation12 + $0x1a4] ss:$16 sps:$4 sm:$0xff]  }
 0x530   :  { %v8057_v40 = vadd.f32 %v2763_v35, %v1225_v29  ;;  %v2845_v43 = vpop.f32.mrb[9].mxu1  ;;  %v2765_v44 = vpop.f32.mrb[10].mxu0  ;;  %v8062_v27 = vadd.f32 %v2843_v39, %v1229_v34  ;;  %v6936_v29 = vld [vmem:[#allocation12 + $0x1ac] ss:$16 sps:$4 sm:$0xff]   ;;  %v6934_v34 = vld [vmem:[#allocation12 + $0x1a8] ss:$16 sps:$4 sm:$0xff]   ;;  %4607 = vmatprep.subr.bf16.mxu0 %v6933_v25 }
 0x531   :  { %v2855_v58 = vadd.f32 %v8054_v38, %v2854_v23  ;;  %v2866_v26 = vmul.f32 %v8054_v38, %v8054_v38  ;;  %v2847_v36 = vpop.f32.mrb[10].mxu1  ;;  %v2766_v28 = vpop.f32.mrb[11].mxu0  ;;  %v8067_v53 = vadd.f32 %v2845_v43, %v1233_v24  ;;  %4771 = vmatprep.subr.bf16.mxu1 %v6936_v29  ;;  %v6939_v22 = vld [vmem:[#allocation12 + $0x1c4] ss:$16 sps:$4 sm:$0xff]   ;;  %v6942_v23 = vld [vmem:[#allocation12 + $0x1cc] ss:$16 sps:$4 sm:$0xff]   ;;  %4608 = vmatpush1.bf16.msra.mxu0 %v6931_v33 }
 0x532   :  { %v2867_v30 = vmul.f32 %v8057_v40, %v8057_v40  ;;  %v2848_v31 = vpop.f32.mrb[11].mxu1  ;;  %v2868_v54 = vmul.f32 %v8062_v27, %v8062_v27  ;;  %4772 = vmatpush1.bf16.msra.mxu1 %v6934_v34  ;;  %v6940_v39 = vld [vmem:[#allocation12 + $0x1c8] ss:$16 sps:$4 sm:$0xff]   ;;  %4609 = vmatprep.subr.bf16.mxu0 %v6939_v22  ;;  %v6945_v35 = vld [vmem:[#allocation12 + $0x1e4] ss:$16 sps:$4 sm:$0xff]  }
 0x533   :  { %v2873_v32 = vadd.f32 %v2872_v49, %v2866_v26  ;;  %v2856_v52 = vadd.f32 %v8057_v40, %v2855_v58  ;;  %v2869_v62 = vmul.f32 %v8067_v53, %v8067_v53  ;;  %4773 = vmatprep.subr.bf16.mxu1 %v6942_v23  ;;  %v6948_v24 = vld [vmem:[#allocation12 + $0x1ec] ss:$16 sps:$4 sm:$0xff]   ;;  %v6943_v43 = vld [vmem:[#allocation12 + $0x1e0] ss:$16 sps:$4 sm:$0xff]   ;;  %v6946_v44 = vld [vmem:[#allocation12 + $0x1e8] ss:$16 sps:$4 sm:$0xff]  }
 0x534   :  { %v6951_v49 = vld [vmem:[#allocation12 + $0x204] ss:$16 sps:$4 sm:$0xff]   ;;  %v6954_v58 = vld [vmem:[#allocation12 + $0x20c] ss:$16 sps:$4 sm:$0xff]  }
 0x535   :  { %v2857_v55 = vadd.f32 %v8062_v27, %v2856_v52  ;;  %v2874_v57 = vadd.f32 %v2873_v32, %v2867_v30  ;;  %4610 = vmatpush1.bf16.msra.mxu0 %v6937_v37 }
 0x536   :  { %4774 = vmatpush1.bf16.msra.mxu1 %v6940_v39  ;;  %4611 = vmatprep.subr.bf16.mxu0 %v6945_v35 }
 0x537   :  { %v2858_v61 = vadd.f32 %v8067_v53, %v2857_v55  ;;  %v2875_v63 = vadd.f32 %v2874_v57, %v2868_v54  ;;  %4775 = vmatprep.subr.bf16.mxu1 %v6948_v24  ;;  %v2850_v55 = vld [vmem:[%s8227_s11] sm:$0xff] }
 0x538   :  { %v2851_v57 = vld [vmem:[%s8228_s12] sm:$0xff]  ;;  %v2909_v1 = vrot.slane %v2850_v55, %v7875_v46  ;;  %v2905_v14 = vrot.slane %v2850_v55, %v7869_v42  ;;  %v2917_v2 = vrot.slane %v2850_v55, %v7883_v51  ;;  %v2913_v3 = vrot.slane %v2850_v55, %v7879_v48 }
 0x539   :  { %2859 = vadd.xlane.f32.xlu0 %v2858_v61  ;;  %v2876_v0 = vadd.f32 %v2875_v63, %v2869_v62  ;;  %4612 = vmatpush1.bf16.msra.mxu0 %v6943_v43  ;;  %v2893_v61 = vrot.slane %v2850_v55, %v7873_v45  ;;  %v2889_v62 = vrot.slane %v2850_v55, %v7867_v41 }
 0x53a   :  { %4776 = vmatpush1.bf16.msra.mxu1 %v6946_v44  ;;  %4622 = vmatprep.subr.bf16.mxu0 %v6951_v49  ;;  %v2901_v63 = vrot.slane %v2850_v55, %v7881_v50  ;;  %v2958_v5 = vrot.slane %v2851_v57, %v7873_v45  ;;  %v2954_v6 = vrot.slane %v2851_v57, %v7867_v41 }
 0x53b   :  { %2877 = vadd.xlane.f32.xlu1 %v2876_v0  ;;  %4786 = vmatprep.subr.bf16.mxu1 %v6954_v58  ;;  %v2897_v0 = vrot.slane %v2850_v55, %v7877_v47  ;;  %v2966_v7 = vrot.slane %v2851_v57, %v7881_v50  ;;  %v2962_v8 = vrot.slane %v2851_v57, %v7877_v47 }
 0x53c   :  { %v2974_v9 = vrot.slane %v2851_v57, %v7875_v46  ;;  %v2970_v10 = vrot.slane %v2851_v57, %v7869_v42  ;;  %v2982_v11 = vrot.slane %v2851_v57, %v7883_v51  ;;  %v2978_v12 = vrot.slane %v2851_v57, %v7879_v48  ;;  %v6957_v57 = vld [vmem:[#allocation12 + $0x224] ss:$16 sps:$4 sm:$0xff]  }
 0x5c6   :  { %v2860_v26 = vpop.xlane.xlu0 %2859 }
 0x5c7   :  { %v2861_v36 = vmul.f32 0.0009765625, %v2860_v26 }
 0x5c8   :  { %v2878_v28 = vpop.xlane.xlu1 %2877 }
 0x5c9   :  { %v2879_v30 = vmul.f32 0.0009765625, %v2878_v28  ;;  %v2880_v31 = vmul.f32 %v2861_v36, %v2861_v36  ;;  %v2935_v15 = vsub.f32 %v8029_v56, %v2861_v36  ;;  %v2934_v60 = vsub.f32 %v8026_v13, %v2861_v36 }
 0x5ca   :  { %v2937_v16 = vsub.f32 %v8045_v19, %v2861_v36  ;;  %v2936_v59 = vsub.f32 %v8037_v21, %v2861_v36  ;;  %v2939_v4 = vsub.f32 %v8057_v40, %v2861_v36  ;;  %v2938_v18 = vsub.f32 %v8054_v38, %v2861_v36 }
 0x5cb   :  { %v2881_v32 = vsub.f32 %v2879_v30, %v2880_v31  ;;  %v2941_v46 = vsub.f32 %v8067_v53, %v2861_v36  ;;  %v2940_v42 = vsub.f32 %v8062_v27, %v2861_v36 }
 0x5cd   :  { %v2882_v52 = vmax.f32 %v2881_v32, 0.0 }
 0x5cf   :  { %v2883_v54 = vadd.f32 1e-05, %v2882_v52  ;;  %v6949_v52 = vld [vmem:[#allocation12 + $0x200] ss:$16 sps:$4 sm:$0xff]  }
 0x5d1   :  { %7401 = vrsqrt.f32 %v2883_v54  ;;  %v6952_v54 = vld [vmem:[#allocation12 + $0x208] ss:$16 sps:$4 sm:$0xff]  }
 0x5db   :  { %v7402_v17 = vpop.eup %7401 }
 0x5dc   :  { %v2927_v51 = vmul.f32 %v7402_v17, %v2893_v61  ;;  %v2926_v20 = vmul.f32 %v7402_v17, %v2889_v62  ;;  %v2929_v48 = vmul.f32 %v7402_v17, %v2901_v63  ;;  %v2928_v25 = vmul.f32 %v7402_v17, %v2897_v0  ;;  %v6960_v61 = vld [vmem:[#allocation12 + $0x22c] ss:$16 sps:$4 sm:$0xff]   ;;  %v6955_v63 = vld [vmem:[#allocation12 + $0x220] ss:$16 sps:$4 sm:$0xff]   ;;  %v6958_v0 = vld [vmem:[#allocation12 + $0x228] ss:$16 sps:$4 sm:$0xff]  }
 0x5dd   :  { %v2931_v56 = vmul.f32 %v7402_v17, %v2909_v1  ;;  %v2930_v29 = vmul.f32 %v7402_v17, %v2905_v14  ;;  %v2933_v13 = vmul.f32 %v7402_v17, %v2917_v2  ;;  %v2932_v33 = vmul.f32 %v7402_v17, %v2913_v3  ;;  %v6963_v1 = vld [vmem:[#allocation12 + $0x244] ss:$16 sps:$4 sm:$0xff]   ;;  %v6966_v14 = vld [vmem:[#allocation12 + $0x24c] ss:$16 sps:$4 sm:$0xff]   ;;  %v6961_v2 = vld [vmem:[#allocation12 + $0x240] ss:$16 sps:$4 sm:$0xff]  }
 0x5de   :  { %v2943_v19 = vmul.f32 %v2935_v15, %v2927_v51  ;;  %v2942_v34 = vmul.f32 %v2934_v60, %v2926_v20  ;;  %v2945_v21 = vmul.f32 %v2937_v16, %v2929_v48  ;;  %v2944_v22 = vmul.f32 %v2936_v59, %v2928_v25  ;;  %v6964_v3 = vld [vmem:[#allocation12 + $0x248] ss:$16 sps:$4 sm:$0xff]   ;;  %v6981_v15 = vld [vmem:[#allocation12 + $0x2a4] ss:$16 sps:$4 sm:$0xff]   ;;  %v6984_v60 = vld [vmem:[#allocation12 + $0x2ac] ss:$16 sps:$4 sm:$0xff]  }
 0x5df   :  { %v2947_v23 = vmul.f32 %v2939_v4, %v2931_v56  ;;  %v2946_v40 = vmul.f32 %v2938_v18, %v2930_v29  ;;  %v2949_v37 = vmul.f32 %v2941_v46, %v2933_v13  ;;  %v2948_v38 = vmul.f32 %v2940_v42, %v2932_v33  ;;  %v6979_v16 = vld [vmem:[#allocation12 + $0x2a0] ss:$16 sps:$4 sm:$0xff]   ;;  %v6982_v59 = vld [vmem:[#allocation12 + $0x2a8] ss:$16 sps:$4 sm:$0xff]   ;;  %v6987_v17 = vld [vmem:[#allocation12 + $0x2c4] ss:$16 sps:$4 sm:$0xff]  }
 0x5e0   :  { %v2992_v39 = vadd.f32 %v2958_v5, %v2943_v19  ;;  %v2991_v53 = vadd.f32 %v2954_v6, %v2942_v34  ;;  %v2994_v35 = vadd.f32 %v2966_v7, %v2945_v21  ;;  %v8105_v27 = vadd.f32 %v2962_v8, %v2944_v22  ;;  %v6969_v5 = vld [vmem:[#allocation12 + $0x264] ss:$16 sps:$4 sm:$0xff]   ;;  %v6972_v6 = vld [vmem:[#allocation12 + $0x26c] ss:$16 sps:$4 sm:$0xff]   ;;  %v6967_v7 = vld [vmem:[#allocation12 + $0x260] ss:$16 sps:$4 sm:$0xff]  }
 0x5e1   :  { %v8107_v24 = vadd.f32 %v2974_v9, %v2947_v23  ;;  %v8109_v43 = vadd.f32 %v2970_v10, %v2946_v40  ;;  %v8111_v44 = vadd.f32 %v2982_v11, %v2949_v37  ;;  %v8113_v49 = vadd.f32 %v2978_v12, %v2948_v38  ;;  %v6970_v8 = vld [vmem:[#allocation12 + $0x268] ss:$16 sps:$4 sm:$0xff]   ;;  %v6975_v9 = vld [vmem:[#allocation12 + $0x284] ss:$16 sps:$4 sm:$0xff]   ;;  %v6978_v10 = vld [vmem:[#allocation12 + $0x28c] ss:$16 sps:$4 sm:$0xff]  }
 0x5e2   :  { %v3000_v58 = vmul.f32 0.2, %v2992_v39  ;;  %v2999_v26 = vmul.f32 0.2, %v2991_v53  ;;  %v3002_v36 = vmul.f32 0.2, %v2994_v35 }
 0x5e3   :  { %v6973_v11 = vld [vmem:[#allocation12 + $0x280] ss:$16 sps:$4 sm:$0xff]   ;;  %v6976_v12 = vld [vmem:[#allocation12 + $0x288] ss:$16 sps:$4 sm:$0xff]   ;;  %v6990_v4 = vld [vmem:[#allocation12 + $0x2cc] ss:$16 sps:$4 sm:$0xff]  }
 0x5e4   :  { %v3008_v28 = vmax.f32 %v2992_v39, %v3000_v58  ;;  %v3007_v30 = vmax.f32 %v2991_v53, %v2999_v26  ;;  %v3010_v31 = vmax.f32 %v2994_v35, %v3002_v36  ;;  %v6985_v18 = vld [vmem:[#allocation12 + $0x2c0] ss:$16 sps:$4 sm:$0xff]   ;;  %v6988_v46 = vld [vmem:[#allocation12 + $0x2c8] ss:$16 sps:$4 sm:$0xff]   ;;  %v6993_v42 = vld [vmem:[#allocation12 + $0x2e4] ss:$16 sps:$4 sm:$0xff]  }
 0x5e5   :  { %v6996_v51 = vld [vmem:[#allocation12 + $0x2ec] ss:$16 sps:$4 sm:$0xff]   ;;  %v6991_v20 = vld [vmem:[#allocation12 + $0x2e0] ss:$16 sps:$4 sm:$0xff]   ;;  %v6994_v48 = vld [vmem:[#allocation12 + $0x2e8] ss:$16 sps:$4 sm:$0xff]  }
 0x5e6   :  { %v3016_v32 = vpack.c.bf16 %v3008_v28, %v3008_v28  ;;  %v3015_v55 = vpack.c.bf16 %v3007_v30, %v3007_v30  ;;  %v3018_v62 = vpack.c.bf16 %v3010_v31, %v3010_v31  ;;  %v6999_v25 = vld [vmem:[#allocation12 + $0x304] ss:$16 sps:$4 sm:$0xff]   ;;  %v7002_v56 = vld [vmem:[#allocation12 + $0x30c] ss:$16 sps:$4 sm:$0xff]   ;;  %v6997_v29 = vld [vmem:[#allocation12 + $0x300] ss:$16 sps:$4 sm:$0xff]  }
 0x5e7   :  { %v7000_v13 = vld [vmem:[#allocation12 + $0x308] ss:$16 sps:$4 sm:$0xff]   ;;  %v7005_v33 = vld [vmem:[#allocation12 + $0x324] ss:$16 sps:$4 sm:$0xff]   ;;  %v7008_v19 = vld [vmem:[#allocation12 + $0x32c] ss:$16 sps:$4 sm:$0xff]  }
 0x5e8   :  { %4613 = vmatprep.mubr.bf16.mxu0 %v3016_v32  ;;  %4777 = vmatprep.mubr.bf16.mxu1 %v3016_v32  ;;  %v7003_v34 = vld [vmem:[#allocation12 + $0x320] ss:$16 sps:$4 sm:$0xff]   ;;  %v7006_v21 = vld [vmem:[#allocation12 + $0x328] ss:$16 sps:$4 sm:$0xff]   ;;  %v7011_v22 = vld [vmem:[#allocation12 + $0x344] ss:$16 sps:$4 sm:$0xff]  }
 0x5e9   :  { %4614 = vmatmul.mubr.bf16.vlgmr.msra.gmra.mrb[12].mxu0 %v3015_v55  ;;  %4778 = vmatmul.mubr.bf16.vlgmr.msra.gmra.mrb[12].mxu1 %v3015_v55  ;;  %v7014_v23 = vld [vmem:[#allocation12 + $0x34c] ss:$16 sps:$4 sm:$0xff]   ;;  %v7009_v40 = vld [vmem:[#allocation12 + $0x340] ss:$16 sps:$4 sm:$0xff]   ;;  %v7012_v37 = vld [vmem:[#allocation12 + $0x348] ss:$16 sps:$4 sm:$0xff]  }
 0x5ea   :  { %4623 = vmatpush1.bf16.msra.mxu0 %v6949_v52  ;;  %4787 = vmatpush1.bf16.msra.mxu1 %v6952_v54  ;;  %v7017_v38 = vld [vmem:[#allocation12 + $0x364] ss:$16 sps:$4 sm:$0xff]   ;;  %v7020_v39 = vld [vmem:[#allocation12 + $0x36c] ss:$16 sps:$4 sm:$0xff]   ;;  %v7015_v53 = vld [vmem:[#allocation12 + $0x360] ss:$16 sps:$4 sm:$0xff]  }
 0x5eb   :  { %4654 = vmatprep.mubr.bf16.mxu0 %v3018_v62  ;;  %4818 = vmatprep.mubr.bf16.mxu1 %v3018_v62  ;;  %v7018_v35 = vld [vmem:[#allocation12 + $0x368] ss:$16 sps:$4 sm:$0xff]   ;;  %v7023_v58 = vld [vmem:[#allocation12 + $0x384] ss:$16 sps:$4 sm:$0xff]   ;;  %v7026_v26 = vld [vmem:[#allocation12 + $0x38c] ss:$16 sps:$4 sm:$0xff]  }
 0x5ec   :  { %4624 = vmatprep.subr.bf16.mxu0 %v6957_v57  ;;  %4788 = vmatprep.subr.bf16.mxu1 %v6960_v61  ;;  %v7021_v36 = vld [vmem:[#allocation12 + $0x380] ss:$16 sps:$4 sm:$0xff]   ;;  %v7024_v28 = vld [vmem:[#allocation12 + $0x388] ss:$16 sps:$4 sm:$0xff]   ;;  %v7029_v30 = vld [vmem:[#allocation12 + $0x3a4] ss:$16 sps:$4 sm:$0xff]  }
 0x5ed   :  { %v7032_v31 = vld [vmem:[#allocation12 + $0x3ac] ss:$16 sps:$4 sm:$0xff]   ;;  %v7027_v32 = vld [vmem:[#allocation12 + $0x3a0] ss:$16 sps:$4 sm:$0xff]   ;;  %v7030_v52 = vld [vmem:[#allocation12 + $0x3a8] ss:$16 sps:$4 sm:$0xff]  }
 0x5ee   :  { %4625 = vmatpush1.bf16.msra.mxu0 %v6955_v63  ;;  %4789 = vmatpush1.bf16.msra.mxu1 %v6958_v0  ;;  %v7035_v54 = vld [vmem:[#allocation12 + $0x3c4] ss:$16 sps:$4 sm:$0xff]   ;;  %v7038_v55 = vld [vmem:[#allocation12 + $0x3cc] ss:$16 sps:$4 sm:$0xff]   ;;  %v7033_v57 = vld [vmem:[#allocation12 + $0x3c0] ss:$16 sps:$4 sm:$0xff]  }
 0x5ef   :  { %4626 = vmatprep.subr.bf16.mxu0 %v6963_v1  ;;  %4790 = vmatprep.subr.bf16.mxu1 %v6966_v14  ;;  %v7036_v61 = vld [vmem:[#allocation12 + $0x3c8] ss:$16 sps:$4 sm:$0xff]   ;;  %v7041_v62 = vld [vmem:[#allocation12 + $0x3e4] ss:$16 sps:$4 sm:$0xff]   ;;  %v7044_v63 = vld [vmem:[#allocation12 + $0x3ec] ss:$16 sps:$4 sm:$0xff]  }
 0x5f0   :  { %v3001_v0 = vmul.f32 0.2, %v8105_v27  ;;  %v3004_v1 = vmul.f32 0.2, %v8107_v24  ;;  %v7039_v14 = vld [vmem:[#allocation12 + $0x3e0] ss:$16 sps:$4 sm:$0xff]  }
 0x5f2   :  { %4627 = vmatpush1.bf16.msra.mxu0 %v6961_v2  ;;  %4791 = vmatpush1.bf16.msra.mxu1 %v6964_v3  ;;  %v7042_v2 = vld [vmem:[#allocation12 + $0x3e8] ss:$16 sps:$4 sm:$0xff]   ;;  %v3009_v3 = vmax.f32 %v8105_v27, %v3001_v0  ;;  %v7122_v0 = vld [vmem:[#allocation12 + $0x58c] ss:$16 sps:$4 sm:$0xff]  }
 0x5f3   :  { %4628 = vmatprep.subr.bf16.mxu0 %v6969_v5  ;;  %4792 = vmatprep.subr.bf16.mxu1 %v6972_v6  ;;  %v7047_v5 = vld [vmem:[#allocation12 + $0x404] ss:$16 sps:$4 sm:$0xff]   ;;  %v7050_v6 = vld [vmem:[#allocation12 + $0x40c] ss:$16 sps:$4 sm:$0xff]   ;;  %v7054_v27 = vld [vmem:[#allocation12 + $0x428] ss:$16 sps:$4 sm:$0xff]  }
 0x5f6   :  { %4629 = vmatpush1.bf16.msra.mxu0 %v6967_v7  ;;  %4793 = vmatpush1.bf16.msra.mxu1 %v6970_v8  ;;  %v3012_v7 = vmax.f32 %v8107_v24, %v3004_v1  ;;  %v7045_v8 = vld [vmem:[#allocation12 + $0x400] ss:$16 sps:$4 sm:$0xff]   ;;  %v7062_v24 = vld [vmem:[#allocation12 + $0x44c] ss:$16 sps:$4 sm:$0xff]  }
 0x5f7   :  { %4630 = vmatprep.subr.bf16.mxu0 %v6975_v9  ;;  %4794 = vmatprep.subr.bf16.mxu1 %v6978_v10  ;;  %v3017_v9 = vpack.c.bf16 %v3009_v3, %v3009_v3  ;;  %v7048_v10 = vld [vmem:[#allocation12 + $0x408] ss:$16 sps:$4 sm:$0xff]   ;;  %v7117_v1 = vld [vmem:[#allocation12 + $0x580] ss:$16 sps:$4 sm:$0xff]   ;;  %v7128_v3 = vld [vmem:[#allocation12 + $0x5ac] ss:$16 sps:$4 sm:$0xff]  }
 0x5fa   :  { %4631 = vmatpush1.bf16.msra.mxu0 %v6973_v11  ;;  %4795 = vmatpush1.bf16.msra.mxu1 %v6976_v12  ;;  %v3020_v11 = vpack.c.bf16 %v3012_v7, %v3012_v7  ;;  %v7053_v12 = vld [vmem:[#allocation12 + $0x424] ss:$16 sps:$4 sm:$0xff]  }
 0x5fb   :  { %4632 = vmatprep.subr.bf16.mxu0 %v6981_v15  ;;  %4796 = vmatprep.subr.bf16.mxu1 %v6984_v60  ;;  %v7056_v15 = vld [vmem:[#allocation12 + $0x42c] ss:$16 sps:$4 sm:$0xff]   ;;  %v7051_v60 = vld [vmem:[#allocation12 + $0x420] ss:$16 sps:$4 sm:$0xff]   ;;  %v7131_v7 = vld [vmem:[#allocation12 + $0x5c4] ss:$16 sps:$4 sm:$0xff]  }
 0x5fe   :  { %4633 = vmatpush1.bf16.msra.mxu0 %v6979_v16  ;;  %4797 = vmatpush1.bf16.msra.mxu1 %v6982_v59  ;;  %v7059_v16 = vld [vmem:[#allocation12 + $0x444] ss:$16 sps:$4 sm:$0xff]   ;;  %v7057_v59 = vld [vmem:[#allocation12 + $0x440] ss:$16 sps:$4 sm:$0xff]  }
 0x5ff   :  { %4634 = vmatprep.subr.bf16.mxu0 %v6987_v17  ;;  %4798 = vmatprep.subr.bf16.mxu1 %v6990_v4  ;;  %v7060_v17 = vld [vmem:[#allocation12 + $0x448] ss:$16 sps:$4 sm:$0xff]   ;;  %v7065_v4 = vld [vmem:[#allocation12 + $0x464] ss:$16 sps:$4 sm:$0xff]  }
 0x602   :  { %4635 = vmatpush1.bf16.msra.mxu0 %v6985_v18  ;;  %4799 = vmatpush1.bf16.msra.mxu1 %v6988_v46  ;;  %v7068_v18 = vld [vmem:[#allocation12 + $0x46c] ss:$16 sps:$4 sm:$0xff]   ;;  %v7063_v46 = vld [vmem:[#allocation12 + $0x460] ss:$16 sps:$4 sm:$0xff]  }
 0x603   :  { %4636 = vmatprep.subr.bf16.mxu0 %v6993_v42  ;;  %4800 = vmatprep.subr.bf16.mxu1 %v6996_v51  ;;  %v7066_v42 = vld [vmem:[#allocation12 + $0x468] ss:$16 sps:$4 sm:$0xff]   ;;  %v7071_v51 = vld [vmem:[#allocation12 + $0x484] ss:$16 sps:$4 sm:$0xff]  }
 0x606   :  { %4637 = vmatpush1.bf16.msra.mxu0 %v6991_v20  ;;  %4801 = vmatpush1.bf16.msra.mxu1 %v6994_v48  ;;  %v7074_v20 = vld [vmem:[#allocation12 + $0x48c] ss:$16 sps:$4 sm:$0xff]   ;;  %v7069_v48 = vld [vmem:[#allocation12 + $0x480] ss:$16 sps:$4 sm:$0xff]  }
 0x607   :  { %4638 = vmatprep.subr.bf16.mxu0 %v6999_v25  ;;  %4802 = vmatprep.subr.bf16.mxu1 %v7002_v56  ;;  %v7072_v25 = vld [vmem:[#allocation12 + $0x488] ss:$16 sps:$4 sm:$0xff]   ;;  %v7077_v56 = vld [vmem:[#allocation12 + $0x4a4] ss:$16 sps:$4 sm:$0xff]  }
 0x60a   :  { %4639 = vmatpush1.bf16.msra.mxu0 %v6997_v29  ;;  %4803 = vmatpush1.bf16.msra.mxu1 %v7000_v13  ;;  %v7080_v29 = vld [vmem:[#allocation12 + $0x4ac] ss:$16 sps:$4 sm:$0xff]   ;;  %v7075_v13 = vld [vmem:[#allocation12 + $0x4a0] ss:$16 sps:$4 sm:$0xff]  }
 0x60b   :  { %4640 = vmatprep.subr.bf16.mxu0 %v7005_v33  ;;  %4804 = vmatprep.subr.bf16.mxu1 %v7008_v19  ;;  %v7078_v33 = vld [vmem:[#allocation12 + $0x4a8] ss:$16 sps:$4 sm:$0xff]   ;;  %v7083_v19 = vld [vmem:[#allocation12 + $0x4c4] ss:$16 sps:$4 sm:$0xff]  }
 0x60e   :  { %4641 = vmatpush1.bf16.msra.mxu0 %v7003_v34  ;;  %4805 = vmatpush1.bf16.msra.mxu1 %v7006_v21  ;;  %v7086_v34 = vld [vmem:[#allocation12 + $0x4cc] ss:$16 sps:$4 sm:$0xff]   ;;  %v7081_v21 = vld [vmem:[#allocation12 + $0x4c0] ss:$16 sps:$4 sm:$0xff]  }
 0x60f   :  { %4642 = vmatprep.subr.bf16.mxu0 %v7011_v22  ;;  %4806 = vmatprep.subr.bf16.mxu1 %v7014_v23  ;;  %v7084_v22 = vld [vmem:[#allocation12 + $0x4c8] ss:$16 sps:$4 sm:$0xff]   ;;  %v7089_v23 = vld [vmem:[#allocation12 + $0x4e4] ss:$16 sps:$4 sm:$0xff]  }
 0x612   :  { %4643 = vmatpush1.bf16.msra.mxu0 %v7009_v40  ;;  %4807 = vmatpush1.bf16.msra.mxu1 %v7012_v37  ;;  %v7092_v40 = vld [vmem:[#allocation12 + $0x4ec] ss:$16 sps:$4 sm:$0xff]   ;;  %v7087_v37 = vld [vmem:[#allocation12 + $0x4e0] ss:$16 sps:$4 sm:$0xff]  }
 0x613   :  { %4644 = vmatprep.subr.bf16.mxu0 %v7017_v38  ;;  %4808 = vmatprep.subr.bf16.mxu1 %v7020_v39  ;;  %v7090_v38 = vld [vmem:[#allocation12 + $0x4e8] ss:$16 sps:$4 sm:$0xff]   ;;  %v7095_v39 = vld [vmem:[#allocation12 + $0x504] ss:$16 sps:$4 sm:$0xff]  }
 0x616   :  { %4645 = vmatpush1.bf16.msra.mxu0 %v7015_v53  ;;  %4809 = vmatpush1.bf16.msra.mxu1 %v7018_v35  ;;  %v7098_v53 = vld [vmem:[#allocation12 + $0x50c] ss:$16 sps:$4 sm:$0xff]   ;;  %v7093_v35 = vld [vmem:[#allocation12 + $0x500] ss:$16 sps:$4 sm:$0xff]  }
 0x617   :  { %4646 = vmatprep.subr.bf16.mxu0 %v7023_v58  ;;  %4810 = vmatprep.subr.bf16.mxu1 %v7026_v26  ;;  %v7096_v58 = vld [vmem:[#allocation12 + $0x508] ss:$16 sps:$4 sm:$0xff]   ;;  %v7101_v26 = vld [vmem:[#allocation12 + $0x524] ss:$16 sps:$4 sm:$0xff]  }
 0x61a   :  { %4647 = vmatpush1.bf16.msra.mxu0 %v7021_v36  ;;  %4811 = vmatpush1.bf16.msra.mxu1 %v7024_v28  ;;  %v7104_v36 = vld [vmem:[#allocation12 + $0x52c] ss:$16 sps:$4 sm:$0xff]   ;;  %v7099_v28 = vld [vmem:[#allocation12 + $0x520] ss:$16 sps:$4 sm:$0xff]  }
 0x61b   :  { %4648 = vmatprep.subr.bf16.mxu0 %v7029_v30  ;;  %4812 = vmatprep.subr.bf16.mxu1 %v7032_v31  ;;  %v7102_v30 = vld [vmem:[#allocation12 + $0x528] ss:$16 sps:$4 sm:$0xff]   ;;  %v7107_v31 = vld [vmem:[#allocation12 + $0x544] ss:$16 sps:$4 sm:$0xff]  }
 0x61e   :  { %4649 = vmatpush1.bf16.msra.mxu0 %v7027_v32  ;;  %4813 = vmatpush1.bf16.msra.mxu1 %v7030_v52  ;;  %v7110_v32 = vld [vmem:[#allocation12 + $0x54c] ss:$16 sps:$4 sm:$0xff]   ;;  %v7105_v52 = vld [vmem:[#allocation12 + $0x540] ss:$16 sps:$4 sm:$0xff]  }
 0x61f   :  { %4650 = vmatprep.subr.bf16.mxu0 %v7035_v54  ;;  %4814 = vmatprep.subr.bf16.mxu1 %v7038_v55  ;;  %v7108_v54 = vld [vmem:[#allocation12 + $0x548] ss:$16 sps:$4 sm:$0xff]   ;;  %v7113_v55 = vld [vmem:[#allocation12 + $0x564] ss:$16 sps:$4 sm:$0xff]  }
 0x622   :  { %4651 = vmatpush1.bf16.msra.mxu0 %v7033_v57  ;;  %4815 = vmatpush1.bf16.msra.mxu1 %v7036_v61  ;;  %v7116_v57 = vld [vmem:[#allocation12 + $0x56c] ss:$16 sps:$4 sm:$0xff]   ;;  %v7111_v61 = vld [vmem:[#allocation12 + $0x560] ss:$16 sps:$4 sm:$0xff]  }
 0x623   :  { %4652 = vmatprep.subr.bf16.mxu0 %v7041_v62  ;;  %4816 = vmatprep.subr.bf16.mxu1 %v7044_v63  ;;  %v7114_v62 = vld [vmem:[#allocation12 + $0x568] ss:$16 sps:$4 sm:$0xff]   ;;  %v7119_v63 = vld [vmem:[#allocation12 + $0x584] ss:$16 sps:$4 sm:$0xff]  }
 0x626   :  { %4653 = vmatpush1.bf16.msra.mxu0 %v7039_v14  ;;  %4817 = vmatpush1.bf16.msra.mxu1 %v7042_v2  ;;  %v7120_v14 = vld [vmem:[#allocation12 + $0x588] ss:$16 sps:$4 sm:$0xff]   ;;  %v7125_v2 = vld [vmem:[#allocation12 + $0x5a4] ss:$16 sps:$4 sm:$0xff]  }
 0x627   :  { %4663 = vmatprep.subr.bf16.mxu0 %v7047_v5  ;;  %4827 = vmatprep.subr.bf16.mxu1 %v7050_v6  ;;  %v7123_v5 = vld [vmem:[#allocation12 + $0x5a0] ss:$16 sps:$4 sm:$0xff]   ;;  %v7126_v6 = vld [vmem:[#allocation12 + $0x5a8] ss:$16 sps:$4 sm:$0xff]  }
 0x629   :  { %4655 = vmatmul.mubr.bf16.vlgmr.msra.gmra.mrb[12].mxu0 %v3017_v9  ;;  %4819 = vmatmul.mubr.bf16.vlgmr.msra.gmra.mrb[12].mxu1 %v3017_v9  ;;  %v7129_v9 = vld [vmem:[#allocation12 + $0x5c0] ss:$16 sps:$4 sm:$0xff]  }
 0x62a   :  { %4664 = vmatpush1.bf16.msra.mxu0 %v7045_v8  ;;  %4695 = vmatprep.mubr.bf16.mxu0 %v3020_v11  ;;  %v7134_v8 = vld [vmem:[#allocation12 + $0x5cc] ss:$16 sps:$4 sm:$0xff]  }
 0x62b   :  { %4828 = vmatpush1.bf16.msra.mxu1 %v7048_v10  ;;  %4859 = vmatprep.mubr.bf16.mxu1 %v3020_v11  ;;  %v7132_v10 = vld [vmem:[#allocation12 + $0x5c8] ss:$16 sps:$4 sm:$0xff]   ;;  %v7137_v11 = vld [vmem:[#allocation12 + $0x5e4] ss:$16 sps:$4 sm:$0xff]  }
 0x62c   :  { %4665 = vmatprep.subr.bf16.mxu0 %v7053_v12  ;;  %4829 = vmatprep.subr.bf16.mxu1 %v7056_v15  ;;  %v3003_v12 = vmul.f32 0.2, %v8109_v43  ;;  %v7140_v15 = vld [vmem:[#allocation12 + $0x5ec] ss:$16 sps:$4 sm:$0xff]  }
 0x62e   :  { %4666 = vmatpush1.bf16.msra.mxu0 %v7051_v60  ;;  %v3006_v60 = vmul.f32 0.2, %v8111_v44 }
 0x62f   :  { %4830 = vmatpush1.bf16.msra.mxu1 %v7054_v27  ;;  %4667 = vmatprep.subr.bf16.mxu0 %v7059_v16  ;;  %v7135_v27 = vld [vmem:[#allocation12 + $0x5e0] ss:$16 sps:$4 sm:$0xff]   ;;  %v7138_v16 = vld [vmem:[#allocation12 + $0x5e8] ss:$16 sps:$4 sm:$0xff]  }
 0x630   :  { %4831 = vmatprep.subr.bf16.mxu1 %v7062_v24  ;;  %v3011_v24 = vmax.f32 %v8109_v43, %v3003_v12  ;;  %v7150_v43 = vld [vmem:[#allocation12 + $0x628] ss:$16 sps:$4 sm:$0xff]   ;;  %v7213_v12 = vld [vmem:[#allocation12 + $0x780] ss:$16 sps:$4 sm:$0xff]  }
 0x632   :  { %4668 = vmatpush1.bf16.msra.mxu0 %v7057_v59  ;;  %v7143_v59 = vld [vmem:[#allocation12 + $0x604] ss:$16 sps:$4 sm:$0xff]  }
 0x633   :  { %4832 = vmatpush1.bf16.msra.mxu1 %v7060_v17  ;;  %4669 = vmatprep.subr.bf16.mxu0 %v7065_v4  ;;  %v7146_v17 = vld [vmem:[#allocation12 + $0x60c] ss:$16 sps:$4 sm:$0xff]   ;;  %v3014_v4 = vmax.f32 %v8111_v44, %v3006_v60  ;;  %v7221_v60 = vld [vmem:[#allocation12 + $0x7a4] ss:$16 sps:$4 sm:$0xff]  }
 0x634   :  { %4833 = vmatprep.subr.bf16.mxu1 %v7068_v18  ;;  %v7141_v18 = vld [vmem:[#allocation12 + $0x600] ss:$16 sps:$4 sm:$0xff]   ;;  %v7158_v44 = vld [vmem:[#allocation12 + $0x64c] ss:$16 sps:$4 sm:$0xff]  }
 0x636   :  { %4670 = vmatpush1.bf16.msra.mxu0 %v7063_v46  ;;  %v3019_v46 = vpack.c.bf16 %v3011_v24, %v3011_v24  ;;  %v7222_v24 = vld [vmem:[#allocation12 + $0x7a8] ss:$16 sps:$4 sm:$0xff]  }
 0x637   :  { %4834 = vmatpush1.bf16.msra.mxu1 %v7066_v42  ;;  %4671 = vmatprep.subr.bf16.mxu0 %v7071_v51  ;;  %v7144_v42 = vld [vmem:[#allocation12 + $0x608] ss:$16 sps:$4 sm:$0xff]   ;;  %v7149_v51 = vld [vmem:[#allocation12 + $0x624] ss:$16 sps:$4 sm:$0xff]  }
 0x638   :  { %4835 = vmatprep.subr.bf16.mxu1 %v7074_v20  ;;  %v3022_v20 = vpack.c.bf16 %v3014_v4, %v3014_v4  ;;  %v7225_v4 = vld [vmem:[#allocation12 + $0x7c0] ss:$16 sps:$4 sm:$0xff]  }
 0x63a   :  { %4672 = vmatpush1.bf16.msra.mxu0 %v7069_v48  ;;  %v7152_v48 = vld [vmem:[#allocation12 + $0x62c] ss:$16 sps:$4 sm:$0xff]  }
 0x63b   :  { %4836 = vmatpush1.bf16.msra.mxu1 %v7072_v25  ;;  %4673 = vmatprep.subr.bf16.mxu0 %v7077_v56  ;;  %v7147_v25 = vld [vmem:[#allocation12 + $0x620] ss:$16 sps:$4 sm:$0xff]   ;;  %v7155_v56 = vld [vmem:[#allocation12 + $0x644] ss:$16 sps:$4 sm:$0xff]  }
 0x63c   :  { %4837 = vmatprep.subr.bf16.mxu1 %v7080_v29  ;;  %v7153_v29 = vld [vmem:[#allocation12 + $0x640] ss:$16 sps:$4 sm:$0xff]  }
 0x63e   :  { %4674 = vmatpush1.bf16.msra.mxu0 %v7075_v13  ;;  %v7156_v13 = vld [vmem:[#allocation12 + $0x648] ss:$16 sps:$4 sm:$0xff]  }
 0x63f   :  { %4838 = vmatpush1.bf16.msra.mxu1 %v7078_v33  ;;  %4675 = vmatprep.subr.bf16.mxu0 %v7083_v19  ;;  %v7161_v33 = vld [vmem:[#allocation12 + $0x664] ss:$16 sps:$4 sm:$0xff]   ;;  %v7164_v19 = vld [vmem:[#allocation12 + $0x66c] ss:$16 sps:$4 sm:$0xff]  }
 0x640   :  { %4839 = vmatprep.subr.bf16.mxu1 %v7086_v34  ;;  %v7159_v34 = vld [vmem:[#allocation12 + $0x660] ss:$16 sps:$4 sm:$0xff]  }
 0x642   :  { %4676 = vmatpush1.bf16.msra.mxu0 %v7081_v21  ;;  %v7162_v21 = vld [vmem:[#allocation12 + $0x668] ss:$16 sps:$4 sm:$0xff]  }
 0x643   :  { %4840 = vmatpush1.bf16.msra.mxu1 %v7084_v22  ;;  %4677 = vmatprep.subr.bf16.mxu0 %v7089_v23  ;;  %v7167_v22 = vld [vmem:[#allocation12 + $0x684] ss:$16 sps:$4 sm:$0xff]   ;;  %v7170_v23 = vld [vmem:[#allocation12 + $0x68c] ss:$16 sps:$4 sm:$0xff]  }
 0x644   :  { %4841 = vmatprep.subr.bf16.mxu1 %v7092_v40  ;;  %v7165_v40 = vld [vmem:[#allocation12 + $0x680] ss:$16 sps:$4 sm:$0xff]  }
 0x646   :  { %4678 = vmatpush1.bf16.msra.mxu0 %v7087_v37  ;;  %v7168_v37 = vld [vmem:[#allocation12 + $0x688] ss:$16 sps:$4 sm:$0xff]  }
 0x647   :  { %4842 = vmatpush1.bf16.msra.mxu1 %v7090_v38  ;;  %4679 = vmatprep.subr.bf16.mxu0 %v7095_v39  ;;  %v7173_v38 = vld [vmem:[#allocation12 + $0x6a4] ss:$16 sps:$4 sm:$0xff]   ;;  %v7176_v39 = vld [vmem:[#allocation12 + $0x6ac] ss:$16 sps:$4 sm:$0xff]  }
 0x648   :  { %4843 = vmatprep.subr.bf16.mxu1 %v7098_v53  ;;  %v7171_v53 = vld [vmem:[#allocation12 + $0x6a0] ss:$16 sps:$4 sm:$0xff]  }
 0x64a   :  { %4680 = vmatpush1.bf16.msra.mxu0 %v7093_v35  ;;  %v7174_v35 = vld [vmem:[#allocation12 + $0x6a8] ss:$16 sps:$4 sm:$0xff]  }
 0x64b   :  { %4844 = vmatpush1.bf16.msra.mxu1 %v7096_v58  ;;  %4681 = vmatprep.subr.bf16.mxu0 %v7101_v26  ;;  %v7179_v58 = vld [vmem:[#allocation12 + $0x6c4] ss:$16 sps:$4 sm:$0xff]   ;;  %v7182_v26 = vld [vmem:[#allocation12 + $0x6cc] ss:$16 sps:$4 sm:$0xff]  }
 0x64c   :  { %4845 = vmatprep.subr.bf16.mxu1 %v7104_v36  ;;  %v7177_v36 = vld [vmem:[#allocation12 + $0x6c0] ss:$16 sps:$4 sm:$0xff]  }
 0x64e   :  { %4682 = vmatpush1.bf16.msra.mxu0 %v7099_v28  ;;  %v7180_v28 = vld [vmem:[#allocation12 + $0x6c8] ss:$16 sps:$4 sm:$0xff]  }
 0x64f   :  { %4846 = vmatpush1.bf16.msra.mxu1 %v7102_v30  ;;  %4683 = vmatprep.subr.bf16.mxu0 %v7107_v31  ;;  %v7185_v30 = vld [vmem:[#allocation12 + $0x6e4] ss:$16 sps:$4 sm:$0xff]   ;;  %v7188_v31 = vld [vmem:[#allocation12 + $0x6ec] ss:$16 sps:$4 sm:$0xff]  }
 0x650   :  { %4847 = vmatprep.subr.bf16.mxu1 %v7110_v32  ;;  %v7183_v32 = vld [vmem:[#allocation12 + $0x6e0] ss:$16 sps:$4 sm:$0xff]  }
 0x652   :  { %4684 = vmatpush1.bf16.msra.mxu0 %v7105_v52  ;;  %v7186_v52 = vld [vmem:[#allocation12 + $0x6e8] ss:$16 sps:$4 sm:$0xff]  }
 0x653   :  { %4848 = vmatpush1.bf16.msra.mxu1 %v7108_v54  ;;  %4685 = vmatprep.subr.bf16.mxu0 %v7113_v55  ;;  %v7191_v54 = vld [vmem:[#allocation12 + $0x704] ss:$16 sps:$4 sm:$0xff]   ;;  %v7194_v55 = vld [vmem:[#allocation12 + $0x70c] ss:$16 sps:$4 sm:$0xff]  }
 0x654   :  { %4849 = vmatprep.subr.bf16.mxu1 %v7116_v57  ;;  %v7189_v57 = vld [vmem:[#allocation12 + $0x700] ss:$16 sps:$4 sm:$0xff]  }
 0x656   :  { %4686 = vmatpush1.bf16.msra.mxu0 %v7111_v61  ;;  %v7192_v61 = vld [vmem:[#allocation12 + $0x708] ss:$16 sps:$4 sm:$0xff]  }
 0x657   :  { %4850 = vmatpush1.bf16.msra.mxu1 %v7114_v62  ;;  %4687 = vmatprep.subr.bf16.mxu0 %v7119_v63  ;;  %v7197_v62 = vld [vmem:[#allocation12 + $0x724] ss:$16 sps:$4 sm:$0xff]   ;;  %v7200_v63 = vld [vmem:[#allocation12 + $0x72c] ss:$16 sps:$4 sm:$0xff]  }
 0x658   :  { %4851 = vmatprep.subr.bf16.mxu1 %v7122_v0  ;;  %v7195_v0 = vld [vmem:[#allocation12 + $0x720] ss:$16 sps:$4 sm:$0xff]  }
 0x65a   :  { %4688 = vmatpush1.bf16.msra.mxu0 %v7117_v1  ;;  %v7198_v1 = vld [vmem:[#allocation12 + $0x728] ss:$16 sps:$4 sm:$0xff]  }
 0x65b   :  { %4852 = vmatpush1.bf16.msra.mxu1 %v7120_v14  ;;  %4689 = vmatprep.subr.bf16.mxu0 %v7125_v2  ;;  %v7203_v14 = vld [vmem:[#allocation12 + $0x744] ss:$16 sps:$4 sm:$0xff]   ;;  %v7206_v2 = vld [vmem:[#allocation12 + $0x74c] ss:$16 sps:$4 sm:$0xff]  }
 0x65c   :  { %4853 = vmatprep.subr.bf16.mxu1 %v7128_v3  ;;  %v7201_v3 = vld [vmem:[#allocation12 + $0x740] ss:$16 sps:$4 sm:$0xff]  }
 0x65e   :  { %4690 = vmatpush1.bf16.msra.mxu0 %v7123_v5  ;;  %v7204_v5 = vld [vmem:[#allocation12 + $0x748] ss:$16 sps:$4 sm:$0xff]  }
 0x65f   :  { %4854 = vmatpush1.bf16.msra.mxu1 %v7126_v6  ;;  %4691 = vmatprep.subr.bf16.mxu0 %v7131_v7  ;;  %v7209_v6 = vld [vmem:[#allocation12 + $0x764] ss:$16 sps:$4 sm:$0xff]   ;;  %v7212_v7 = vld [vmem:[#allocation12 + $0x76c] ss:$16 sps:$4 sm:$0xff]  }
 0x660   :  { %4855 = vmatprep.subr.bf16.mxu1 %v7134_v8  ;;  %v7207_v8 = vld [vmem:[#allocation12 + $0x760] ss:$16 sps:$4 sm:$0xff]  }
 0x662   :  { %4692 = vmatpush1.bf16.msra.mxu0 %v7129_v9  ;;  %v7210_v9 = vld [vmem:[#allocation12 + $0x768] ss:$16 sps:$4 sm:$0xff]  }
 0x663   :  { %4856 = vmatpush1.bf16.msra.mxu1 %v7132_v10  ;;  %4693 = vmatprep.subr.bf16.mxu0 %v7137_v11  ;;  %v7215_v10 = vld [vmem:[#allocation12 + $0x784] ss:$16 sps:$4 sm:$0xff]   ;;  %v7218_v11 = vld [vmem:[#allocation12 + $0x78c] ss:$16 sps:$4 sm:$0xff]  }
 0x664   :  { %4857 = vmatprep.subr.bf16.mxu1 %v7140_v15  ;;  %v7216_v15 = vld [vmem:[#allocation12 + $0x788] ss:$16 sps:$4 sm:$0xff]  }
 0x666   :  { %4694 = vmatpush1.bf16.msra.mxu0 %v7135_v27  ;;  %v7224_v27 = vld [vmem:[#allocation12 + $0x7ac] ss:$16 sps:$4 sm:$0xff]  }
 0x667   :  { %4858 = vmatpush1.bf16.msra.mxu1 %v7138_v16  ;;  %4704 = vmatprep.subr.bf16.mxu0 %v7143_v59  ;;  %v7219_v16 = vld [vmem:[#allocation12 + $0x7a0] ss:$16 sps:$4 sm:$0xff]   ;;  %v7227_v59 = vld [vmem:[#allocation12 + $0x7c4] ss:$16 sps:$4 sm:$0xff]  }
 0x668   :  { %4868 = vmatprep.subr.bf16.mxu1 %v7146_v17  ;;  %v7230_v17 = vld [vmem:[#allocation12 + $0x7cc] ss:$16 sps:$4 sm:$0xff]  }
 0x669   :  { %4696 = vmatmul.mubr.bf16.vlgmr.msra.gmra.mrb[12].mxu0 %v3019_v46 }
 0x66a   :  { %4860 = vmatmul.mubr.bf16.vlgmr.msra.gmra.mrb[12].mxu1 %v3019_v46  ;;  %4705 = vmatpush1.bf16.msra.mxu0 %v7141_v18  ;;  %v7228_v18 = vld [vmem:[#allocation12 + $0x7c8] ss:$16 sps:$4 sm:$0xff]   ;;  %v7233_v46 = vld [vmem:[#allocation12 + $0x7e4] ss:$16 sps:$4 sm:$0xff]  }
 0x66b   :  { %4736 = vmatprep.mubr.bf16.mxu0 %v3022_v20  ;;  %4869 = vmatpush1.bf16.msra.mxu1 %v7144_v42  ;;  %v3005_v42 = vmul.f32 0.2, %v8113_v49 }
 0x66c   :  { %4900 = vmatprep.mubr.bf16.mxu1 %v3022_v20  ;;  %4706 = vmatprep.subr.bf16.mxu0 %v7149_v51  ;;  %v7236_v51 = vld [vmem:[#allocation12 + $0x7ec] ss:$16 sps:$4 sm:$0xff]   ;;  %v7231_v20 = vld [vmem:[#allocation12 + $0x7e0] ss:$16 sps:$4 sm:$0xff]  }
 0x66d   :  { %4870 = vmatprep.subr.bf16.mxu1 %v7152_v48  ;;  %v7234_v48 = vld [vmem:[#allocation12 + $0x7e8] ss:$16 sps:$4 sm:$0xff]  }
 0x66e   :  { %4707 = vmatpush1.bf16.msra.mxu0 %v7147_v25  ;;  %v3013_v25 = vmax.f32 %v8113_v49, %v3005_v42  ;;  %v7246_v49 = vld [vmem:[#allocation13 + $0x30] ss:$8 sps:$4 sm:$0xff]  }
 0x66f   :  { %4871 = vmatpush1.bf16.msra.mxu1 %v7150_v43  ;;  %4708 = vmatprep.subr.bf16.mxu0 %v7155_v56  ;;  %v7237_v56 = vld [vmem:[#allocation13] ss:$8 sps:$4 sm:$0xff]   ;;  %v7276_v42 = vld [vmem:[#allocation13 + $0xd0] ss:$8 sps:$4 sm:$0xff]  }
 0x670   :  { %4872 = vmatprep.subr.bf16.mxu1 %v7158_v44  ;;  %v3021_v43 = vpack.c.bf16 %v3013_v25, %v3013_v25  ;;  %v7239_v44 = vld [vmem:[#allocation13 + $0x4] ss:$8 sps:$4 sm:$0xff]   ;;  %v7282_v25 = vld [vmem:[#allocation13 + $0xf0] ss:$8 sps:$4 sm:$0xff]  }
 0x672   :  { %4709 = vmatpush1.bf16.msra.mxu0 %v7153_v29  ;;  %v7242_v29 = vld [vmem:[#allocation13 + $0x14] ss:$8 sps:$4 sm:$0xff]  }
 0x673   :  { %4873 = vmatpush1.bf16.msra.mxu1 %v7156_v13  ;;  %4710 = vmatprep.subr.bf16.mxu0 %v7161_v33  ;;  %v7240_v13 = vld [vmem:[#allocation13 + $0x10] ss:$8 sps:$4 sm:$0xff]   ;;  %v7245_v33 = vld [vmem:[#allocation13 + $0x24] ss:$8 sps:$4 sm:$0xff]  }
 0x674   :  { %4874 = vmatprep.subr.bf16.mxu1 %v7164_v19  ;;  %v7243_v19 = vld [vmem:[#allocation13 + $0x20] ss:$8 sps:$4 sm:$0xff]  }
 0x676   :  { %4711 = vmatpush1.bf16.msra.mxu0 %v7159_v34  ;;  %v7248_v34 = vld [vmem:[#allocation13 + $0x34] ss:$8 sps:$4 sm:$0xff]  }
 0x677   :  { %4875 = vmatpush1.bf16.msra.mxu1 %v7162_v21  ;;  %4712 = vmatprep.subr.bf16.mxu0 %v7167_v22  ;;  %v7251_v21 = vld [vmem:[#allocation13 + $0x44] ss:$8 sps:$4 sm:$0xff]   ;;  %v7249_v22 = vld [vmem:[#allocation13 + $0x40] ss:$8 sps:$4 sm:$0xff]  }
 0x678   :  { %4876 = vmatprep.subr.bf16.mxu1 %v7170_v23  ;;  %v7254_v23 = vld [vmem:[#allocation13 + $0x54] ss:$8 sps:$4 sm:$0xff]  }
 0x67a   :  { %4713 = vmatpush1.bf16.msra.mxu0 %v7165_v40  ;;  %v7252_v40 = vld [vmem:[#allocation13 + $0x50] ss:$8 sps:$4 sm:$0xff]  }
 0x67b   :  { %4877 = vmatpush1.bf16.msra.mxu1 %v7168_v37  ;;  %4714 = vmatprep.subr.bf16.mxu0 %v7173_v38  ;;  %v7257_v37 = vld [vmem:[#allocation13 + $0x64] ss:$8 sps:$4 sm:$0xff]   ;;  %v7255_v38 = vld [vmem:[#allocation13 + $0x60] ss:$8 sps:$4 sm:$0xff]  }
 0x67c   :  { %4878 = vmatprep.subr.bf16.mxu1 %v7176_v39  ;;  %v7260_v39 = vld [vmem:[#allocation13 + $0x74] ss:$8 sps:$4 sm:$0xff]  }
 0x67e   :  { %4715 = vmatpush1.bf16.msra.mxu0 %v7171_v53  ;;  %v7258_v53 = vld [vmem:[#allocation13 + $0x70] ss:$8 sps:$4 sm:$0xff]  }
 0x67f   :  { %4879 = vmatpush1.bf16.msra.mxu1 %v7174_v35  ;;  %4716 = vmatprep.subr.bf16.mxu0 %v7179_v58  ;;  %v3279_v35 = vld [vmem:[%s8230_s14] sm:$0xf] }
 0x680   :  { %4880 = vmatprep.subr.bf16.mxu1 %v7182_v26  ;;  %v3284_v58 = vrot.slane %v3279_v35, %v7867_v41  ;;  %v3292_v26 = vrot.slane %v3279_v35, %v7877_v47 }
 0x682   :  { %4717 = vmatpush1.bf16.msra.mxu0 %v7177_v36  ;;  %v3288_v36 = vrot.slane %v3279_v35, %v7873_v45 }
 0x683   :  { %4881 = vmatpush1.bf16.msra.mxu1 %v7180_v28  ;;  %4718 = vmatprep.subr.bf16.mxu0 %v7185_v30  ;;  %v3296_v30 = vrot.slane %v3279_v35, %v7881_v50 }
 0x684   :  { %4882 = vmatprep.subr.bf16.mxu1 %v7188_v31 }
 0x686   :  { %4719 = vmatpush1.bf16.msra.mxu0 %v7183_v32 }
 0x687   :  { %4883 = vmatpush1.bf16.msra.mxu1 %v7186_v52  ;;  %4720 = vmatprep.subr.bf16.mxu0 %v7191_v54 }
 0x688   :  { %4884 = vmatprep.subr.bf16.mxu1 %v7194_v55 }
 0x68a   :  { %4721 = vmatpush1.bf16.msra.mxu0 %v7189_v57 }
 0x68b   :  { %4885 = vmatpush1.bf16.msra.mxu1 %v7192_v61  ;;  %4722 = vmatprep.subr.bf16.mxu0 %v7197_v62 }
 0x68c   :  { %4886 = vmatprep.subr.bf16.mxu1 %v7200_v63 }
 0x68e   :  { %4723 = vmatpush1.bf16.msra.mxu0 %v7195_v0 }
 0x68f   :  { %4887 = vmatpush1.bf16.msra.mxu1 %v7198_v1  ;;  %4724 = vmatprep.subr.bf16.mxu0 %v7203_v14 }
 0x690   :  { %4888 = vmatprep.subr.bf16.mxu1 %v7206_v2 }
 0x692   :  { %4725 = vmatpush1.bf16.msra.mxu0 %v7201_v3 }
 0x693   :  { %4889 = vmatpush1.bf16.msra.mxu1 %v7204_v5  ;;  %4726 = vmatprep.subr.bf16.mxu0 %v7209_v6 }
 0x694   :  { %4890 = vmatprep.subr.bf16.mxu1 %v7212_v7 }
 0x696   :  { %4727 = vmatpush1.bf16.msra.mxu0 %v7207_v8 }
 0x697   :  { %4891 = vmatpush1.bf16.msra.mxu1 %v7210_v9  ;;  %4728 = vmatprep.subr.bf16.mxu0 %v7215_v10 }
 0x698   :  { %4892 = vmatprep.subr.bf16.mxu1 %v7218_v11 }
 0x69a   :  { %4729 = vmatpush1.bf16.msra.mxu0 %v7213_v12  ;;  %v7261_v12 = vld [vmem:[#allocation13 + $0x80] ss:$8 sps:$4 sm:$0xff]  }
 0x69b   :  { %4893 = vmatpush1.bf16.msra.mxu1 %v7216_v15  ;;  %4730 = vmatprep.subr.bf16.mxu0 %v7221_v60  ;;  %v7263_v15 = vld [vmem:[#allocation13 + $0x84] ss:$8 sps:$4 sm:$0xff]   ;;  %v7266_v60 = vld [vmem:[#allocation13 + $0x94] ss:$8 sps:$4 sm:$0xff]  }
 0x69c   :  { %4894 = vmatprep.subr.bf16.mxu1 %v7224_v27  ;;  %v7264_v27 = vld [vmem:[#allocation13 + $0x90] ss:$8 sps:$4 sm:$0xff]  }
 0x69e   :  { %4731 = vmatpush1.bf16.msra.mxu0 %v7219_v16  ;;  %v7267_v16 = vld [vmem:[#allocation13 + $0xa0] ss:$8 sps:$4 sm:$0xff]  }
 0x69f   :  { %4895 = vmatpush1.bf16.msra.mxu1 %v7222_v24  ;;  %4732 = vmatprep.subr.bf16.mxu0 %v7227_v59  ;;  %v7269_v24 = vld [vmem:[#allocation13 + $0xa4] ss:$8 sps:$4 sm:$0xff]   ;;  %v7272_v59 = vld [vmem:[#allocation13 + $0xb4] ss:$8 sps:$4 sm:$0xff]  }
 0x6a0   :  { %4896 = vmatprep.subr.bf16.mxu1 %v7230_v17  ;;  %v7270_v17 = vld [vmem:[#allocation13 + $0xb0] ss:$8 sps:$4 sm:$0xff]  }
 0x6a2   :  { %4733 = vmatpush1.bf16.msra.mxu0 %v7225_v4  ;;  %v7275_v4 = vld [vmem:[#allocation13 + $0xc4] ss:$8 sps:$4 sm:$0xff]  }
 0x6a3   :  { %4897 = vmatpush1.bf16.msra.mxu1 %v7228_v18  ;;  %4734 = vmatprep.subr.bf16.mxu0 %v7233_v46  ;;  %v7273_v18 = vld [vmem:[#allocation13 + $0xc0] ss:$8 sps:$4 sm:$0xff]   ;;  %v7278_v46 = vld [vmem:[#allocation13 + $0xd4] ss:$8 sps:$4 sm:$0xff]  }
 0x6a4   :  { %4898 = vmatprep.subr.bf16.mxu1 %v7236_v51  ;;  %v7281_v51 = vld [vmem:[#allocation13 + $0xe4] ss:$8 sps:$4 sm:$0xff]  }
 0x6a6   :  { %4735 = vmatpush1.bf16.msra.mxu0 %v7231_v20  ;;  %v7279_v20 = vld [vmem:[#allocation13 + $0xe0] ss:$8 sps:$4 sm:$0xff]  }
 0x6a7   :  { %4899 = vmatpush1.bf16.msra.mxu1 %v7234_v48  ;;  %5398 = vmatprep.subr.bf16.mxu0 %v7239_v44  ;;  %v7284_v48 = vld [vmem:[#allocation13 + $0xf4] ss:$8 sps:$4 sm:$0xff]  }
 0x6a9   :  { %4737 = vmatmul.mubr.bf16.vlgmr.msra.gmra.mrb[12].mxu0 %v3021_v43 }
 0x6aa   :  { %4901 = vmatmul.mubr.bf16.vlgmr.msra.gmra.mrb[12].mxu1 %v3021_v43  ;;  %5399 = vmatpush1.bf16.msra.mxu0 %v7237_v56  ;;  %v7287_v43 = vld [vmem:[#allocation13 + $0x104] ss:$8 sps:$4 sm:$0xff]  }
 0x6ab   :  { %5400 = vmatprep.subr.bf16.mxu0 %v7242_v29 }
 0x6ae   :  { %5401 = vmatpush1.bf16.msra.mxu0 %v7240_v13 }
 0x6af   :  { %5402 = vmatprep.subr.bf16.mxu0 %v7245_v33 }
 0x6b2   :  { %5403 = vmatpush1.bf16.msra.mxu0 %v7243_v19 }
 0x6b3   :  { %5404 = vmatprep.subr.bf16.mxu0 %v7248_v34 }
 0x6b6   :  { %5405 = vmatpush1.bf16.msra.mxu0 %v7246_v49 }
 0x6b7   :  { %5406 = vmatprep.subr.bf16.mxu0 %v7251_v21  ;;  %v4909_v21 = vld [vmem:[%s8231_s15] sm:$0xf] }
 0x6ba   :  { %5407 = vmatpush1.bf16.msra.mxu0 %v7249_v22  ;;  %v4910_v22 = vld [vmem:[%s8232_s16] sm:$0xf] }
 0x6bb   :  { %5408 = vmatprep.subr.bf16.mxu0 %v7254_v23  ;;  %v4940_v23 = vrot.slane %v4909_v21, %v7873_v45  ;;  %v4981_v35 = vrot.slane %v4910_v22, %v7881_v50 }
 0x6be   :  { %5409 = vmatpush1.bf16.msra.mxu0 %v7252_v40  ;;  %v4936_v40 = vrot.slane %v4909_v21, %v7867_v41 }
 0x6bf   :  { %5410 = vmatprep.subr.bf16.mxu0 %v7257_v37  ;;  %v4948_v37 = vrot.slane %v4909_v21, %v7881_v50 }
 0x6c2   :  { %5411 = vmatpush1.bf16.msra.mxu0 %v7255_v38  ;;  %v4944_v38 = vrot.slane %v4909_v21, %v7877_v47  ;;  %v7326_v21 = vld [vmem:[#allocation13 + $0x1d4] ss:$8 sps:$4 sm:$0xff]  }
 0x6c3   :  { %5412 = vmatprep.subr.bf16.mxu0 %v7260_v39  ;;  %v4973_v39 = vrot.slane %v4910_v22, %v7873_v45 }
 0x6c6   :  { %5413 = vmatpush1.bf16.msra.mxu0 %v7258_v53  ;;  %v4969_v53 = vrot.slane %v4910_v22, %v7867_v41 }
 0x6c7   :  { %5414 = vmatprep.subr.bf16.mxu0 %v7263_v15 }
 0x6ca   :  { %5415 = vmatpush1.bf16.msra.mxu0 %v7261_v12  ;;  %v7290_v12 = vld [vmem:[#allocation13 + $0x114] ss:$8 sps:$4 sm:$0xff]  }
 0x6cb   :  { %5416 = vmatprep.subr.bf16.mxu0 %v7266_v60  ;;  %v7288_v60 = vld [vmem:[#allocation13 + $0x110] ss:$8 sps:$4 sm:$0xff]  }
 0x6ce   :  { %5417 = vmatpush1.bf16.msra.mxu0 %v7264_v27  ;;  %v7293_v27 = vld [vmem:[#allocation13 + $0x124] ss:$8 sps:$4 sm:$0xff]  }
 0x6cf   :  { %5418 = vmatprep.subr.bf16.mxu0 %v7269_v24  ;;  %v7296_v24 = vld [vmem:[#allocation13 + $0x134] ss:$8 sps:$4 sm:$0xff]  }
 0x6d2   :  { %5419 = vmatpush1.bf16.msra.mxu0 %v7267_v16  ;;  %v7291_v16 = vld [vmem:[#allocation13 + $0x120] ss:$8 sps:$4 sm:$0xff]  }
 0x6d3   :  { %5420 = vmatprep.subr.bf16.mxu0 %v7272_v59  ;;  %v7294_v59 = vld [vmem:[#allocation13 + $0x130] ss:$8 sps:$4 sm:$0xff]  }
 0x6d6   :  { %5421 = vmatpush1.bf16.msra.mxu0 %v7270_v17  ;;  %v7299_v17 = vld [vmem:[#allocation13 + $0x144] ss:$8 sps:$4 sm:$0xff]  }
 0x6d7   :  { %5422 = vmatprep.subr.bf16.mxu0 %v7275_v4  ;;  %v7297_v4 = vld [vmem:[#allocation13 + $0x140] ss:$8 sps:$4 sm:$0xff]  }
 0x6da   :  { %5423 = vmatpush1.bf16.msra.mxu0 %v7273_v18  ;;  %v7302_v18 = vld [vmem:[#allocation13 + $0x154] ss:$8 sps:$4 sm:$0xff]  }
 0x6db   :  { %5424 = vmatprep.subr.bf16.mxu0 %v7278_v46  ;;  %v7300_v46 = vld [vmem:[#allocation13 + $0x150] ss:$8 sps:$4 sm:$0xff]  }
 0x6de   :  { %5425 = vmatpush1.bf16.msra.mxu0 %v7276_v42  ;;  %v7305_v42 = vld [vmem:[#allocation13 + $0x164] ss:$8 sps:$4 sm:$0xff]  }
 0x6df   :  { %5426 = vmatprep.subr.bf16.mxu0 %v7281_v51  ;;  %v7303_v51 = vld [vmem:[#allocation13 + $0x160] ss:$8 sps:$4 sm:$0xff]  }
 0x6e2   :  { %5427 = vmatpush1.bf16.msra.mxu0 %v7279_v20  ;;  %v7308_v20 = vld [vmem:[#allocation13 + $0x174] ss:$8 sps:$4 sm:$0xff]  }
 0x6e3   :  { %5428 = vmatprep.subr.bf16.mxu0 %v7284_v48  ;;  %v7306_v48 = vld [vmem:[#allocation13 + $0x170] ss:$8 sps:$4 sm:$0xff]  }
 0x6e6   :  { %5429 = vmatpush1.bf16.msra.mxu0 %v7282_v25  ;;  %v7311_v25 = vld [vmem:[#allocation13 + $0x184] ss:$8 sps:$4 sm:$0xff]  }
 0x6e7   :  { %5439 = vmatprep.subr.bf16.mxu0 %v7287_v43  ;;  %v7309_v43 = vld [vmem:[#allocation13 + $0x180] ss:$8 sps:$4 sm:$0xff]  }
 0x77c   :  { %v4738_v28 = vpop.f32.mrb[12].mxu0 }
 0x77d   :  { %v8132_v31 = vadd.f32 %v4738_v28, %v3284_v58  ;;  %v4902_v32 = vpop.f32.mrb[12].mxu1  ;;  %v4740_v52 = vpop.f32.mrb[13].mxu0  ;;  %v4977_v58 = vrot.slane %v4910_v22, %v7877_v47  ;;  %v7324_v22 = vld [vmem:[#allocation13 + $0x1d0] ss:$8 sps:$4 sm:$0xff]  }
 0x77e   :  { %v8134_v54 = vadd.f32 %v4902_v32, %v3292_v26  ;;  %v8136_v55 = vadd.f32 %v4740_v52, %v3288_v36  ;;  %v4904_v57 = vpop.f32.mrb[13].mxu1  ;;  %v4742_v61 = vpop.f32.mrb[14].mxu0 }
 0x77f   :  { %v4917_v62 = vmul.f32 %v8132_v31, %v8132_v31  ;;  %v4906_v63 = vpop.f32.mrb[14].mxu1  ;;  %v4743_v0 = vpop.f32.mrb[15].mxu0  ;;  %v8144_v2 = vadd.f32 %v4904_v57, %v3296_v30 }
 0x780   :  { %v4911_v1 = vadd.f32 %v8136_v55, %v8132_v31  ;;  %v4918_v14 = vmul.f32 %v8136_v55, %v8136_v55  ;;  %v4907_v3 = vpop.f32.mrb[15].mxu1  ;;  %v4919_v5 = vmul.f32 %v8134_v54, %v8134_v54 }
 0x781   :  { %v4920_v9 = vmul.f32 %v8144_v2, %v8144_v2 }
 0x782   :  { %v4912_v6 = vadd.f32 %v8134_v54, %v4911_v1  ;;  %v4921_v7 = vadd.f32 %v4918_v14, %v4917_v62 }
 0x784   :  { %v4913_v8 = vadd.f32 %v8144_v2, %v4912_v6  ;;  %v4922_v10 = vadd.f32 %v4921_v7, %v4919_v5 }
 0x786   :  { %4914 = vadd.xlane.f32.xlu0 %v4913_v8  ;;  %v4923_v11 = vadd.f32 %v4922_v10, %v4920_v9  ;;  %v7285_v10 = vld [vmem:[#allocation13 + $0x100] ss:$8 sps:$4 sm:$0xff]  }
 0x788   :  { %4924 = vadd.xlane.f32.xlu1 %v4923_v11 }
 0x813   :  { %v4915_v56 = vpop.xlane.xlu0 %4914 }
 0x814   :  { %v4916_v44 = vmul.f32 0.001953125, %v4915_v56  ;;  %v7314_v56 = vld [vmem:[#allocation13 + $0x194] ss:$8 sps:$4 sm:$0xff]  }
 0x815   :  { %v4925_v29 = vpop.xlane.xlu1 %4924 }
 0x816   :  { %v4926_v13 = vmul.f32 0.001953125, %v4925_v29  ;;  %v4927_v33 = vmul.f32 %v4916_v44, %v4916_v44  ;;  %v4957_v36 = vsub.f32 %v8132_v31, %v4916_v44  ;;  %v4959_v28 = vsub.f32 %v8134_v54, %v4916_v44  ;;  %v7317_v29 = vld [vmem:[#allocation13 + $0x1a4] ss:$8 sps:$4 sm:$0xff]  }
 0x817   :  { %v4958_v30 = vsub.f32 %v8136_v55, %v4916_v44  ;;  %v4960_v32 = vsub.f32 %v8144_v2, %v4916_v44  ;;  %v7312_v44 = vld [vmem:[#allocation13 + $0x190] ss:$8 sps:$4 sm:$0xff]  }
 0x818   :  { %v4928_v19 = vsub.f32 %v4926_v13, %v4927_v33  ;;  %v7315_v13 = vld [vmem:[#allocation13 + $0x1a0] ss:$8 sps:$4 sm:$0xff]   ;;  %v7320_v33 = vld [vmem:[#allocation13 + $0x1b4] ss:$8 sps:$4 sm:$0xff]  }
 0x81a   :  { %v4929_v34 = vmax.f32 %v4928_v19, 0.0  ;;  %v7318_v19 = vld [vmem:[#allocation13 + $0x1b0] ss:$8 sps:$4 sm:$0xff]  }
 0x81c   :  { %v4930_v49 = vadd.f32 1e-05, %v4929_v34  ;;  %v7323_v34 = vld [vmem:[#allocation13 + $0x1c4] ss:$8 sps:$4 sm:$0xff]  }
 0x81e   :  { %7403 = vrsqrt.f32 %v4930_v49  ;;  %v7321_v49 = vld [vmem:[#allocation13 + $0x1c0] ss:$8 sps:$4 sm:$0xff]  }
 0x828   :  { %v7404_v26 = vpop.eup %7403 }
 0x829   :  { %v4954_v52 = vmul.f32 %v7404_v26, %v4940_v23  ;;  %v4953_v57 = vmul.f32 %v7404_v26, %v4936_v40  ;;  %v4956_v61 = vmul.f32 %v7404_v26, %v4948_v37  ;;  %v4955_v62 = vmul.f32 %v7404_v26, %v4944_v38  ;;  %v7329_v23 = vld [vmem:[#allocation13 + $0x1e4] ss:$8 sps:$4 sm:$0xff]   ;;  %v7327_v40 = vld [vmem:[#allocation13 + $0x1e0] ss:$8 sps:$4 sm:$0xff]   ;;  %v7332_v37 = vld [vmem:[#allocation13 + $0x1f4] ss:$8 sps:$4 sm:$0xff]  }
 0x82a   :  { %v7335_v26 = vld [vmem:[#allocation15 + $0x4] ss:$12 sps:$4 sm:$0xff]  }
 0x82b   :  { %v4962_v63 = vmul.f32 %v4958_v30, %v4954_v52  ;;  %v4961_v0 = vmul.f32 %v4957_v36, %v4953_v57  ;;  %v4964_v1 = vmul.f32 %v4960_v32, %v4956_v61  ;;  %v4963_v14 = vmul.f32 %v4959_v28, %v4955_v62  ;;  %v7338_v36 = vld [vmem:[#allocation15 + $0x1c] ss:$12 sps:$4 sm:$0xff]   ;;  %5870 = vmatprep.subr.bf16.mxu1 %v7335_v26  ;;  %v7336_v28 = vld [vmem:[#allocation15 + $0x18] ss:$12 sps:$4 sm:$0xff]   ;;  %v7341_v30 = vld [vmem:[#allocation15 + $0x34] ss:$12 sps:$4 sm:$0xff]  }
 0x82c   :  { %v7339_v32 = vld [vmem:[#allocation15 + $0x30] ss:$12 sps:$4 sm:$0xff]   ;;  %v7344_v52 = vld [vmem:[#allocation15 + $0x4c] ss:$12 sps:$4 sm:$0xff]   ;;  %v7342_v57 = vld [vmem:[#allocation15 + $0x48] ss:$12 sps:$4 sm:$0xff]  }
 0x82d   :  { %v4987_v50 = vadd.f32 %v4973_v39, %v4962_v63  ;;  %v4986_v3 = vadd.f32 %v4969_v53, %v4961_v0  ;;  %v4989_v5 = vadd.f32 %v4981_v35, %v4964_v1  ;;  %v8170_v6 = vadd.f32 %v4977_v58, %v4963_v14  ;;  %v7330_v39 = vld [vmem:[#allocation13 + $0x1f0] ss:$8 sps:$4 sm:$0xff]   ;;  %v7333_v58 = vld [vmem:[#allocation15] ss:$12 sps:$4 sm:$0xff]   ;;  %v7350_v63 = vld [vmem:[#allocation15 + $0x7c] ss:$12 sps:$4 sm:$0xff]  }
 0x82e   :  { %5871 = vmatpush1.bf16.msra.mxu1 %v7333_v58  ;;  %v7347_v61 = vld [vmem:[#allocation15 + $0x64] ss:$12 sps:$4 sm:$0xff]   ;;  %v7345_v62 = vld [vmem:[#allocation15 + $0x60] ss:$12 sps:$4 sm:$0xff]  }
 0x82f   :  { %v4991_v31 = vmul.f32 0.2, %v4987_v50  ;;  %v4990_v7 = vmul.f32 0.2, %v4986_v3  ;;  %v4993_v54 = vmul.f32 0.2, %v4989_v5  ;;  %5872 = vmatprep.subr.bf16.mxu1 %v7338_v36 }
 0x830   :  { %v4992_v38 = vmul.f32 0.2, %v8170_v6  ;;  %v7348_v0 = vld [vmem:[#allocation15 + $0x78] ss:$12 sps:$4 sm:$0xff]   ;;  %v7353_v1 = vld [vmem:[#allocation15 + $0x94] ss:$12 sps:$4 sm:$0xff]  }
 0x831   :  { %v4995_v8 = vmax.f32 %v4987_v50, %v4991_v31  ;;  %v4994_v55 = vmax.f32 %v4986_v3, %v4990_v7  ;;  %v4997_v9 = vmax.f32 %v4989_v5, %v4993_v54  ;;  %v7351_v14 = vld [vmem:[#allocation15 + $0x90] ss:$12 sps:$4 sm:$0xff]   ;;  %v7356_v50 = vld [vmem:[#allocation15 + $0xac] ss:$12 sps:$4 sm:$0xff]   ;;  %v7354_v3 = vld [vmem:[#allocation15 + $0xa8] ss:$12 sps:$4 sm:$0xff]  }
 0x832   :  { %v4996_v53 = vmax.f32 %v8170_v6, %v4992_v38  ;;  %5873 = vmatpush1.bf16.msra.mxu1 %v7336_v28  ;;  %v5066_v5 = vld [vmem:[%s8234_s18] sm:$0x3] }
 0x833   :  { %v4999_v2 = vpack.c.bf16 %v4995_v8, %v4995_v8  ;;  %v4998_v11 = vpack.c.bf16 %v4994_v55, %v4994_v55  ;;  %v5001_v15 = vpack.c.bf16 %v4997_v9, %v4997_v9  ;;  %5874 = vmatprep.subr.bf16.mxu1 %v7341_v30  ;;  %v5071_v6 = vrot.slane %v5066_v5, %v7867_v41 }
 0x834   :  { %v5000_v35 = vpack.c.bf16 %v4996_v53, %v4996_v53  ;;  %v5075_v31 = vrot.slane %v5066_v5, %v7873_v45  ;;  %v7384_v5 = vld [vmem:[#allocation15 + $0x20] ss:$12 sps:$4 sm:$0xff]  }
 0x835   :  { %5430 = vmatprep.mubr.bf16.mxu0 %v4999_v2 }
 0x836   :  { %5431 = vmatmul.mubr.bf16.vlgmr.msra.gmra.mrb[16].mxu0 %v4998_v11  ;;  %5875 = vmatpush1.bf16.msra.mxu1 %v7339_v32 }
 0x837   :  { %5440 = vmatpush1.bf16.msra.mxu0 %v7285_v10  ;;  %5471 = vmatprep.mubr.bf16.mxu0 %v5001_v15 }
 0x838   :  { %5441 = vmatprep.subr.bf16.mxu0 %v7290_v12  ;;  %5876 = vmatprep.subr.bf16.mxu1 %v7344_v52 }
 0x83a   :  { %5877 = vmatpush1.bf16.msra.mxu1 %v7342_v57 }
 0x83b   :  { %5442 = vmatpush1.bf16.msra.mxu0 %v7288_v60  ;;  %5878 = vmatprep.subr.bf16.mxu1 %v7347_v61  ;;  %v7359_v60 = vld [vmem:[#allocation15 + $0xc4] ss:$12 sps:$4 sm:$0xff]  }
 0x83c   :  { %5443 = vmatprep.subr.bf16.mxu0 %v7293_v27  ;;  %v7357_v27 = vld [vmem:[#allocation15 + $0xc0] ss:$12 sps:$4 sm:$0xff]  }
 0x83e   :  { %5879 = vmatpush1.bf16.msra.mxu1 %v7345_v62 }
 0x83f   :  { %5444 = vmatpush1.bf16.msra.mxu0 %v7291_v16  ;;  %5880 = vmatprep.subr.bf16.mxu1 %v7350_v63  ;;  %v7362_v16 = vld [vmem:[#allocation15 + $0xdc] ss:$12 sps:$4 sm:$0xff]  }
 0x840   :  { %5445 = vmatprep.subr.bf16.mxu0 %v7296_v24  ;;  %v7360_v24 = vld [vmem:[#allocation15 + $0xd8] ss:$12 sps:$4 sm:$0xff]  }
 0x842   :  { %5881 = vmatpush1.bf16.msra.mxu1 %v7348_v0 }
 0x843   :  { %5446 = vmatpush1.bf16.msra.mxu0 %v7294_v59  ;;  %5882 = vmatprep.subr.bf16.mxu1 %v7353_v1  ;;  %v7365_v59 = vld [vmem:[#allocation15 + $0xf4] ss:$12 sps:$4 sm:$0xff]  }
 0x844   :  { %5447 = vmatprep.subr.bf16.mxu0 %v7299_v17  ;;  %v7363_v17 = vld [vmem:[#allocation15 + $0xf0] ss:$12 sps:$4 sm:$0xff]  }
 0x846   :  { %5883 = vmatpush1.bf16.msra.mxu1 %v7351_v14 }
 0x847   :  { %5448 = vmatpush1.bf16.msra.mxu0 %v7297_v4  ;;  %5884 = vmatprep.subr.bf16.mxu1 %v7356_v50  ;;  %v7368_v4 = vld [vmem:[#allocation15 + $0x10c] ss:$12 sps:$4 sm:$0xff]   ;;  %v7382_v50 = vld [vmem:[#allocation15 + $0x8] ss:$12 sps:$4 sm:$0xff]  }
 0x848   :  { %5449 = vmatprep.subr.bf16.mxu0 %v7302_v18  ;;  %v7366_v18 = vld [vmem:[#allocation15 + $0x108] ss:$12 sps:$4 sm:$0xff]  }
 0x84a   :  { %5885 = vmatpush1.bf16.msra.mxu1 %v7354_v3  ;;  %v7383_v3 = vld [vmem:[#allocation15 + $0xe0] ss:$12 sps:$4 sm:$0xff]  }
 0x84b   :  { %5450 = vmatpush1.bf16.msra.mxu0 %v7300_v46  ;;  %5886 = vmatprep.subr.bf16.mxu1 %v7359_v60  ;;  %v7371_v46 = vld [vmem:[#allocation15 + $0x124] ss:$12 sps:$4 sm:$0xff]   ;;  %v5597_v60 = vld [vmem:[%s8238_s22] sm:$0x7] }
 0x84c   :  { %5451 = vmatprep.subr.bf16.mxu0 %v7305_v42  ;;  %v7369_v42 = vld [vmem:[#allocation15 + $0x120] ss:$12 sps:$4 sm:$0xff]  }
 0x84e   :  { %5887 = vmatpush1.bf16.msra.mxu1 %v7357_v27  ;;  %v5602_v27 = vrot.slane %v5597_v60, %v7867_v41 }
 0x84f   :  { %5452 = vmatpush1.bf16.msra.mxu0 %v7303_v51  ;;  %5888 = vmatprep.subr.bf16.mxu1 %v7362_v16  ;;  %v7374_v51 = vld [vmem:[#allocation15 + $0x13c] ss:$12 sps:$4 sm:$0xff]   ;;  %v5606_v16 = vrot.slane %v5597_v60, %v7873_v45 }
 0x850   :  { %5453 = vmatprep.subr.bf16.mxu0 %v7308_v20  ;;  %v7372_v20 = vld [vmem:[#allocation15 + $0x138] ss:$12 sps:$4 sm:$0xff]  }
 0x852   :  { %5889 = vmatpush1.bf16.msra.mxu1 %v7360_v24 }
 0x853   :  { %5454 = vmatpush1.bf16.msra.mxu0 %v7306_v48  ;;  %5890 = vmatprep.subr.bf16.mxu1 %v7365_v59  ;;  %v7377_v48 = vld [vmem:[#allocation15 + $0x154] ss:$12 sps:$4 sm:$0xff]  }
 0x854   :  { %5455 = vmatprep.subr.bf16.mxu0 %v7311_v25  ;;  %v7375_v25 = vld [vmem:[#allocation15 + $0x150] ss:$12 sps:$4 sm:$0xff]  }
 0x856   :  { %5891 = vmatpush1.bf16.msra.mxu1 %v7363_v17 }
 0x857   :  { %5456 = vmatpush1.bf16.msra.mxu0 %v7309_v43  ;;  %5892 = vmatprep.subr.bf16.mxu1 %v7368_v4  ;;  %v7380_v43 = vld [vmem:[#allocation15 + $0x16c] ss:$12 sps:$4 sm:$0xff]  }
 0x858   :  { %5457 = vmatprep.subr.bf16.mxu0 %v7314_v56  ;;  %v7378_v56 = vld [vmem:[#allocation15 + $0x168] ss:$12 sps:$4 sm:$0xff]  }
 0x85a   :  { %5893 = vmatpush1.bf16.msra.mxu1 %v7366_v18 }
 0x85b   :  { %5458 = vmatpush1.bf16.msra.mxu0 %v7312_v44  ;;  %5894 = vmatprep.subr.bf16.mxu1 %v7371_v46  ;;  %v7381_v44 = vld [vmem:[#allocation15 + $0xc8] ss:$12 sps:$4 sm:$0xff]  }
 0x85c   :  { %5459 = vmatprep.subr.bf16.mxu0 %v7317_v29 }
 0x85e   :  { %5895 = vmatpush1.bf16.msra.mxu1 %v7369_v42 }
 0x85f   :  { %5460 = vmatpush1.bf16.msra.mxu0 %v7315_v13  ;;  %5896 = vmatprep.subr.bf16.mxu1 %v7374_v51  ;;  %v5610_v51 = vrot.slane %v5597_v60, %v7877_v47 }
 0x860   :  { %5461 = vmatprep.subr.bf16.mxu0 %v7320_v33 }
 0x862   :  { %5897 = vmatpush1.bf16.msra.mxu1 %v7372_v20 }
 0x863   :  { %5462 = vmatpush1.bf16.msra.mxu0 %v7318_v19  ;;  %5898 = vmatprep.subr.bf16.mxu1 %v7377_v48 }
 0x864   :  { %5463 = vmatprep.subr.bf16.mxu0 %v7323_v34 }
 0x866   :  { %5899 = vmatpush1.bf16.msra.mxu1 %v7375_v25 }
 0x867   :  { %5464 = vmatpush1.bf16.msra.mxu0 %v7321_v49  ;;  %5900 = vmatprep.subr.bf16.mxu1 %v7380_v43 }
 0x868   :  { %5465 = vmatprep.subr.bf16.mxu0 %v7326_v21 }
 0x86a   :  { %5901 = vmatpush1.bf16.msra.mxu1 %v7378_v56 }
 0x86b   :  { %5466 = vmatpush1.bf16.msra.mxu0 %v7324_v22  ;;  %6651 = vmatprep.subr.bf16.mxu1 %v7381_v44 }
 0x86c   :  { %5467 = vmatprep.subr.bf16.mxu0 %v7329_v23  ;;  %v5480_v23 = vld [vmem:[%s8235_s19] sm:$0x3] }
 0x86d   :  { %v5505_v38 = vrot.slane %v5480_v23, %v7873_v45 }
 0x86f   :  { %5468 = vmatpush1.bf16.msra.mxu0 %v7327_v40  ;;  %v5481_v40 = vld [vmem:[%s8236_s20] sm:$0x3] }
 0x870   :  { %5469 = vmatprep.subr.bf16.mxu0 %v7332_v37  ;;  %v5501_v37 = vrot.slane %v5480_v23, %v7867_v41  ;;  %v5518_v53 = vrot.slane %v5481_v40, %v7867_v41 }
 0x873   :  { %5470 = vmatpush1.bf16.msra.mxu0 %v7330_v39 }
 0x876   :  { %5472 = vmatmul.mubr.bf16.vlgmr.msra.gmra.mrb[16].mxu0 %v5000_v35  ;;  %v5522_v35 = vrot.slane %v5481_v40, %v7873_v45 }
 0x949   :  { %v5473_v7 = vpop.f32.mrb[16].mxu0 }
 0x94a   :  { %v8179_v54 = vadd.f32 %v5473_v7, %v5071_v6  ;;  %v5475_v8 = vpop.f32.mrb[17].mxu0  ;;  %v7385_v6 = vld [vmem:[#allocation15 + $0xf8] ss:$12 sps:$4 sm:$0xff]   ;;  %v7387_v7 = vld [vmem:[#allocation15 + $0x110] ss:$12 sps:$4 sm:$0xff]  }
 0x94b   :  { %v8181_v55 = vadd.f32 %v5475_v8, %v5075_v31  ;;  %v5477_v9 = vpop.f32.mrb[18].mxu0  ;;  %v7386_v31 = vld [vmem:[#allocation15 + $0x38] ss:$12 sps:$4 sm:$0xff]   ;;  %v7389_v8 = vld [vmem:[#allocation15 + $0x128] ss:$12 sps:$4 sm:$0xff]  }
 0x94c   :  { %v5478_v2 = vpop.f32.mrb[19].mxu0  ;;  %v5486_v10 = vmul.f32 %v8179_v54, %v8179_v54  ;;  %v7391_v9 = vld [vmem:[#allocation15 + $0x140] ss:$12 sps:$4 sm:$0xff]  }
 0x94d   :  { %v5482_v11 = vadd.f32 %v8181_v55, %v8179_v54  ;;  %v5487_v12 = vmul.f32 %v8181_v55, %v8181_v55  ;;  %v7392_v2 = vld [vmem:[#allocation15 + $0x80] ss:$12 sps:$4 sm:$0xff]  }
 0x94f   :  { %5483 = vadd.xlane.f32.xlu0 %v5482_v11  ;;  %v5488_v15 = vadd.f32 %v5487_v12, %v5486_v10  ;;  %v7393_v10 = vld [vmem:[#allocation15 + $0x158] ss:$12 sps:$4 sm:$0xff]   ;;  %v7395_v12 = vld [vmem:[#allocation15 + $0x170] ss:$12 sps:$4 sm:$0xff]  }
 0x950   :  { %v7394_v11 = vld [vmem:[#allocation15 + $0x98] ss:$12 sps:$4 sm:$0xff]  }
 0x951   :  { %5489 = vadd.xlane.f32.xlu1 %v5488_v15  ;;  %v7396_v15 = vld [vmem:[#allocation15 + $0xb0] ss:$12 sps:$4 sm:$0xff]  }
 0x9dc   :  { %v5484_v29 = vpop.xlane.xlu0 %5483 }
 0x9dd   :  { %v5485_v13 = vmul.f32 0.00390625, %v5484_v29 }
 0x9de   :  { %v5490_v33 = vpop.xlane.xlu1 %5489 }
 0x9df   :  { %v5491_v19 = vmul.f32 0.00390625, %v5490_v33  ;;  %v5492_v34 = vmul.f32 %v5485_v13, %v5485_v13  ;;  %v5510_v58 = vsub.f32 %v8179_v54, %v5485_v13  ;;  %v5511_v26 = vsub.f32 %v8181_v55, %v5485_v13  ;;  %v7388_v54 = vld [vmem:[#allocation15 + $0x50] ss:$12 sps:$4 sm:$0xff]   ;;  %v7390_v55 = vld [vmem:[#allocation15 + $0x68] ss:$12 sps:$4 sm:$0xff]  }
 0x9e1   :  { %v5493_v49 = vsub.f32 %v5491_v19, %v5492_v34 }
 0x9e3   :  { %v5494_v21 = vmax.f32 %v5493_v49, 0.0 }
 0x9e5   :  { %v5495_v22 = vadd.f32 1e-05, %v5494_v21 }
 0x9e7   :  { %7405 = vrsqrt.f32 %v5495_v22 }
 0x9f1   :  { %v7406_v39 = vpop.eup %7405 }
 0x9f2   :  { %v5509_v36 = vmul.f32 %v7406_v39, %v5505_v38  ;;  %v5508_v28 = vmul.f32 %v7406_v39, %v5501_v37 }
 0x9f4   :  { %v5513_v30 = vmul.f32 %v5511_v26, %v5509_v36  ;;  %v5512_v32 = vmul.f32 %v5510_v58, %v5508_v28 }
 0x9f6   :  { %v5526_v52 = vadd.f32 %v5522_v35, %v5513_v30  ;;  %v5525_v57 = vadd.f32 %v5518_v53, %v5512_v32 }
 0x9f8   :  { %v5528_v61 = vmul.f32 0.2, %v5526_v52  ;;  %v5527_v62 = vmul.f32 0.2, %v5525_v57 }
 0x9fa   :  { %v5530_v63 = vmax.f32 %v5526_v52, %v5528_v61  ;;  %v5529_v0 = vmax.f32 %v5525_v57, %v5527_v62 }
 0x9fc   :  { %v5532_v1 = vpack.c.bf16 %v5530_v63, %v5530_v63  ;;  %v5531_v14 = vpack.c.bf16 %v5529_v0, %v5529_v0 }
 0x9fe   :  { %5902 = vmatprep.mubr.bf16.mxu1 %v5532_v1 }
 0x9ff   :  { %5903 = vmatmul.mubr.bf16.vlgmr.msra.gmra.mrb[16].mxu1 %v5531_v14 }
 0xa00   :  { %6652 = vmatpush3.bf16.msra.mxu1 %v7382_v50  ;;  %5943 = vmatprep.mubr.bf16.mxu1 %v5532_v1 }
 0xa01   :  { %6653 = vmatprep.subr.bf16.mxu1 %v7383_v3 }
 0xa04   :  { %6654 = vmatpush3.bf16.msra.mxu1 %v7384_v5 }
 0xa05   :  { %6655 = vmatprep.subr.bf16.mxu1 %v7385_v6 }
 0xa08   :  { %6656 = vmatpush3.bf16.msra.mxu1 %v7386_v31 }
 0xa09   :  { %6657 = vmatprep.subr.bf16.mxu1 %v7387_v7 }
 0xa0c   :  { %6658 = vmatpush3.bf16.msra.mxu1 %v7388_v54 }
 0xa0d   :  { %6659 = vmatprep.subr.bf16.mxu1 %v7389_v8 }
 0xa10   :  { %6660 = vmatpush3.bf16.msra.mxu1 %v7390_v55 }
 0xa11   :  { %6661 = vmatprep.subr.bf16.mxu1 %v7391_v9 }
 0xa14   :  { %6662 = vmatpush3.bf16.msra.mxu1 %v7392_v2 }
 0xa15   :  { %6663 = vmatprep.subr.bf16.mxu1 %v7393_v10 }
 0xa18   :  { %6664 = vmatpush3.bf16.msra.mxu1 %v7394_v11 }
 0xa19   :  { %6665 = vmatprep.subr.bf16.mxu1 %v7395_v12 }
 0xa1c   :  { %6666 = vmatpush3.bf16.msra.mxu1 %v7396_v15 }
 0xa1f   :  { %5944 = vmatmul.mubr.bf16.vlgmr.msra.gmra.mrb[20].mxu1 %v5531_v14 }
 0xad2   :  { %v5904_v24 = vpop.f32.mrb[16].mxu1 }
 0xad3   :  { %v5905_v59 = vadd.f32 %v5904_v24, %v5602_v27  ;;  %v5906_v17 = vpop.f32.mrb[17].mxu1 }
 0xad4   :  { %v5907_v4 = vadd.f32 %v5906_v17, %v5606_v16  ;;  %v5908_v18 = vpop.f32.mrb[18].mxu1 }
 0xad5   :  { %5951 = vst [vmem:[%s8263_s21] sm:$0xff] %v5905_v59  ;;  %v5909_v46 = vpop.f32.mrb[19].mxu1 }
 0xad6   :  { %5952 = vst [vmem:[%s8263_s21 + $0x8] sm:$0xff] %v5907_v4 }
 0xaf2   :  { %v6667_v42 = vpop.f32.mrb[20].mxu1 }
 0xaf3   :  { %v6668_v41 = vpop.f32.mrb[21].mxu1 }
 0xaf4   :  { %v6669_v20 = vadd.f32 %v6668_v41, %v6667_v42  ;;  %v6670_v45 = vpop.f32.mrb[22].mxu1 }
 0xaf5   :  { %v6671_v48 = vpop.f32.mrb[23].mxu1 }
 0xaf6   :  { %v5946_v25 = vadd.f32 %v6669_v20, %v5610_v51 }
 0xaf8   :  { %5953 = vst [vmem:[%s8263_s21 + $0x10] sm:$0xff] %v5946_v25 }
 0xaf9   :  { %5958 = vsyncpa [#allocation3], 1 }
 0xafa   :  { %5959 = vsyncpa [#allocation5], 1 }
 0xafb   :  { %5960 = vsyncpa [#allocation8], 1 }
 0xafc   :  { %5961 = vsyncpa [#allocation11], 1 }
 0xafd   :  { %5962 = vsyncpa [#allocation14], 1 }

</bundles_post_ra>
